<compile_context>
chip_gen: v7x
topology: tpu7x:2x2x1
jax: 0.10.0
libtpu: 0.0.40
codegen_flags: <defaults>
</compile_context>

<pallas_src>
import functools

import jax
import jax.numpy as jnp
from jax.experimental import pallas as pl
from jax.experimental.pallas import tpu as pltpu

_NEG_SLOPE = 0.01   # nn.LeakyReLU default
_EPS = 1e-5         # nn.BatchNorm2d default


# ----------------------------- kernels --------------------------------------


def _pointwise_conv_stats_kernel(x_ref, w_ref, b_ref, y_ref, st_ref, *, prec):
    """1x1 conv (block-diagonal lifted matmul) + bias, plus per-tile BN1 sum/sumsq."""
    y = jnp.dot(x_ref[...], w_ref[...],
                preferred_element_type=jnp.float32, precision=prec)
    y = y + b_ref[...]                       # bias kept: this tensor is the residual
    y_ref[...] = y.astype(y_ref.dtype)       # lane-dense (tmd, FOLD*Cout) store
    # Per-tile partial statistics (reduced in the wrapper) -> grid stays "parallel".
    st_ref[0, 0:1, :] = jnp.sum(y, axis=0, keepdims=True)
    st_ref[0, 1:2, :] = jnp.sum(y * y, axis=0, keepdims=True)


def _prep_padded_activation(x_ref, sc_ref, sh_ref, abuf_ref, h):
    """BN (folded scale/shift) + LeakyReLU on the lane-dense (H, W*C) slab, written
    into the (H+2, W*C) padded scratch.  Pad rows are rewritten to zero every step,
    so the scratch carries no cross-step state (safe with "parallel" semantics)."""
    t = x_ref[...].astype(jnp.float32) * sc_ref[...] + sh_ref[...]
    t = jnp.where(t > 0.0, t, _NEG_SLOPE * t)
    zrow = jnp.zeros((1, t.shape[-1]), abuf_ref.dtype)
    abuf_ref[0:1, :] = zrow                              # top pad row
    abuf_ref[pl.ds(1, h), :] = t.astype(abuf_ref.dtype)  # interior rows
    abuf_ref[pl.ds(h + 1, 1), :] = zrow                  # bottom pad row


def _conv3x3_banded(abuf_ref, w_ref, h, wc, prec):
    """3x3 'same' conv = 3 row-shifted matmuls with banded (W*C, W*C) weights.
    The dx taps live inside the band; zero padding on the left/right is realised
    by clipping the band at the image edges."""
    acc = jnp.zeros((h, wc), jnp.float32)
    for dy in range(3):
        acc = acc + jnp.dot(abuf_ref[pl.ds(dy, h), :], w_ref[dy],
                            preferred_element_type=jnp.float32, precision=prec)
    return acc


def _conv3x3_bn_stats_kernel(x_ref, sc_ref, sh_ref, w_ref,
                             y_ref, st_ref, abuf_ref, *, h, prec):
    """act(bn1(x)) -> 3x3 conv (no bias), plus per-image BN2 sum/sumsq."""
    _prep_padded_activation(x_ref, sc_ref, sh_ref, abuf_ref, h)
    wc = y_ref.shape[-1]
    acc = _conv3x3_banded(abuf_ref, w_ref, h, wc, prec)
    y_ref[...] = acc.astype(y_ref.dtype)
    st_ref[0, 0:1, :] = jnp.sum(acc, axis=0, keepdims=True)
    st_ref[0, 1:2, :] = jnp.sum(acc * acc, axis=0, keepdims=True)


def _conv3x3_residual_kernel(x_ref, sc_ref, sh_ref, w_ref, r_ref,
                             y_ref, abuf_ref, *, h, prec):
    """act(bn2(h)) -> 3x3 conv (no bias) -> + residual."""
    _prep_padded_activation(x_ref, sc_ref, sh_ref, abuf_ref, h)
    wc = y_ref.shape[-1]
    acc = _conv3x3_banded(abuf_ref, w_ref, h, wc, prec)
    y_ref[...] = (acc + r_ref[...].astype(jnp.float32)).astype(y_ref.dtype)


# ------------------------------ wrapper --------------------------------------


def _default_vmem_limit():
    # v5e/v6e: 128 MiB physical VMEM -> use up to 96 MiB; v7x: 64 MiB -> ~48 MiB.
    try:
        cap = int(pltpu.get_tpu_info().vmem_capacity_bytes)
        return min(96 * 1024 * 1024, cap * 3 // 4)
    except Exception:
        return 64 * 1024 * 1024


def _pick_row_tile(m_dense, row_bytes, vmem_limit):
    """Largest row tile that divides m_dense and double-buffers within budget."""
    budget = vmem_limit // 3          # leave room for weights / bias / headroom
    for t in (4096, 2048, 1024, 512, 256, 128, 64, 32, 16, 8):
        if m_dense % t == 0 and 2 * t * row_bytes <= budget:
            return t
    return m_dense


def _banded_conv3x3_weights(w3_oihw, width):
    """Fold the 3 dx taps of a 3x3 conv into three banded (W*C, W*C) matrices:
    out[y] = sum_dy A[y+dy] @ band[dy], where A is the (H+2, W*C) padded slab."""
    cout = w3_oihw.shape[0]
    assert w3_oihw.shape[1] == cout, \
        "TODO(synk): grouped 3x3 conv (groups > 1) not implemented"
    taps = jnp.transpose(w3_oihw, (2, 3, 1, 0)).astype(jnp.float32)   # (ky, kx, ci, co)
    bands = []
    for ky in range(3):
        b = jnp.zeros((width * cout, width * cout), jnp.float32)
        for kx in range(3):
            # input column block x+kx-1 feeds output column block x (edge-clipped).
            b = b + jnp.kron(jnp.eye(width, k=1 - kx, dtype=jnp.float32), taps[ky, kx])
        bands.append(b)
    return jnp.stack(bands, axis=0)                                   # (3, W*C, W*C)


def _bn_scale_shift(s1, s2, count, gamma, beta, eps=_EPS):
    """Fold per-channel [sum, sumsq] into BN scale/shift (training-mode stats).
    Streaming E[x^2]-E[x]^2 in f32 with a clamp; for very large N*H*W a Welford
    merge would be safer, but f32 headroom is ample at these magnitudes."""
    mean = s1 / count
    var = jnp.maximum(s2 / count - mean * mean, 0.0)
    inv_std = jax.lax.rsqrt(var + eps)
    scale = gamma * inv_std
    shift = beta - mean * scale
    return scale, shift


def basic_res_block(x_nchw, params, *, compute_dtype=jnp.bfloat16,
                    vmem_limit_bytes=None):
    n, cin, h, w = x_nchw.shape
    cout = params["w_t"].shape[0]
    m = n * h * w
    wc = w * cout
    f32 = jnp.float32
    cdt = jnp.dtype(compute_dtype)

    if vmem_limit_bytes is None:
        vmem_limit_bytes = _default_vmem_limit()

    assert 128 % cin == 0, "TODO(synk): pad Cin up to a divisor of 128 for general channels"
    fold = 128 // cin
    assert m % fold == 0, "TODO(synk): pad the pixel count up to a multiple of the channel fold"
    assert h % 8 == 0 or n == 1, "TODO(synk): sublane-pad H for per-image conv blocks"
    assert wc <= 1024, "TODO(synk): tile W (with halo) once the banded 3x3 weight outgrows VMEM"

    prec = jax.lax.Precision.HIGHEST if cdt == jnp.float32 else None

    # ---- parameter prep (pure XLA glue) ------------------------------------
    w_pw = params["w_t"].reshape(cout, cin).T.astype(f32)              # (Cin, Cout)
    # Lift the 1x1 conv to a (FOLD*Cin, FOLD*Cout) block-diagonal matmul so the
    # MXU sees K=128 instead of a (Cin x Cout) sliver.
    w_bd = jnp.kron(jnp.eye(fold, dtype=f32), w_pw).astype(cdt)
    b_pw = jnp.tile(params["b_t"].astype(f32), fold).reshape(1, fold * cout)
    wband1 = _banded_conv3x3_weights(params["w1"], w).astype(cdt)      # (3, W*C, W*C)
    wband2 = _banded_conv3x3_weights(params["w2"], w).astype(cdt)

    # ---- pass 1: 1x1 conv + bias, per-tile BN1 statistics -------------------
    m_dense = m // fold
    x_dense = jnp.transpose(x_nchw, (0, 2, 3, 1)).reshape(m_dense, fold * cin).astype(cdt)
    row_bytes = (fold * cin + fold * cout) * cdt.itemsize
    tmd = _pick_row_tile(m_dense, row_bytes, vmem_limit_bytes)
    n_tiles = m_dense // tmd

    x1_dense, st1 = pl.pallas_call(
        functools.partial(_pointwise_conv_stats_kernel, prec=prec),
        grid=(n_tiles,),
        in_specs=[
            pl.BlockSpec((tmd, fold * cin), lambda i: (i, 0)),
            pl.BlockSpec((fold * cin, fold * cout), lambda i: (0, 0)),
            pl.BlockSpec((1, fold * cout), lambda i: (0, 0)),
        ],
        out_specs=[
            pl.BlockSpec((tmd, fold * cout), lambda i: (i, 0)),
            pl.BlockSpec((1, 2, fold * cout), lambda i: (i, 0, 0)),
        ],
        out_shape=[
            jax.ShapeDtypeStruct((m_dense, fold * cout), cdt),
            jax.ShapeDtypeStruct((n_tiles, 2, fold * cout), f32),
        ],
        compiler_params=pltpu.CompilerParams(
            dimension_semantics=("parallel",), vmem_limit_bytes=vmem_limit_bytes),
    )(x_dense, w_bd, b_pw)

    s1 = st1.sum(axis=0)
    scale1, shift1 = _bn_scale_shift(
        s1[0].reshape(fold, cout).sum(axis=0), s1[1].reshape(fold, cout).sum(axis=0),
        float(m), params["g1"].astype(f32), params["be1"].astype(f32))
    sc1 = jnp.tile(scale1, w).reshape(1, wc)
    sh1 = jnp.tile(shift1, w).reshape(1, wc)

    # Lane-dense per-image-row slab; reshape is layout-free (NHWC flat order).
    x1_slab = x1_dense.reshape(n * h, wc)

    conv_in_specs = [
        pl.BlockSpec((h, wc), lambda i: (i, 0)),           # activation slab (1 image)
        pl.BlockSpec((1, wc), lambda i: (0, 0)),            # BN scale (tiled over W)
        pl.BlockSpec((1, wc), lambda i: (0, 0)),            # BN shift
        pl.BlockSpec((3, wc, wc), lambda i: (0, 0, 0)),      # banded 3x3 weights
    ]
    img_block = pl.BlockSpec((h, wc), lambda i: (i, 0))
    conv_scratch = [pltpu.VMEM((h + 2, wc), cdt)]

    # ---- pass 2: act(bn1) fused into 3x3 conv1, per-image BN2 statistics ----
    h_slab, st2 = pl.pallas_call(
        functools.partial(_conv3x3_bn_stats_kernel, h=h, prec=prec),
        grid=(n,),
        in_specs=conv_in_specs,
        out_specs=[img_block, pl.BlockSpec((1, 2, wc), lambda i: (i, 0, 0))],
        out_shape=[
            jax.ShapeDtypeStruct((n * h, wc), cdt),
            jax.ShapeDtypeStruct((n, 2, wc), f32),
        ],
        scratch_shapes=conv_scratch,
        compiler_params=pltpu.CompilerParams(
            dimension_semantics=("parallel",), vmem_limit_bytes=vmem_limit_bytes),
    )(x1_slab, sc1, sh1, wband1)

    s2 = st2.sum(axis=0)
    scale2, shift2 = _bn_scale_shift(
        s2[0].reshape(w, cout).sum(axis=0), s2[1].reshape(w, cout).sum(axis=0),
        float(m), params["g2"].astype(f32), params["be2"].astype(f32))
    sc2 = jnp.tile(scale2, w).reshape(1, wc)
    sh2 = jnp.tile(shift2, w).reshape(1, wc)

    # ---- pass 3: act(bn2) fused into 3x3 conv2, + residual ------------------
    out_slab = pl.pallas_call(
        functools.partial(_conv3x3_residual_kernel, h=h, prec=prec),
        grid=(n,),
        in_specs=conv_in_specs + [img_block],
        out_specs=img_block,
        out_shape=jax.ShapeDtypeStruct((n * h, wc), f32),
        scratch_shapes=conv_scratch,
        compiler_params=pltpu.CompilerParams(
            dimension_semantics=("parallel",), vmem_limit_bytes=vmem_limit_bytes),
    )(h_slab, sc2, sh2, wband2, x1_slab)

    return jnp.transpose(out_slab.reshape(n, h, w, cout), (0, 3, 1, 2))


# ----------------------------- reference -------------------------------------


def _reference(x_nchw, params, eps=_EPS):
    prec = jax.lax.Precision.HIGHEST
    dn = ("NCHW", "OIHW", "NCHW")

    def act(t):
        return jnp.where(t > 0.0, t, _NEG_SLOPE * t)

    def bn(y, g, b):
        mean = jnp.mean(y, axis=(0, 2, 3), keepdims=True)
        var = jnp.mean((y - mean) ** 2, axis=(0, 2, 3), keepdims=True)
        yhat = (y - mean) * jax.lax.rsqrt(var + eps)
        return yhat * g[None, :, None, None] + b[None, :, None, None]

    x1 = jax.lax.conv_general_dilated(x_nchw, params["w_t"], (1, 1), "VALID",
                                      dimension_numbers=dn, precision=prec)
    x1 = x1 + params["b_t"][None, :, None, None]
    out = act(bn(x1, params["g1"], params["be1"]))
    out = jax.lax.conv_general_dilated(out, params["w1"], (1, 1), "SAME",
                                       dimension_numbers=dn, precision=prec)
    out = act(bn(out, params["g2"], params["be2"]))
    out = jax.lax.conv_general_dilated(out, params["w2"], (1, 1), "SAME",
                                       dimension_numbers=dn, precision=prec)
    return out + x1


if __name__ == "__main__":
    key = jax.random.PRNGKey(0)
    ks = jax.random.split(key, 9)
    n, cin, cout, h, w = 2, 4, 8, 16, 16

    x = jax.random.normal(ks[0], (n, cin, h, w), jnp.float32)
    params = {
        "w_t": 0.3 * jax.random.normal(ks[1], (cout, cin, 1, 1), jnp.float32),
        "b_t": 0.1 * jax.random.normal(ks[2], (cout,), jnp.float32),
        "w1": 0.2 * jax.random.normal(ks[3], (cout, cout, 3, 3), jnp.float32),
        "w2": 0.2 * jax.random.normal(ks[4], (cout, cout, 3, 3), jnp.float32),
        "g1": 1.0 + 0.1 * jax.random.normal(ks[5], (cout,), jnp.float32),
        "be1": 0.1 * jax.random.normal(ks[6], (cout,), jnp.float32),
        "g2": 1.0 + 0.1 * jax.random.normal(ks[7], (cout,), jnp.float32),
        "be2": 0.1 * jax.random.normal(ks[8], (cout,), jnp.float32),
    }

    ref = _reference(x, params)

    # Exact-semantics check: f32 MXU path + f32 intermediates vs the f32 reference.
    out_f32 = jax.block_until_ready(
        jax.jit(functools.partial(basic_res_block, compute_dtype=jnp.float32))(x, params))
    assert out_f32.shape == (n, cout, h, w), out_f32.shape
    err_f32 = float(jnp.max(jnp.abs(out_f32 - ref)))
    assert err_f32 < 1e-3, f"f32 mismatch: {err_f32}"

    # Performance configuration (per review): bf16 MXU operands AND bf16 storage of
    # x / x1 / mid activations (f32 accumulation + f32 BN/LeakyReLU), compared to
    # the f32 reference at bf16-level tolerance.
    out_bf16 = jax.block_until_ready(
        jax.jit(functools.partial(basic_res_block, compute_dtype=jnp.bfloat16))(x, params))
    assert out_bf16.shape == (n, cout, h, w), out_bf16.shape
    assert jnp.allclose(out_bf16, ref, rtol=5e-2, atol=1e-1), \
        float(jnp.max(jnp.abs(out_bf16 - ref)))

    print("KERNEL_OK")
</pallas_src>

<mosaic_0001>
module attributes {stable_mosaic.version = 11 : i64} {
  func.func @_pointwise_conv_stats_kernel(%arg0: i32, %arg1: memref<16x128xf32, #tpu.memory_space<vmem>>, %arg2: memref<128x256xf32, #tpu.memory_space<vmem>>, %arg3: memref<1x256xf32, #tpu.memory_space<vmem>>, %arg4: memref<16x256xf32, #tpu.memory_space<vmem>>, %arg5: memref<1x2x256xf32, #tpu.memory_space<vmem>>) attributes {dimension_semantics = [#tpu.dimension_semantics<parallel>], iteration_bounds = array<i64: 1>, scalar_prefetch = 0 : i64, scratch_operands = 0 : i64, tpu.core_type = #tpu.core_type<tc>, window_params = [{transform_indices = @transform_0, window_bounds = array<i64: 16, 128>}, {pipeline_mode = #tpu.pipeline_mode<synchronous>, transform_indices = @transform_1, window_bounds = array<i64: 128, 256>}, {pipeline_mode = #tpu.pipeline_mode<synchronous>, transform_indices = @transform_2, window_bounds = array<i64: 1, 256>}, {transform_indices = @transform_3, window_bounds = array<i64: 16, 256>}, {transform_indices = @transform_4, window_bounds = array<i64: 1, 2, 256>}]} {
    %c0 = arith.constant 0 : index
    %c0_0 = arith.constant 0 : index
    %0 = vector.load %arg1[%c0, %c0_0] : memref<16x128xf32, #tpu.memory_space<vmem>>, vector<16x128xf32>
    %c0_1 = arith.constant 0 : index
    %c0_2 = arith.constant 0 : index
    %1 = vector.load %arg2[%c0_1, %c0_2] : memref<128x256xf32, #tpu.memory_space<vmem>>, vector<128x256xf32>
    %cst = arith.constant dense<0.000000e+00> : vector<16x256xf32>
    %2 = tpu.matmul %0, %1, %cst {dimension_numbers = #tpu.dot_dimension_numbers<[1], [0], [0], [1], [0, 0, 1, 1], [], []>, precision = #tpu.contract_precision<fp32>} : vector<16x128xf32>, vector<128x256xf32>, vector<16x256xf32> -> vector<16x256xf32>
    %c0_3 = arith.constant 0 : index
    %c0_4 = arith.constant 0 : index
    %3 = vector.load %arg3[%c0_3, %c0_4] : memref<1x256xf32, #tpu.memory_space<vmem>>, vector<1x256xf32>
    %4 = vector.broadcast %3 : vector<1x256xf32> to vector<16x256xf32>
    %5 = arith.addf %2, %4 : vector<16x256xf32>
    %c0_5 = arith.constant 0 : index
    %c0_6 = arith.constant 0 : index
    %6 = vector.load %arg4[%c0_5, %c0_6] : memref<16x256xf32, #tpu.memory_space<vmem>>, vector<16x256xf32>
    tpu.vector_store %arg4[%c0_5, %c0_6], %5 {strides = array<i32>} : memref<16x256xf32, #tpu.memory_space<vmem>>, vector<16x256xf32>,
    %cst_7 = arith.constant dense<0.000000e+00> : vector<256xf32>
    %7 = vector.multi_reduction <add>, %5, %cst_7 [0] : vector<16x256xf32> to vector<256xf32>
    %8 = vector.shape_cast %7 : vector<256xf32> to vector<1x256xf32>
    %c0_8 = arith.constant 0 : index
    %c0_9 = arith.constant 0 : index
    %c0_10 = arith.constant 0 : index
    %9 = vector.load %arg5[%c0_8, %c0_9, %c0_10] : memref<1x2x256xf32, #tpu.memory_space<vmem>>, vector<1x1x256xf32>
    %10 = vector.shape_cast %9 : vector<1x1x256xf32> to vector<1x256xf32>
    %11 = vector.shape_cast %8 : vector<1x256xf32> to vector<1x1x256xf32>
    tpu.vector_store %arg5[%c0_8, %c0_9, %c0_10], %11 {strides = array<i32>} : memref<1x2x256xf32, #tpu.memory_space<vmem>>, vector<1x1x256xf32>,
    %12 = arith.mulf %5, %5 : vector<16x256xf32>
    %cst_11 = arith.constant dense<0.000000e+00> : vector<256xf32>
    %13 = vector.multi_reduction <add>, %12, %cst_11 [0] : vector<16x256xf32> to vector<256xf32>
    %14 = vector.shape_cast %13 : vector<256xf32> to vector<1x256xf32>
    %c0_12 = arith.constant 0 : index
    %c1 = arith.constant 1 : index
    %c0_13 = arith.constant 0 : index
    %15 = vector.load %arg5[%c0_12, %c1, %c0_13] : memref<1x2x256xf32, #tpu.memory_space<vmem>>, vector<1x1x256xf32>
    %16 = vector.shape_cast %15 : vector<1x1x256xf32> to vector<1x256xf32>
    %17 = vector.shape_cast %14 : vector<1x256xf32> to vector<1x1x256xf32>
    tpu.vector_store %arg5[%c0_12, %c1, %c0_13], %17 {strides = array<i32>} : memref<1x2x256xf32, #tpu.memory_space<vmem>>, vector<1x1x256xf32>,
    return
  }
  func.func @transform_0(%arg0: i32) -> (i32, i32) {
    %c0_i32 = arith.constant 0 : i32
    %c0_i32_0 = arith.constant 0 : i32
    return %arg0, %c0_i32 : i32, i32
  }
  func.func @transform_1(%arg0: i32) -> (i32, i32) {
    %c0_i32 = arith.constant 0 : i32
    %c0_i32_0 = arith.constant 0 : i32
    %c0_i32_1 = arith.constant 0 : i32
    return %c0_i32, %c0_i32_0 : i32, i32
  }
  func.func @transform_2(%arg0: i32) -> (i32, i32) {
    %c0_i32 = arith.constant 0 : i32
    %c0_i32_0 = arith.constant 0 : i32
    %c0_i32_1 = arith.constant 0 : i32
    return %c0_i32, %c0_i32_0 : i32, i32
  }
  func.func @transform_3(%arg0: i32) -> (i32, i32) {
    %c0_i32 = arith.constant 0 : i32
    %c0_i32_0 = arith.constant 0 : i32
    return %arg0, %c0_i32 : i32, i32
  }
  func.func @transform_4(%arg0: i32) -> (i32, i32, i32) {
    %c0_i32 = arith.constant 0 : i32
    %c0_i32_0 = arith.constant 0 : i32
    %c0_i32_1 = arith.constant 0 : i32
    return %arg0, %c0_i32, %c0_i32_0 : i32, i32, i32
  }
}

module attributes {stable_mosaic.version = 11 : i64} {
  func.func @_conv3x3_bn_stats_kernel(%arg0: i32, %arg1: memref<16x128xf32, #tpu.memory_space<vmem>>, %arg2: memref<1x128xf32, #tpu.memory_space<vmem>>, %arg3: memref<1x128xf32, #tpu.memory_space<vmem>>, %arg4: memref<3x128x128xf32, #tpu.memory_space<vmem>>, %arg5: memref<16x128xf32, #tpu.memory_space<vmem>>, %arg6: memref<1x2x128xf32, #tpu.memory_space<vmem>>, %arg7: memref<18x128xf32, #tpu.memory_space<vmem>>) attributes {dimension_semantics = [#tpu.dimension_semantics<parallel>], iteration_bounds = array<i64: 2>, scalar_prefetch = 0 : i64, scratch_operands = 1 : i64, tpu.core_type = #tpu.core_type<tc>, window_params = [{transform_indices = @transform_0, window_bounds = array<i64: 16, 128>}, {pipeline_mode = #tpu.pipeline_mode<synchronous>, transform_indices = @transform_1, window_bounds = array<i64: 1, 128>}, {pipeline_mode = #tpu.pipeline_mode<synchronous>, transform_indices = @transform_2, window_bounds = array<i64: 1, 128>}, {pipeline_mode = #tpu.pipeline_mode<synchronous>, transform_indices = @transform_3, window_bounds = array<i64: 3, 128, 128>}, {transform_indices = @transform_4, window_bounds = array<i64: 16, 128>}, {transform_indices = @transform_5, window_bounds = array<i64: 1, 2, 128>}]} {
    %c0 = arith.constant 0 : index
    %c0_0 = arith.constant 0 : index
    %0 = vector.load %arg1[%c0, %c0_0] : memref<16x128xf32, #tpu.memory_space<vmem>>, vector<16x128xf32>
    %c0_1 = arith.constant 0 : index
    %c0_2 = arith.constant 0 : index
    %1 = vector.load %arg2[%c0_1, %c0_2] : memref<1x128xf32, #tpu.memory_space<vmem>>, vector<1x128xf32>
    %2 = vector.broadcast %1 : vector<1x128xf32> to vector<16x128xf32>
    %3 = arith.mulf %0, %2 : vector<16x128xf32>
    %c0_3 = arith.constant 0 : index
    %c0_4 = arith.constant 0 : index
    %4 = vector.load %arg3[%c0_3, %c0_4] : memref<1x128xf32, #tpu.memory_space<vmem>>, vector<1x128xf32>
    %5 = vector.broadcast %4 : vector<1x128xf32> to vector<16x128xf32>
    %6 = arith.addf %3, %5 : vector<16x128xf32>
    %cst = arith.constant 0.000000e+00 : f32
    %7 = vector.broadcast %cst : f32 to vector<16x128xf32>
    %8 = arith.cmpf ogt, %6, %7 : vector<16x128xf32>
    %cst_5 = arith.constant 0.00999999977 : f32
    %9 = vector.broadcast %cst_5 : f32 to vector<16x128xf32>
    %10 = arith.mulf %9, %6 : vector<16x128xf32>
    %11 = arith.select %8, %6, %10 : vector<16x128xi1>, vector<16x128xf32>
    %cst_6 = arith.constant 0.000000e+00 : f32
    %12 = vector.broadcast %cst_6 : f32 to vector<1x128xf32>
    %c0_7 = arith.constant 0 : index
    %c0_8 = arith.constant 0 : index
    %13 = vector.load %arg7[%c0_7, %c0_8] : memref<18x128xf32, #tpu.memory_space<vmem>>, vector<1x128xf32>
    tpu.vector_store %arg7[%c0_7, %c0_8], %12 {strides = array<i32>} : memref<18x128xf32, #tpu.memory_space<vmem>>, vector<1x128xf32>,
    %c1 = arith.constant 1 : index
    %c0_9 = arith.constant 0 : index
    %14 = vector.load %arg7[%c1, %c0_9] : memref<18x128xf32, #tpu.memory_space<vmem>>, vector<16x128xf32>
    tpu.vector_store %arg7[%c1, %c0_9], %11 {strides = array<i32>} : memref<18x128xf32, #tpu.memory_space<vmem>>, vector<16x128xf32>,
    %c17 = arith.constant 17 : index
    %c0_10 = arith.constant 0 : index
    %15 = vector.load %arg7[%c17, %c0_10] : memref<18x128xf32, #tpu.memory_space<vmem>>, vector<1x128xf32>
    tpu.vector_store %arg7[%c17, %c0_10], %12 {strides = array<i32>} : memref<18x128xf32, #tpu.memory_space<vmem>>, vector<1x128xf32>,
    %cst_11 = arith.constant 0.000000e+00 : f32
    %16 = vector.broadcast %cst_11 : f32 to vector<16x128xf32>
    %c0_12 = arith.constant 0 : index
    %c0_13 = arith.constant 0 : index
    %17 = vector.load %arg7[%c0_12, %c0_13] : memref<18x128xf32, #tpu.memory_space<vmem>>, vector<16x128xf32>
    %c0_14 = arith.constant 0 : index
    %c0_15 = arith.constant 0 : index
    %c0_16 = arith.constant 0 : index
    %18 = vector.load %arg4[%c0_14, %c0_15, %c0_16] : memref<3x128x128xf32, #tpu.memory_space<vmem>>, vector<1x128x128xf32>
    %19 = vector.shape_cast %18 : vector<1x128x128xf32> to vector<128x128xf32>
    %cst_17 = arith.constant dense<0.000000e+00> : vector<16x128xf32>
    %20 = tpu.matmul %17, %19, %cst_17 {dimension_numbers = #tpu.dot_dimension_numbers<[1], [0], [0], [1], [0, 0, 1, 1], [], []>, precision = #tpu.contract_precision<fp32>} : vector<16x128xf32>, vector<128x128xf32>, vector<16x128xf32> -> vector<16x128xf32>
    %21 = arith.addf %16, %20 : vector<16x128xf32>
    %c1_18 = arith.constant 1 : index
    %c0_19 = arith.constant 0 : index
    %22 = vector.load %arg7[%c1_18, %c0_19] : memref<18x128xf32, #tpu.memory_space<vmem>>, vector<16x128xf32>
    %c1_20 = arith.constant 1 : index
    %c0_21 = arith.constant 0 : index
    %c0_22 = arith.constant 0 : index
    %23 = vector.load %arg4[%c1_20, %c0_21, %c0_22] : memref<3x128x128xf32, #tpu.memory_space<vmem>>, vector<1x128x128xf32>
    %24 = vector.shape_cast %23 : vector<1x128x128xf32> to vector<128x128xf32>
    %cst_23 = arith.constant dense<0.000000e+00> : vector<16x128xf32>
    %25 = tpu.matmul %22, %24, %cst_23 {dimension_numbers = #tpu.dot_dimension_numbers<[1], [0], [0], [1], [0, 0, 1, 1], [], []>, precision = #tpu.contract_precision<fp32>} : vector<16x128xf32>, vector<128x128xf32>, vector<16x128xf32> -> vector<16x128xf32>
    %26 = arith.addf %21, %25 : vector<16x128xf32>
    %c2 = arith.constant 2 : index
    %c0_24 = arith.constant 0 : index
    %27 = vector.load %arg7[%c2, %c0_24] : memref<18x128xf32, #tpu.memory_space<vmem>>, vector<16x128xf32>
    %c2_25 = arith.constant 2 : index
    %c0_26 = arith.constant 0 : index
    %c0_27 = arith.constant 0 : index
    %28 = vector.load %arg4[%c2_25, %c0_26, %c0_27] : memref<3x128x128xf32, #tpu.memory_space<vmem>>, vector<1x128x128xf32>
    %29 = vector.shape_cast %28 : vector<1x128x128xf32> to vector<128x128xf32>
    %cst_28 = arith.constant dense<0.000000e+00> : vector<16x128xf32>
    %30 = tpu.matmul %27, %29, %cst_28 {dimension_numbers = #tpu.dot_dimension_numbers<[1], [0], [0], [1], [0, 0, 1, 1], [], []>, precision = #tpu.contract_precision<fp32>} : vector<16x128xf32>, vector<128x128xf32>, vector<16x128xf32> -> vector<16x128xf32>
    %31 = arith.addf %26, %30 : vector<16x128xf32>
    %c0_29 = arith.constant 0 : index
    %c0_30 = arith.constant 0 : index
    %32 = vector.load %arg5[%c0_29, %c0_30] : memref<16x128xf32, #tpu.memory_space<vmem>>, vector<16x128xf32>
    tpu.vector_store %arg5[%c0_29, %c0_30], %31 {strides = array<i32>} : memref<16x128xf32, #tpu.memory_space<vmem>>, vector<16x128xf32>,
    %cst_31 = arith.constant dense<0.000000e+00> : vector<128xf32>
    %33 = vector.multi_reduction <add>, %31, %cst_31 [0] : vector<16x128xf32> to vector<128xf32>
    %34 = vector.shape_cast %33 : vector<128xf32> to vector<1x128xf32>
    %c0_32 = arith.constant 0 : index
    %c0_33 = arith.constant 0 : index
    %c0_34 = arith.constant 0 : index
    %35 = vector.load %arg6[%c0_32, %c0_33, %c0_34] : memref<1x2x128xf32, #tpu.memory_space<vmem>>, vector<1x1x128xf32>
    %36 = vector.shape_cast %35 : vector<1x1x128xf32> to vector<1x128xf32>
    %37 = vector.shape_cast %34 : vector<1x128xf32> to vector<1x1x128xf32>
    tpu.vector_store %arg6[%c0_32, %c0_33, %c0_34], %37 {strides = array<i32>} : memref<1x2x128xf32, #tpu.memory_space<vmem>>, vector<1x1x128xf32>,
    %38 = arith.mulf %31, %31 : vector<16x128xf32>
    %cst_35 = arith.constant dense<0.000000e+00> : vector<128xf32>
    %39 = vector.multi_reduction <add>, %38, %cst_35 [0] : vector<16x128xf32> to vector<128xf32>
    %40 = vector.shape_cast %39 : vector<128xf32> to vector<1x128xf32>
    %c0_36 = arith.constant 0 : index
    %c1_37 = arith.constant 1 : index
    %c0_38 = arith.constant 0 : index
    %41 = vector.load %arg6[%c0_36, %c1_37, %c0_38] : memref<1x2x128xf32, #tpu.memory_space<vmem>>, vector<1x1x128xf32>
    %42 = vector.shape_cast %41 : vector<1x1x128xf32> to vector<1x128xf32>
    %43 = vector.shape_cast %40 : vector<1x128xf32> to vector<1x1x128xf32>
    tpu.vector_store %arg6[%c0_36, %c1_37, %c0_38], %43 {strides = array<i32>} : memref<1x2x128xf32, #tpu.memory_space<vmem>>, vector<1x1x128xf32>,
    return
  }
  func.func @transform_0(%arg0: i32) -> (i32, i32) {
    %c0_i32 = arith.constant 0 : i32
    %c0_i32_0 = arith.constant 0 : i32
    return %arg0, %c0_i32 : i32, i32
  }
  func.func @transform_1(%arg0: i32) -> (i32, i32) {
    %c0_i32 = arith.constant 0 : i32
    %c0_i32_0 = arith.constant 0 : i32
    %c0_i32_1 = arith.constant 0 : i32
    return %c0_i32, %c0_i32_0 : i32, i32
  }
  func.func @transform_2(%arg0: i32) -> (i32, i32) {
    %c0_i32 = arith.constant 0 : i32
    %c0_i32_0 = arith.constant 0 : i32
    %c0_i32_1 = arith.constant 0 : i32
    return %c0_i32, %c0_i32_0 : i32, i32
  }
  func.func @transform_3(%arg0: i32) -> (i32, i32, i32) {
    %c0_i32 = arith.constant 0 : i32
    %c0_i32_0 = arith.constant 0 : i32
    %c0_i32_1 = arith.constant 0 : i32
    %c0_i32_2 = arith.constant 0 : i32
    return %c0_i32, %c0_i32_0, %c0_i32_1 : i32, i32, i32
  }
  func.func @transform_4(%arg0: i32) -> (i32, i32) {
    %c0_i32 = arith.constant 0 : i32
    %c0_i32_0 = arith.constant 0 : i32
    return %arg0, %c0_i32 : i32, i32
  }
  func.func @transform_5(%arg0: i32) -> (i32, i32, i32) {
    %c0_i32 = arith.constant 0 : i32
    %c0_i32_0 = arith.constant 0 : i32
    %c0_i32_1 = arith.constant 0 : i32
    return %arg0, %c0_i32, %c0_i32_0 : i32, i32, i32
  }
}

module attributes {stable_mosaic.version = 11 : i64} {
  func.func @_conv3x3_residual_kernel(%arg0: i32, %arg1: memref<16x128xf32, #tpu.memory_space<vmem>>, %arg2: memref<1x128xf32, #tpu.memory_space<vmem>>, %arg3: memref<1x128xf32, #tpu.memory_space<vmem>>, %arg4: memref<3x128x128xf32, #tpu.memory_space<vmem>>, %arg5: memref<16x128xf32, #tpu.memory_space<vmem>>, %arg6: memref<16x128xf32, #tpu.memory_space<vmem>>, %arg7: memref<18x128xf32, #tpu.memory_space<vmem>>) attributes {dimension_semantics = [#tpu.dimension_semantics<parallel>], iteration_bounds = array<i64: 2>, scalar_prefetch = 0 : i64, scratch_operands = 1 : i64, tpu.core_type = #tpu.core_type<tc>, window_params = [{transform_indices = @transform_0, window_bounds = array<i64: 16, 128>}, {pipeline_mode = #tpu.pipeline_mode<synchronous>, transform_indices = @transform_1, window_bounds = array<i64: 1, 128>}, {pipeline_mode = #tpu.pipeline_mode<synchronous>, transform_indices = @transform_2, window_bounds = array<i64: 1, 128>}, {pipeline_mode = #tpu.pipeline_mode<synchronous>, transform_indices = @transform_3, window_bounds = array<i64: 3, 128, 128>}, {transform_indices = @transform_4, window_bounds = array<i64: 16, 128>}, {transform_indices = @transform_5, window_bounds = array<i64: 16, 128>}]} {
    %c0 = arith.constant 0 : index
    %c0_0 = arith.constant 0 : index
    %0 = vector.load %arg1[%c0, %c0_0] : memref<16x128xf32, #tpu.memory_space<vmem>>, vector<16x128xf32>
    %c0_1 = arith.constant 0 : index
    %c0_2 = arith.constant 0 : index
    %1 = vector.load %arg2[%c0_1, %c0_2] : memref<1x128xf32, #tpu.memory_space<vmem>>, vector<1x128xf32>
    %2 = vector.broadcast %1 : vector<1x128xf32> to vector<16x128xf32>
    %3 = arith.mulf %0, %2 : vector<16x128xf32>
    %c0_3 = arith.constant 0 : index
    %c0_4 = arith.constant 0 : index
    %4 = vector.load %arg3[%c0_3, %c0_4] : memref<1x128xf32, #tpu.memory_space<vmem>>, vector<1x128xf32>
    %5 = vector.broadcast %4 : vector<1x128xf32> to vector<16x128xf32>
    %6 = arith.addf %3, %5 : vector<16x128xf32>
    %cst = arith.constant 0.000000e+00 : f32
    %7 = vector.broadcast %cst : f32 to vector<16x128xf32>
    %8 = arith.cmpf ogt, %6, %7 : vector<16x128xf32>
    %cst_5 = arith.constant 0.00999999977 : f32
    %9 = vector.broadcast %cst_5 : f32 to vector<16x128xf32>
    %10 = arith.mulf %9, %6 : vector<16x128xf32>
    %11 = arith.select %8, %6, %10 : vector<16x128xi1>, vector<16x128xf32>
    %cst_6 = arith.constant 0.000000e+00 : f32
    %12 = vector.broadcast %cst_6 : f32 to vector<1x128xf32>
    %c0_7 = arith.constant 0 : index
    %c0_8 = arith.constant 0 : index
    %13 = vector.load %arg7[%c0_7, %c0_8] : memref<18x128xf32, #tpu.memory_space<vmem>>, vector<1x128xf32>
    tpu.vector_store %arg7[%c0_7, %c0_8], %12 {strides = array<i32>} : memref<18x128xf32, #tpu.memory_space<vmem>>, vector<1x128xf32>,
    %c1 = arith.constant 1 : index
    %c0_9 = arith.constant 0 : index
    %14 = vector.load %arg7[%c1, %c0_9] : memref<18x128xf32, #tpu.memory_space<vmem>>, vector<16x128xf32>
    tpu.vector_store %arg7[%c1, %c0_9], %11 {strides = array<i32>} : memref<18x128xf32, #tpu.memory_space<vmem>>, vector<16x128xf32>,
    %c17 = arith.constant 17 : index
    %c0_10 = arith.constant 0 : index
    %15 = vector.load %arg7[%c17, %c0_10] : memref<18x128xf32, #tpu.memory_space<vmem>>, vector<1x128xf32>
    tpu.vector_store %arg7[%c17, %c0_10], %12 {strides = array<i32>} : memref<18x128xf32, #tpu.memory_space<vmem>>, vector<1x128xf32>,
    %cst_11 = arith.constant 0.000000e+00 : f32
    %16 = vector.broadcast %cst_11 : f32 to vector<16x128xf32>
    %c0_12 = arith.constant 0 : index
    %c0_13 = arith.constant 0 : index
    %17 = vector.load %arg7[%c0_12, %c0_13] : memref<18x128xf32, #tpu.memory_space<vmem>>, vector<16x128xf32>
    %c0_14 = arith.constant 0 : index
    %c0_15 = arith.constant 0 : index
    %c0_16 = arith.constant 0 : index
    %18 = vector.load %arg4[%c0_14, %c0_15, %c0_16] : memref<3x128x128xf32, #tpu.memory_space<vmem>>, vector<1x128x128xf32>
    %19 = vector.shape_cast %18 : vector<1x128x128xf32> to vector<128x128xf32>
    %cst_17 = arith.constant dense<0.000000e+00> : vector<16x128xf32>
    %20 = tpu.matmul %17, %19, %cst_17 {dimension_numbers = #tpu.dot_dimension_numbers<[1], [0], [0], [1], [0, 0, 1, 1], [], []>, precision = #tpu.contract_precision<fp32>} : vector<16x128xf32>, vector<128x128xf32>, vector<16x128xf32> -> vector<16x128xf32>
    %21 = arith.addf %16, %20 : vector<16x128xf32>
    %c1_18 = arith.constant 1 : index
    %c0_19 = arith.constant 0 : index
    %22 = vector.load %arg7[%c1_18, %c0_19] : memref<18x128xf32, #tpu.memory_space<vmem>>, vector<16x128xf32>
    %c1_20 = arith.constant 1 : index
    %c0_21 = arith.constant 0 : index
    %c0_22 = arith.constant 0 : index
    %23 = vector.load %arg4[%c1_20, %c0_21, %c0_22] : memref<3x128x128xf32, #tpu.memory_space<vmem>>, vector<1x128x128xf32>
    %24 = vector.shape_cast %23 : vector<1x128x128xf32> to vector<128x128xf32>
    %cst_23 = arith.constant dense<0.000000e+00> : vector<16x128xf32>
    %25 = tpu.matmul %22, %24, %cst_23 {dimension_numbers = #tpu.dot_dimension_numbers<[1], [0], [0], [1], [0, 0, 1, 1], [], []>, precision = #tpu.contract_precision<fp32>} : vector<16x128xf32>, vector<128x128xf32>, vector<16x128xf32> -> vector<16x128xf32>
    %26 = arith.addf %21, %25 : vector<16x128xf32>
    %c2 = arith.constant 2 : index
    %c0_24 = arith.constant 0 : index
    %27 = vector.load %arg7[%c2, %c0_24] : memref<18x128xf32, #tpu.memory_space<vmem>>, vector<16x128xf32>
    %c2_25 = arith.constant 2 : index
    %c0_26 = arith.constant 0 : index
    %c0_27 = arith.constant 0 : index
    %28 = vector.load %arg4[%c2_25, %c0_26, %c0_27] : memref<3x128x128xf32, #tpu.memory_space<vmem>>, vector<1x128x128xf32>
    %29 = vector.shape_cast %28 : vector<1x128x128xf32> to vector<128x128xf32>
    %cst_28 = arith.constant dense<0.000000e+00> : vector<16x128xf32>
    %30 = tpu.matmul %27, %29, %cst_28 {dimension_numbers = #tpu.dot_dimension_numbers<[1], [0], [0], [1], [0, 0, 1, 1], [], []>, precision = #tpu.contract_precision<fp32>} : vector<16x128xf32>, vector<128x128xf32>, vector<16x128xf32> -> vector<16x128xf32>
    %31 = arith.addf %26, %30 : vector<16x128xf32>
    %c0_29 = arith.constant 0 : index
    %c0_30 = arith.constant 0 : index
    %32 = vector.load %arg5[%c0_29, %c0_30] : memref<16x128xf32, #tpu.memory_space<vmem>>, vector<16x128xf32>
    %33 = arith.addf %31, %32 : vector<16x128xf32>
    %c0_31 = arith.constant 0 : index
    %c0_32 = arith.constant 0 : index
    %34 = vector.load %arg6[%c0_31, %c0_32] : memref<16x128xf32, #tpu.memory_space<vmem>>, vector<16x128xf32>
    tpu.vector_store %arg6[%c0_31, %c0_32], %33 {strides = array<i32>} : memref<16x128xf32, #tpu.memory_space<vmem>>, vector<16x128xf32>,
    return
  }
  func.func @transform_0(%arg0: i32) -> (i32, i32) {
    %c0_i32 = arith.constant 0 : i32
    %c0_i32_0 = arith.constant 0 : i32
    return %arg0, %c0_i32 : i32, i32
  }
  func.func @transform_1(%arg0: i32) -> (i32, i32) {
    %c0_i32 = arith.constant 0 : i32
    %c0_i32_0 = arith.constant 0 : i32
    %c0_i32_1 = arith.constant 0 : i32
    return %c0_i32, %c0_i32_0 : i32, i32
  }
  func.func @transform_2(%arg0: i32) -> (i32, i32) {
    %c0_i32 = arith.constant 0 : i32
    %c0_i32_0 = arith.constant 0 : i32
    %c0_i32_1 = arith.constant 0 : i32
    return %c0_i32, %c0_i32_0 : i32, i32
  }
  func.func @transform_3(%arg0: i32) -> (i32, i32, i32) {
    %c0_i32 = arith.constant 0 : i32
    %c0_i32_0 = arith.constant 0 : i32
    %c0_i32_1 = arith.constant 0 : i32
    %c0_i32_2 = arith.constant 0 : i32
    return %c0_i32, %c0_i32_0, %c0_i32_1 : i32, i32, i32
  }
  func.func @transform_4(%arg0: i32) -> (i32, i32) {
    %c0_i32 = arith.constant 0 : i32
    %c0_i32_0 = arith.constant 0 : i32
    return %arg0, %c0_i32 : i32, i32
  }
  func.func @transform_5(%arg0: i32) -> (i32, i32) {
    %c0_i32 = arith.constant 0 : i32
    %c0_i32_0 = arith.constant 0 : i32
    return %arg0, %c0_i32 : i32, i32
  }
}

</mosaic_0001>

<bundles_post_ra>
// kernel: tile.28
= control target key start
LH: loop header
LB: loop body
LE: loop exit
PB: predicated region body
PF: predicated region fallthrough
CT: control target
= control target key end

     0   :  { %s40_s0 = inlined_call_operand.vmem [shape: f32[8], index: 0, kind: input, shape index: {}]   ;;  %s41_s1 = inlined_call_operand.vmem [shape: f32[32,8], index: 1, kind: output, shape index: {}]  }
   0x1   :  { %v4_v0 = vld [vmem:[%s40_s0] ss:$0 sm:$0xff] }
   0x2   :  { %5 = vst [vmem:[%s41_s1] sm:$0xff] %v4_v0  ;;  %12 = vst [vmem:[%s41_s1 + $0x8] sm:$0xff] %v4_v0 }
   0x3   :  { %13 = vst [vmem:[%s41_s1 + $0x10] sm:$0xff] %v4_v0  ;;  %14 = vst [vmem:[%s41_s1 + $0x18] sm:$0xff] %v4_v0 }

// kernel: tile.29
= control target key start
LH: loop header
LB: loop body
LE: loop exit
PB: predicated region body
PF: predicated region fallthrough
CT: control target
= control target key end

     0   :  { %s8_s6 = smov 3  ;;  %s22_s9 = smov 3  ;;  %s274_s0 = inlined_call_operand.vmem [shape: f32[32,8], index: 0, kind: input, shape index: {}]   ;;  %s275_s1 = inlined_call_operand.hbm [shape: f32[1,256], index: 1, kind: output, shape index: {}]  }
   0x1   :  { %v133_v0 = vld [vmem:[%s274_s0 + $0xf] ss:$16 sm:%s8_s6]   ;;  %s188_s10 = smov 120   ;;  %v135_v1 = vld [vmem:[%s274_s0 + $0xd] ss:$16 sm:%s22_s9]   ;;  %s15_s13 = smov 3 }
   0x2   :  { %10 = vrot.lane.b32.xlu0 %v133_v0, %s188_s10  ;;  %s189_s14 = smov 104   ;;  %v134_v2 = vld [vmem:[%s274_s0 + $0xe] ss:$16 sm:%s15_s13]   ;;  %s29_s17 = smov 3 }
   0x3   :  { %24 = vrot.lane.b32.xlu1 %v135_v1, %s189_s14  ;;  %v136_v3 = vld [vmem:[%s274_s0 + $0xc] ss:$16 sm:%s29_s17]   ;;  %s36_s20 = smov 3 }
   0x4   :  { %2 = vsyncpa [#allocation1], 0  ;;  %s43_s21 = smov 3  ;;  %s190_s22 = smov 112   ;;  %v137_v4 = vld [vmem:[%s274_s0 + $0xb] ss:$16 sm:%s36_s20]  }
   0x5   :  { %s191_s23 = smov 96   ;;  %v138_v5 = vld [vmem:[%s274_s0 + $0xa] ss:$16 sm:%s43_s21]   ;;  %s50_s28 = smov 3  ;;  %vm5_vm0 = vcmask 64512   ;;  %vm12_vm1 = vcmask 1048512  }
   0x6   :  { %17 = vrot.lane.b32.xlu0 %v134_v2, %s190_s22  ;;  %s57_s29 = smov 3  ;;  %s192_s30 = smov 88   ;;  %v139_v6 = vld [vmem:[%s274_s0 + $0x9] ss:$16 sm:%s50_s28]   ;;  %vm19_vm2 = vcmask 982912   ;;  %vm26_vm3 = vcmask 917312  }
   0x7   :  { %31 = vrot.lane.b32.xlu1 %v136_v3, %s191_s23  ;;  %s193_s2 = smov 80   ;;  %v140_v7 = vld [vmem:[%s274_s0 + $0x8] ss:$16 sm:%s57_s29]   ;;  %s64_s7 = smov 3  ;;  %vm33_vm4 = vcmask 851712   ;;  %vm40_vm5 = vcmask 786112  }
   0x8   :  { %s71_s8 = smov 3  ;;  %s194_s9 = smov 72   ;;  %v141_v8 = vld [vmem:[%s274_s0 + $0x7] ss:$16 sm:%s64_s7]   ;;  %vm47_vm6 = vcmask 720512   ;;  %vm54_vm7 = vcmask 654912  }
   0x9   :  { %s195_s10 = smov 64   ;;  %s3_s13 = smov 3  ;;  %v142_v9 = vld [vmem:[%s274_s0 + $0x6] ss:$16 sm:%s71_s8]   ;;  %vm61_vm8 = vcmask 589312   ;;  %vm68_vm9 = vcmask 523712  }
   0xa   :  { %38 = vrot.lane.b32.xlu0 %v137_v4, %s192_s30  ;;  %s78_s16 = smov 3  ;;  %v4_v10 = vld [vmem:[%s274_s0] ss:$16 sm:%s3_s13]   ;;  %s85_s19 = smov 3  ;;  %vm75_vm10 = vcmask 458112   ;;  %vm82_vm11 = vcmask 392512  }
   0xb   :  { %45 = vrot.lane.b32.xlu1 %v138_v5, %s193_s2  ;;  %6 = vst.msk [vmem:[#allocation2] ss:$8 sm:$0x3] %vm5_vm0, %v4_v10   ;;  %s196_s20 = smov 56   ;;  %s197_s21 = smov 48   ;;  %vm89_vm12 = vcmask 326912  }
   0xc   :  { %v143_v11 = vld [vmem:[%s274_s0 + $0x5] ss:$16 sm:%s78_s16]   ;;  %v144_v12 = vld [vmem:[%s274_s0 + $0x4] ss:$16 sm:%s85_s19]   ;;  %s92_s26 = smov 3  ;;  %s99_s27 = smov 3 }
   0xd   :  { %s198_s28 = smov 40   ;;  %s199_s29 = smov 32   ;;  %v145_v13 = vld [vmem:[%s274_s0 + $0x3] ss:$16 sm:%s92_s26]   ;;  %v146_v14 = vld [vmem:[%s274_s0 + $0x2] ss:$16 sm:%s99_s27]  }
   0xe   :  { %52 = vrot.lane.b32.xlu0 %v139_v6, %s194_s9  ;;  %s106_s5 = smov 3  ;;  %s200_s6 = smov 24   ;;  %vm96_vm13 = vcmask 261312   ;;  %vm103_vm14 = vcmask 195712   ;;  %vm110_vm15 = vcmask 130112  }
   0xf   :  { %59 = vrot.lane.b32.xlu1 %v140_v7, %s195_s10  ;;  %s201_s7 = smov 16   ;;  %v147_v15 = vld [vmem:[%s274_s0 + $0x1] ss:$16 sm:%s106_s5]   ;;  %s202_s0 = smov 8  }
  0x10   :  { %s203_s10 = smov [#allocation0]  }
  0x11   :  { %s127_s11 = sshll.u32 %s203_s10, 4  ;;  %s128_s11 = int_to_ptr.vmem [resolvable:$true] %s127_s11 }
  0x12   :  { %66 = vrot.lane.b32.xlu0 %v141_v8, %s196_s20  ;;  %s164_s12 = scalar_lea.vmem %s128_s11, 32  ;;  %p169_p1 = scmp.lt.s32.totalorder %s128_s11, %s128_s11 }
  0x13   :  { %73 = vrot.lane.b32.xlu1 %v142_v9, %s197_s21  ;;  %p165_p0 = scmp.ne.s32.totalorder %s128_s11, %s164_s12  ;;  %p170_p2 = scmp.lt.s32.totalorder %s164_s12, %s164_s12 }
  0x15   :  { %p171_p3 = por %p170_p2, %p169_p1 }
  0x16   :  { %80 = vrot.lane.b32.xlu0 %v143_v11, %s198_s28 }
  0x17   :  { %87 = vrot.lane.b32.xlu1 %v144_v12, %s199_s29  ;;  %p172_p4 = pnand %p171_p3, %p165_p0 }
  0x1a   :  { %94 = vrot.lane.b32.xlu0 %v145_v13, %s200_s6 }
  0x1b   :  { %101 = vrot.lane.b32.xlu1 %v146_v14, %s201_s7 }
  0x1e   :  { %108 = vrot.lane.b32.xlu0 %v147_v15, %s202_s0 }
  0x74   :  { %v11_v16 = vpop.permute.xlu0 %10  }
  0x75   :  { %13 = vst.msk [vmem:[#allocation2] ss:$8 sm:$0x3] %vm12_vm1, %v11_v16   ;;  %v25_v17 = vpop.permute.xlu1 %24  }
  0x78   :  { %v18_v18 = vpop.permute.xlu0 %17  }
  0x79   :  { %20 = vst.msk [vmem:[#allocation2] ss:$8 sm:$0x3] %vm19_vm2, %v18_v18   ;;  %v32_v19 = vpop.permute.xlu1 %31  }
  0x7a   :  { %27 = vst.msk [vmem:[#allocation2] ss:$8 sm:$0x3] %vm26_vm3, %v25_v17  }
  0x7b   :  { %34 = vst.msk [vmem:[#allocation2] ss:$8 sm:$0x3] %vm33_vm4, %v32_v19  }
  0x7c   :  { %v39_v20 = vpop.permute.xlu0 %38  }
  0x7d   :  { %41 = vst.msk [vmem:[#allocation2] ss:$8 sm:$0x3] %vm40_vm5, %v39_v20   ;;  %v46_v21 = vpop.permute.xlu1 %45  }
  0x7e   :  { %48 = vst.msk [vmem:[#allocation2] ss:$8 sm:$0x3] %vm47_vm6, %v46_v21  }
  0x80   :  { %v53_v22 = vpop.permute.xlu0 %52  }
  0x81   :  { %55 = vst.msk [vmem:[#allocation2] ss:$8 sm:$0x3] %vm54_vm7, %v53_v22   ;;  %v60_v23 = vpop.permute.xlu1 %59  }
  0x82   :  { %62 = vst.msk [vmem:[#allocation2] ss:$8 sm:$0x3] %vm61_vm8, %v60_v23  }
  0x84   :  { %v67_v24 = vpop.permute.xlu0 %66  }
  0x85   :  { %69 = vst.msk [vmem:[#allocation2] ss:$8 sm:$0x3] %vm68_vm9, %v67_v24   ;;  %v74_v25 = vpop.permute.xlu1 %73  }
  0x86   :  { %76 = vst.msk [vmem:[#allocation2] ss:$8 sm:$0x3] %vm75_vm10, %v74_v25  }
  0x88   :  { %v81_v26 = vpop.permute.xlu0 %80  }
  0x89   :  { %83 = vst.msk [vmem:[#allocation2] ss:$8 sm:$0x3] %vm82_vm11, %v81_v26   ;;  %v88_v27 = vpop.permute.xlu1 %87  }
  0x8a   :  { %90 = vst.msk [vmem:[#allocation2] ss:$8 sm:$0x3] %vm89_vm12, %v88_v27  }
  0x8c   :  { %v95_v28 = vpop.permute.xlu0 %94  }
  0x8d   :  { %97 = vst.msk [vmem:[#allocation2] ss:$8 sm:$0x3] %vm96_vm13, %v95_v28   ;;  %v102_v29 = vpop.permute.xlu1 %101  }
  0x8e   :  { %104 = vst.msk [vmem:[#allocation2] ss:$8 sm:$0x3] %vm103_vm14, %v102_v29  }
  0x90   :  { %v109_v30 = vpop.permute.xlu0 %108  }
  0x91   :  { %111 = vst.msk [vmem:[#allocation2] ss:$8 sm:$0x3] %vm110_vm15, %v109_v30  }
  0x98   :  { %v115_v31 = vld [vmem:[#allocation2] sm:$0x1]  ;;  %v119_v32 = vld [vmem:[#allocation2 + $0x8] sm:$0x1] }
  0x99   :  { %117 = vst [vmem:[#allocation0] sm:$0x1] %v115_v31  ;;  %122 = vst [vmem:[#allocation0 + $0x1] sm:$0x1] %v119_v32 }
  0x9a   :  { %175 = shalt.err (!%p172_p4)
}
  0x9b   :  { %s176_s15 = scalar_lea.hbm %s275_s1, 32 }
  0x9c   :  { %p177_p5 = scmp.ne.s32.totalorder %s275_s1, %s176_s15  ;;  %p180_p6 = scmp.lt.u32.totalorder %s176_s15, %s275_s1 }
  0x9e   :  { %p182_p7 = pnand %p180_p6, %p177_p5 }
  0xa0   :  { %185 = shalt.err (!%p182_p7)
}
  0xa1   :  { %130 = dma.vmem_to_hbm [thread:$0]  %s128_s11, 32, %s275_s1, [#allocation1]  }
  0xa2   :  { %186 = dma.done.wait [#allocation1], 32  }
  0xa3   :  { %187 = vsyncadd [#allocation1], 4294967264 }
  0xa4   :  { %132 = vsyncpa [#allocation1], 1 }

// kernel: squeeze.40
= control target key start
LH: loop header
LB: loop body
LE: loop exit
PB: predicated region body
PF: predicated region fallthrough
CT: control target
= control target key end

     0   :  { %s130_s8 = smov 104   ;;  %s131_s9 = smov 112   ;;  %vm7_vm0 = vcmask 64512   ;;  %s221_s0 = inlined_call_operand.vmem [shape: f32[256], index: 0, kind: input, shape index: {}]   ;;  %s222_s1 = inlined_call_operand.vmem [shape: f32[32,8], index: 1, kind: output, shape index: {}]  }
   0x1   :  { %v4_v0 = vld [vmem:[%s221_s0] sm:$0x3]  ;;  %s129_s0 = smov 120   ;;  %s132_s10 = smov 96  }
   0x2   :  { %5 = vst [vmem:[#allocation0] sm:$0x3] %v4_v0  ;;  %s133_s11 = smov 88   ;;  %s134_s12 = smov 80  }
   0x3   :  { %s135_s13 = smov 72   ;;  %s136_s14 = smov 64  }
   0x4   :  { %s137_s17 = smov 56   ;;  %s138_s18 = smov 48  }
   0x5   :  { %s139_s19 = smov 40   ;;  %s140_s20 = smov 32  }
   0x6   :  { %s141_s21 = smov 24   ;;  %s142_s22 = smov 16  }
   0x7   :  { %s143_s23 = smov 8  }
   0x9   :  { %v9_v1 = vld [vmem:[#allocation0] sm:$0x3]  }
   0xa   :  { %v21_v2 = vld [vmem:[#allocation0] sm:$0x3]   ;;  %10 = vrot.lane.b32.xlu0 %v9_v1, %s129_s0 }
   0xb   :  { %22 = vrot.lane.b32.xlu1 %v21_v2, %s130_s8  ;;  %v15_v3 = vld [vmem:[#allocation0] sm:$0x3]  }
   0xc   :  { %v27_v4 = vld [vmem:[#allocation0] sm:$0x3]  }
   0xd   :  { %v33_v5 = vld [vmem:[#allocation0] sm:$0x3]  }
   0xe   :  { %16 = vrot.lane.b32.xlu0 %v15_v3, %s131_s9  ;;  %v39_v6 = vld [vmem:[#allocation0] sm:$0x3]  }
   0xf   :  { %28 = vrot.lane.b32.xlu1 %v27_v4, %s132_s10  ;;  %v45_v7 = vld [vmem:[#allocation0] sm:$0x3]  }
  0x10   :  { %v51_v8 = vld [vmem:[#allocation0] sm:$0x3]  }
  0x11   :  { %v57_v9 = vld [vmem:[#allocation0] sm:$0x3]  }
  0x12   :  { %34 = vrot.lane.b32.xlu0 %v33_v5, %s133_s11  ;;  %v63_v10 = vld [vmem:[#allocation0] sm:$0x3]  }
  0x13   :  { %40 = vrot.lane.b32.xlu1 %v39_v6, %s134_s12  ;;  %v6_v11 = vld [vmem:[#allocation0] sm:$0x3]  }
  0x14   :  { %8 = vst.msk [vmem:[%s222_s1] ss:$16 sm:$0x3] %vm7_vm0, %v6_v11   ;;  %v69_v12 = vld [vmem:[#allocation0] sm:$0x3]  }
  0x15   :  { %v75_v13 = vld [vmem:[#allocation0] sm:$0x3]  }
  0x16   :  { %46 = vrot.lane.b32.xlu0 %v45_v7, %s135_s13  ;;  %v81_v14 = vld [vmem:[#allocation0] sm:$0x3]  }
  0x17   :  { %52 = vrot.lane.b32.xlu1 %v51_v8, %s136_s14  ;;  %v87_v15 = vld [vmem:[#allocation0] sm:$0x3]  }
  0x18   :  { %v93_v16 = vld [vmem:[#allocation0] sm:$0x3]  }
  0x1a   :  { %58 = vrot.lane.b32.xlu0 %v57_v9, %s137_s17 }
  0x1b   :  { %64 = vrot.lane.b32.xlu1 %v63_v10, %s138_s18 }
  0x1e   :  { %70 = vrot.lane.b32.xlu0 %v69_v12, %s139_s19 }
  0x1f   :  { %76 = vrot.lane.b32.xlu1 %v75_v13, %s140_s20 }
  0x22   :  { %82 = vrot.lane.b32.xlu0 %v81_v14, %s141_s21 }
  0x23   :  { %88 = vrot.lane.b32.xlu1 %v87_v15, %s142_s22 }
  0x26   :  { %94 = vrot.lane.b32.xlu0 %v93_v16, %s143_s23 }
  0x7c   :  { %v11_v17 = vpop.permute.xlu0 %10  }
  0x7d   :  { %v23_v18 = vpop.permute.xlu1 %22   ;;  %99 = vst.msk [vmem:[%s222_s1 + $0x1] ss:$16 sm:$0x3] %vm7_vm0, %v11_v17  }
  0x7e   :  { %101 = vst.msk [vmem:[%s222_s1 + $0x3] ss:$16 sm:$0x3] %vm7_vm0, %v23_v18  }
  0x80   :  { %v17_v19 = vpop.permute.xlu0 %16  }
  0x81   :  { %v29_v20 = vpop.permute.xlu1 %28   ;;  %100 = vst.msk [vmem:[%s222_s1 + $0x2] ss:$16 sm:$0x3] %vm7_vm0, %v17_v19  }
  0x82   :  { %102 = vst.msk [vmem:[%s222_s1 + $0x4] ss:$16 sm:$0x3] %vm7_vm0, %v29_v20  }
  0x84   :  { %v35_v21 = vpop.permute.xlu0 %34  }
  0x85   :  { %v41_v22 = vpop.permute.xlu1 %40   ;;  %103 = vst.msk [vmem:[%s222_s1 + $0x5] ss:$16 sm:$0x3] %vm7_vm0, %v35_v21  }
  0x86   :  { %104 = vst.msk [vmem:[%s222_s1 + $0x6] ss:$16 sm:$0x3] %vm7_vm0, %v41_v22  }
  0x88   :  { %v47_v23 = vpop.permute.xlu0 %46  }
  0x89   :  { %v53_v24 = vpop.permute.xlu1 %52   ;;  %105 = vst.msk [vmem:[%s222_s1 + $0x7] ss:$16 sm:$0x3] %vm7_vm0, %v47_v23  }
  0x8a   :  { %106 = vst.msk [vmem:[%s222_s1 + $0x8] ss:$16 sm:$0x3] %vm7_vm0, %v53_v24  }
  0x8c   :  { %v59_v25 = vpop.permute.xlu0 %58  }
  0x8d   :  { %v65_v26 = vpop.permute.xlu1 %64   ;;  %107 = vst.msk [vmem:[%s222_s1 + $0x9] ss:$16 sm:$0x3] %vm7_vm0, %v59_v25  }
  0x8e   :  { %108 = vst.msk [vmem:[%s222_s1 + $0xa] ss:$16 sm:$0x3] %vm7_vm0, %v65_v26  }
  0x90   :  { %v71_v27 = vpop.permute.xlu0 %70  }
  0x91   :  { %v77_v28 = vpop.permute.xlu1 %76   ;;  %109 = vst.msk [vmem:[%s222_s1 + $0xb] ss:$16 sm:$0x3] %vm7_vm0, %v71_v27  }
  0x92   :  { %110 = vst.msk [vmem:[%s222_s1 + $0xc] ss:$16 sm:$0x3] %vm7_vm0, %v77_v28  }
  0x94   :  { %v83_v29 = vpop.permute.xlu0 %82  }
  0x95   :  { %v89_v30 = vpop.permute.xlu1 %88   ;;  %111 = vst.msk [vmem:[%s222_s1 + $0xd] ss:$16 sm:$0x3] %vm7_vm0, %v83_v29  }
  0x96   :  { %112 = vst.msk [vmem:[%s222_s1 + $0xe] ss:$16 sm:$0x3] %vm7_vm0, %v89_v30  }
  0x98   :  { %v95_v31 = vpop.permute.xlu0 %94  }
  0x99   :  { %113 = vst.msk [vmem:[%s222_s1 + $0xf] ss:$16 sm:$0x3] %vm7_vm0, %v95_v31  }

// kernel: tile.33
= control target key start
LH: loop header
LB: loop body
LE: loop exit
PB: predicated region body
PF: predicated region fallthrough
CT: control target
= control target key end

     0   :  { %s28_s0 = inlined_call_operand.vmem [shape: f32[8], index: 0, kind: input, shape index: {}]   ;;  %s29_s1 = inlined_call_operand.vmem [shape: f32[16,8], index: 1, kind: output, shape index: {}]  }
   0x1   :  { %v4_v0 = vld [vmem:[%s28_s0] ss:$0 sm:$0xff] }
   0x2   :  { %5 = vst [vmem:[%s29_s1] sm:$0xff] %v4_v0  ;;  %8 = vst [vmem:[%s29_s1 + $0x8] sm:$0xff] %v4_v0 }

// kernel: tile.34
= control target key start
LH: loop header
LB: loop body
LE: loop exit
PB: predicated region body
PF: predicated region fallthrough
CT: control target
= control target key end

     0   :  { %s167_s10 = smov 120   ;;  %s168_s11 = smov 104   ;;  %vm4_vm0 = vcmask 64512   ;;  %s253_s0 = inlined_call_operand.vmem [shape: f32[16,8], index: 0, kind: input, shape index: {}]   ;;  %s254_s1 = inlined_call_operand.hbm [shape: f32[1,128], index: 1, kind: output, shape index: {}]  }
   0x1   :  { %v112_v0 = vld [vmem:[%s253_s0 + $0xf] sm:$0x1]   ;;  %v114_v1 = vld [vmem:[%s253_s0 + $0xd] sm:$0x1]   ;;  %v113_v2 = vld [vmem:[%s253_s0 + $0xe] sm:$0x1]  }
   0x2   :  { %8 = vrot.lane.b32.xlu0 %v112_v0, %s167_s10  ;;  %20 = vrot.lane.b32.xlu1 %v114_v1, %s168_s11  ;;  %v115_v3 = vld [vmem:[%s253_s0 + $0xc] sm:$0x1]   ;;  %s169_s16 = smov 112   ;;  %s170_s17 = smov 96   ;;  %v116_v4 = vld [vmem:[%s253_s0 + $0xb] sm:$0x1]  }
   0x3   :  { %v117_v5 = vld [vmem:[%s253_s0 + $0xa] sm:$0x1]   ;;  %v3_v6 = vld [vmem:[%s253_s0] sm:$0x1]  }
   0x6   :  { %14 = vrot.lane.b32.xlu0 %v113_v2, %s169_s16  ;;  %26 = vrot.lane.b32.xlu1 %v115_v3, %s170_s17 }
   0x7   :  { %2 = vsyncpa [#allocation1], 0  ;;  %s171_s24 = smov 88   ;;  %s172_s25 = smov 80   ;;  %5 = vst.msk [vmem:[#allocation2] sm:$0x1] %vm4_vm0, %v3_v6  }
   0x8   :  { %v118_v7 = vld [vmem:[%s253_s0 + $0x9] sm:$0x1]   ;;  %v119_v8 = vld [vmem:[%s253_s0 + $0x8] sm:$0x1]   ;;  %s173_s30 = smov 72   ;;  %s174_s2 = smov 64  }
   0x9   :  { %v120_v9 = vld [vmem:[%s253_s0 + $0x7] sm:$0x1]   ;;  %v121_v10 = vld [vmem:[%s253_s0 + $0x6] sm:$0x1]   ;;  %s175_s7 = smov 56   ;;  %s176_s8 = smov 48  }
   0xa   :  { %32 = vrot.lane.b32.xlu0 %v116_v4, %s171_s24  ;;  %38 = vrot.lane.b32.xlu1 %v117_v5, %s172_s25  ;;  %v122_v11 = vld [vmem:[%s253_s0 + $0x5] sm:$0x1]   ;;  %v123_v12 = vld [vmem:[%s253_s0 + $0x4] sm:$0x1]   ;;  %s177_s13 = smov 40   ;;  %s178_s14 = smov 32  }
   0xb   :  { %v124_v13 = vld [vmem:[%s253_s0 + $0x3] sm:$0x1]   ;;  %v125_v14 = vld [vmem:[%s253_s0 + $0x2] sm:$0x1]   ;;  %s179_s19 = smov 24   ;;  %s180_s20 = smov 16  }
   0xc   :  { %v126_v15 = vld [vmem:[%s253_s0 + $0x1] sm:$0x1]   ;;  %s181_s0 = smov 8   ;;  %vm10_vm1 = vcmask 1048512   ;;  %vm16_vm2 = vcmask 982912   ;;  %vm22_vm3 = vcmask 917312  }
   0xd   :  { %vm28_vm4 = vcmask 851712   ;;  %vm34_vm5 = vcmask 786112   ;;  %vm40_vm6 = vcmask 720512   ;;  %vm46_vm7 = vcmask 654912   ;;  %s182_s23 = smov [#allocation0]  }
   0xe   :  { %44 = vrot.lane.b32.xlu0 %v118_v7, %s173_s30  ;;  %50 = vrot.lane.b32.xlu1 %v119_v8, %s174_s2  ;;  %vm52_vm8 = vcmask 589312   ;;  %vm58_vm9 = vcmask 523712   ;;  %vm64_vm10 = vcmask 458112   ;;  %vm70_vm11 = vcmask 392512   ;;  %s106_s24 = sshll.u32 %s182_s23, 4  ;;  %s107_s24 = int_to_ptr.vmem [resolvable:$true] %s106_s24 }
   0xf   :  { %vm76_vm12 = vcmask 326912   ;;  %vm82_vm13 = vcmask 261312   ;;  %vm88_vm14 = vcmask 195712   ;;  %vm94_vm15 = vcmask 130112   ;;  %s143_s25 = scalar_lea.vmem %s107_s24, 16  ;;  %s147_s26 = scalar_lea.vmem %s107_s24, 32 }
  0x10   :  { %p144_p0 = scmp.ne.s32.totalorder %s107_s24, %s143_s25  ;;  %p148_p1 = scmp.lt.s32.totalorder %s107_s24, %s107_s24 }
  0x11   :  { %p149_p2 = scmp.lt.s32.totalorder %s147_s26, %s143_s25 }
  0x12   :  { %56 = vrot.lane.b32.xlu0 %v120_v9, %s175_s7  ;;  %62 = vrot.lane.b32.xlu1 %v121_v10, %s176_s8 }
  0x13   :  { %p150_p3 = por %p149_p2, %p148_p1 }
  0x15   :  { %p151_p4 = pnand %p150_p3, %p144_p0 }
  0x16   :  { %68 = vrot.lane.b32.xlu0 %v122_v11, %s177_s13  ;;  %74 = vrot.lane.b32.xlu1 %v123_v12, %s178_s14 }
  0x1a   :  { %80 = vrot.lane.b32.xlu0 %v124_v13, %s179_s19  ;;  %86 = vrot.lane.b32.xlu1 %v125_v14, %s180_s20 }
  0x1e   :  { %92 = vrot.lane.b32.xlu0 %v126_v15, %s181_s0 }
  0x74   :  { %v9_v16 = vpop.permute.xlu0 %8   ;;  %v21_v17 = vpop.permute.xlu1 %20  }
  0x75   :  { %11 = vst.msk [vmem:[#allocation2] sm:$0x1] %vm10_vm1, %v9_v16  }
  0x78   :  { %v15_v18 = vpop.permute.xlu0 %14   ;;  %v27_v19 = vpop.permute.xlu1 %26  }
  0x79   :  { %17 = vst.msk [vmem:[#allocation2] sm:$0x1] %vm16_vm2, %v15_v18  }
  0x7a   :  { %23 = vst.msk [vmem:[#allocation2] sm:$0x1] %vm22_vm3, %v21_v17  }
  0x7b   :  { %29 = vst.msk [vmem:[#allocation2] sm:$0x1] %vm28_vm4, %v27_v19  }
  0x7c   :  { %v33_v20 = vpop.permute.xlu0 %32   ;;  %v39_v21 = vpop.permute.xlu1 %38  }
  0x7d   :  { %35 = vst.msk [vmem:[#allocation2] sm:$0x1] %vm34_vm5, %v33_v20  }
  0x7e   :  { %41 = vst.msk [vmem:[#allocation2] sm:$0x1] %vm40_vm6, %v39_v21  }
  0x80   :  { %v45_v22 = vpop.permute.xlu0 %44   ;;  %v51_v23 = vpop.permute.xlu1 %50  }
  0x81   :  { %47 = vst.msk [vmem:[#allocation2] sm:$0x1] %vm46_vm7, %v45_v22  }
  0x82   :  { %53 = vst.msk [vmem:[#allocation2] sm:$0x1] %vm52_vm8, %v51_v23  }
  0x84   :  { %v57_v24 = vpop.permute.xlu0 %56   ;;  %v63_v25 = vpop.permute.xlu1 %62  }
  0x85   :  { %59 = vst.msk [vmem:[#allocation2] sm:$0x1] %vm58_vm9, %v57_v24  }
  0x86   :  { %65 = vst.msk [vmem:[#allocation2] sm:$0x1] %vm64_vm10, %v63_v25  }
  0x88   :  { %v69_v26 = vpop.permute.xlu0 %68   ;;  %v75_v27 = vpop.permute.xlu1 %74  }
  0x89   :  { %71 = vst.msk [vmem:[#allocation2] sm:$0x1] %vm70_vm11, %v69_v26  }
  0x8a   :  { %77 = vst.msk [vmem:[#allocation2] sm:$0x1] %vm76_vm12, %v75_v27  }
  0x8c   :  { %v81_v28 = vpop.permute.xlu0 %80   ;;  %v87_v29 = vpop.permute.xlu1 %86  }
  0x8d   :  { %83 = vst.msk [vmem:[#allocation2] sm:$0x1] %vm82_vm13, %v81_v28  }
  0x8e   :  { %89 = vst.msk [vmem:[#allocation2] sm:$0x1] %vm88_vm14, %v87_v29  }
  0x90   :  { %v93_v30 = vpop.permute.xlu0 %92  }
  0x91   :  { %95 = vst.msk [vmem:[#allocation2] sm:$0x1] %vm94_vm15, %v93_v30  }
  0x98   :  { %v99_v31 = vld [vmem:[#allocation2] sm:$0x1] }
  0x99   :  { %101 = vst [vmem:[#allocation0] sm:$0x1] %v99_v31 }
  0x9a   :  { %154 = shalt.err (!%p151_p4)
}
  0x9b   :  { %s155_s29 = scalar_lea.hbm %s254_s1, 16 }
  0x9c   :  { %p156_p5 = scmp.ne.s32.totalorder %s254_s1, %s155_s29  ;;  %p159_p6 = scmp.lt.u32.totalorder %s155_s29, %s254_s1 }
  0x9e   :  { %p161_p7 = pnand %p159_p6, %p156_p5 }
  0xa0   :  { %164 = shalt.err (!%p161_p7)
}
  0xa1   :  { %109 = dma.vmem_to_hbm [thread:$0]  %s107_s24, 16, %s254_s1, [#allocation1]  }
  0xa2   :  { %165 = dma.done.wait [#allocation1], 16  }
  0xa3   :  { %166 = vsyncadd [#allocation1], 4294967280 }
  0xa4   :  { %111 = vsyncpa [#allocation1], 1 }

// kernel: basic_res_block.3
= control target key start
LH: loop header
LB: loop body
LE: loop exit
PB: predicated region body
PF: predicated region fallthrough
CT: control target
= control target key end

     0   :  { %10 = vsyncpa [#allocation3], 0  ;;  %s1846_s0 = inlined_call_operand.hbm [shape: f32[16,128], index: 0, kind: input, shape index: {}]   ;;  %s1847_s1 = inlined_call_operand.hbm [shape: f32[128,256], index: 1, kind: input, shape index: {}]   ;;  %s1848_s2 = inlined_call_operand.hbm [shape: f32[1,256], index: 2, kind: input, shape index: {}]   ;;  %s1849_s3 = inlined_call_operand.hbm [shape: f32[16,256], index: 3, kind: output, shape index: {0}]   ;;  %s1850_s4 = inlined_call_operand.hbm [shape: f32[1,2,256], index: 4, kind: output, shape index: {1}]  }
   0x1   :  { %11 = vsyncpa [#allocation6], 0 }
   0x2   :  { %12 = vsyncpa [#allocation4], 0 }
   0x3   :  { %13 = vsyncpa [#allocation10], 0  ;;  %s1463_s15 = smov [#allocation5]   ;;  %s1345_s19 = scalar_lea.hbm %s1847_s1, 4096 }
   0x4   :  { %s31_s16 = sshll.u32 %s1463_s15, 4  ;;  %p1346_p0 = scmp.ne.s32.totalorder %s1847_s1, %s1345_s19  ;;  %s32_s16 = int_to_ptr.vmem [resolvable:$true] %s31_s16 }
   0x5   :  { %p1349_p1 = scmp.lt.u32.totalorder %s1345_s19, %s1847_s1 }
   0x7   :  { %p1351_p2 = pnand %p1349_p1, %p1346_p0 }
   0x9   :  { %1354 = shalt.err (!%p1351_p2)
}
   0xa   :  { %s1355_s24 = scalar_lea.vmem %s32_s16, 4096  ;;  %p1360_p4 = scmp.lt.s32.totalorder %s32_s16, %s32_s16 }
   0xb   :  { %p1356_p3 = scmp.ne.s32.totalorder %s32_s16, %s1355_s24  ;;  %p1361_p5 = scmp.lt.s32.totalorder %s1355_s24, %s1355_s24 }
   0xd   :  { %p1362_p6 = por %p1361_p5, %p1360_p4 }
   0xf   :  { %p1363_p7 = pnand %p1362_p6, %p1356_p3 }
  0x11   :  { %1366 = shalt.err (!%p1363_p7)
}
  0x12   :  { %s1464_s25 = smov 256   ;;  %s1465_s26 = smov 16  }
  0x13   :  { %37 = dma.hbm_to_vmem [thread:$0]  %s1847_s1, 4096, %s32_s16, [#allocation6], %s1464_s25, %s1464_s25, %s1465_s26  }
  0x14   :  { %s1466_s29 = smov [#allocation2]   ;;  %s1367_s7 = scalar_lea.hbm %s1846_s0, 256 }
  0x15   :  { %s19_s30 = sshll.u32 %s1466_s29, 4  ;;  %p1368_p8 = scmp.ne.s32.totalorder %s1846_s0, %s1367_s7  ;;  %s20_s30 = int_to_ptr.vmem [resolvable:$true] %s19_s30 }
  0x16   :  { %p1371_p9 = scmp.lt.u32.totalorder %s1367_s7, %s1846_s0 }
  0x18   :  { %p1373_p10 = pnand %p1371_p9, %p1368_p8 }
  0x1a   :  { %1376 = shalt.err (!%p1373_p10)
}
  0x1b   :  { %s1377_s12 = scalar_lea.vmem %s20_s30, 256  ;;  %p1382_p12 = scmp.lt.s32.totalorder %s20_s30, %s20_s30 }
  0x1c   :  { %p1378_p11 = scmp.ne.s32.totalorder %s20_s30, %s1377_s12  ;;  %p1383_p13 = scmp.lt.s32.totalorder %s1377_s12, %s1377_s12 }
  0x1e   :  { %p1384_p0 = por %p1383_p13, %p1382_p12 }
  0x20   :  { %p1385_p1 = pnand %p1384_p0, %p1378_p11 }
  0x22   :  { %1388 = shalt.err (!%p1385_p1)
}
  0x23   :  { %s1467_s1 = smov 128   ;;  %s1468_s13 = smov 8  }
  0x24   :  { %25 = dma.hbm_to_vmem [thread:$0]  %s1846_s0, 256, %s20_s30, [#allocation3], %s1467_s1, %s1467_s1, %s1468_s13  }
  0x25   :  { %s1469_s16 = smov [#allocation7]   ;;  %s1389_s20 = scalar_lea.hbm %s1848_s2, 32 }
  0x26   :  { %s44_s17 = sshll.u32 %s1469_s16, 4  ;;  %p1390_p2 = scmp.ne.s32.totalorder %s1848_s2, %s1389_s20  ;;  %s45_s17 = int_to_ptr.vmem [resolvable:$true] %s44_s17 }
  0x27   :  { %p1393_p3 = scmp.lt.u32.totalorder %s1389_s20, %s1848_s2 }
  0x29   :  { %p1395_p4 = pnand %p1393_p3, %p1390_p2 }
  0x2b   :  { %1398 = shalt.err (!%p1395_p4)
}
  0x2c   :  { %s1399_s27 = scalar_lea.vmem %s45_s17, 32  ;;  %p1404_p6 = scmp.lt.s32.totalorder %s45_s17, %s45_s17 }
  0x2d   :  { %p1400_p5 = scmp.ne.s32.totalorder %s45_s17, %s1399_s27  ;;  %p1405_p7 = scmp.lt.s32.totalorder %s1399_s27, %s1399_s27 }
  0x2f   :  { %p1406_p8 = por %p1405_p7, %p1404_p6 }
  0x31   :  { %p1407_p9 = pnand %p1406_p8, %p1400_p5 }
  0x33   :  { %1410 = shalt.err (!%p1407_p9)
}
  0x34   :  { %47 = dma.hbm_to_vmem [thread:$0]  %s1848_s2, 32, %s45_s17, [#allocation6]  }
  0x35   :  { %1455 = dma.done.wait [#allocation3], 256  }
  0x36   :  { %1456 = vsyncadd [#allocation3], 4294967040 }
  0x37   :  { %1457 = dma.done.wait [#allocation6], 4128  }
  0x38   :  { %1458 = vsyncadd [#allocation6], 4294963168  ;;  %v1851_v0 = vmov 0.0   ;;  %v60_v1 = vld [vmem:[#allocation5 + $0x8] sm:$0xff]  ;;  %v62_v2 = vld [vmem:[#allocation5 + $0x18] sm:$0xff]  ;;  %s1471_s2 = smov [#allocation8]  }
  0x39   :  { %199 = vmatprep.mubr.f32.mxu1 %v1851_v0  ;;  %702 = vmatprep.mubr.f32.mxu0 %v1851_v0  ;;  %v59_v3 = vld [vmem:[#allocation5] sm:$0xff]  ;;  %v103_v4 = vand.u32 4294901760, %v60_v1  ;;  %v107_v5 = vand.u32 4294901760, %v62_v2  ;;  %v61_v6 = vld [vmem:[#allocation5 + $0x10] sm:$0xff]  ;;  %v64_v8 = vld [vmem:[#allocation5 + $0x28] sm:$0xff]  ;;  %s1091_s29 = sshll.u32 %s1471_s2, 4  ;;  %s1092_s29 = int_to_ptr.vmem [resolvable:$true] %s1091_s29 }
  0x3a   :  { %v105_v7 = vand.u32 4294901760, %v59_v3  ;;  %v66_v9 = vld [vmem:[#allocation5 + $0x38] sm:$0xff]  ;;  %v109_v10 = vand.u32 4294901760, %v61_v6  ;;  %v111_v11 = vand.u32 4294901760, %v64_v8  ;;  %v63_v13 = vld [vmem:[#allocation5 + $0x20] sm:$0xff]  ;;  %v65_v14 = vld [vmem:[#allocation5 + $0x30] sm:$0xff]  ;;  %p1416_p11 = scmp.lt.s32.totalorder %s1092_s29, %s1092_s29 }
  0x3b   :  { %v115_v12 = vand.u32 4294901760, %v66_v9  ;;  %v68_v15 = vld [vmem:[#allocation5 + $0x48] sm:$0xff]  ;;  %v1540_v16 = vpack.c.bf16 %v107_v5, %v103_v4  ;;  %v70_v17 = vld [vmem:[#allocation5 + $0x58] sm:$0xff]  ;;  %v67_v18 = vld [vmem:[#allocation5 + $0x40] sm:$0xff]  ;;  %v1542_v20 = vsub.f32 %v60_v1, %v103_v4  ;;  %v1549_v25 = vsub.f32 %v62_v2, %v107_v5  ;;  %s1411_s30 = scalar_lea.vmem %s1092_s29, 512 }
  0x3c   :  { %v69_v19 = vld [vmem:[#allocation5 + $0x50] sm:$0xff]  ;;  %v1544_v21 = vpack.c.bf16 %v109_v10, %v105_v7  ;;  %v72_v23 = vld [vmem:[#allocation5 + $0x68] sm:$0xff]  ;;  %v74_v24 = vld [vmem:[#allocation5 + $0x78] sm:$0xff]  ;;  %v113_v26 = vand.u32 4294901760, %v63_v13  ;;  %v117_v27 = vand.u32 4294901760, %v65_v14  ;;  %v119_v28 = vand.u32 4294901760, %v68_v15  ;;  %p1412_p10 = scmp.ne.s32.totalorder %s1092_s29, %s1411_s30  ;;  %p1417_p12 = scmp.lt.s32.totalorder %s1411_s30, %s1411_s30 }
  0x3d   :  { %v1546_v22 = vpack.c.bf16 %v115_v12, %v111_v11  ;;  %1119 = vmatprep.subr.bf16.mxu1 %v1540_v16  ;;  %1215 = vmatprep.subr.bf16.mxu0 %v1540_v16  ;;  %v1553_v29 = vsub.f32 %v59_v3, %v105_v7  ;;  %v123_v30 = vand.u32 4294901760, %v70_v17  ;;  %v121_v31 = vand.u32 4294901760, %v67_v18  ;;  %v71_v37 = vld [vmem:[#allocation5 + $0x60] sm:$0xff]  ;;  %v73_v38 = vld [vmem:[#allocation5 + $0x70] sm:$0xff]  ;;  %v76_v39 = vld [vmem:[#allocation5 + $0x88] sm:$0xff] }
  0x3e   :  { %1878 = vst [vmem:[#allocation15_spill] sm:$0xff] %v1544_v21  ;;  %1121 = vmatpush1.bf16.msra.mxu1 %v1544_v21  ;;  %1217 = vmatpush1.bf16.msra.mxu0 %v1544_v21  ;;  %v125_v32 = vand.u32 4294901760, %v69_v19  ;;  %v1556_v33 = vsub.f32 %v61_v6, %v109_v10  ;;  %v1560_v34 = vpack.c.bf16 %v117_v27, %v113_v26  ;;  %v127_v35 = vand.u32 4294901760, %v72_v23  ;;  %v78_v44 = vld [vmem:[#allocation5 + $0x98] sm:$0xff]  ;;  %v75_v45 = vld [vmem:[#allocation5 + $0x80] sm:$0xff]  ;;  %v77_v46 = vld [vmem:[#allocation5 + $0x90] sm:$0xff]  ;;  %p1418_p13 = por %p1417_p12, %p1416_p11 }
  0x3f   :  { %1879 = vst [vmem:[#allocation16_spill] sm:$0xff] %v1546_v22  ;;  %1123 = vmatprep.subr.bf16.mxu1 %v1546_v22  ;;  %1219 = vmatprep.subr.bf16.mxu0 %v1546_v22  ;;  %v131_v36 = vand.u32 4294901760, %v74_v24  ;;  %v1562_v40 = vsub.f32 %v64_v8, %v111_v11  ;;  %v1564_v41 = vsub.f32 %v66_v9, %v115_v12  ;;  %v80_v51 = vld [vmem:[#allocation5 + $0xa8] sm:$0xff]  ;;  %v129_v53 = vand.u32 4294901760, %v71_v37  ;;  %v82_v60 = vld [vmem:[#allocation5 + $0xb8] sm:$0xff]  ;;  %v79_v61 = vld [vmem:[#allocation5 + $0xa0] sm:$0xff] }
  0x40   :  { %1880 = vst [vmem:[#allocation17_spill] sm:$0xff] %v1560_v34  ;;  %v1566_v42 = vsub.f32 %v63_v13, %v113_v26  ;;  %v1568_v43 = vpack.c.bf16 %v123_v30, %v119_v28  ;;  %v1570_v47 = vsub.f32 %v65_v14, %v117_v27  ;;  %v1572_v48 = vsub.f32 %v68_v15, %v119_v28  ;;  %v81_v3 = vld [vmem:[#allocation5 + $0xb0] sm:$0xff]  ;;  %v84_v4 = vld [vmem:[#allocation5 + $0xc8] sm:$0xff]  ;;  %v86_v5 = vld [vmem:[#allocation5 + $0xd8] sm:$0xff]  ;;  %p1419_p0 = pnand %p1418_p13, %p1412_p10 }
  0x41   :  { %v1574_v49 = vsub.f32 %v70_v17, %v123_v30  ;;  %v1576_v50 = vpack.c.bf16 %v125_v32, %v121_v31  ;;  %v1580_v52 = vsub.f32 %v67_v18, %v121_v31  ;;  %v133_v54 = vand.u32 4294901760, %v73_v38  ;;  %v83_v10 = vld [vmem:[#allocation5 + $0xc0] sm:$0xff]  ;;  %v85_v15 = vld [vmem:[#allocation5 + $0xd0] sm:$0xff]  ;;  %v88_v30 = vld [vmem:[#allocation5 + $0xe8] sm:$0xff] }
  0x42   :  { %1881 = vst [vmem:[#allocation18_spill] sm:$0xff] %v1566_v42  ;;  %1882 = vst [vmem:[#allocation19_spill] sm:$0xff] %v1568_v43  ;;  %1125 = vmatpush1.bf16.msra.mxu1 %v1560_v34  ;;  %1221 = vmatpush1.bf16.msra.mxu0 %v1560_v34  ;;  %v135_v55 = vand.u32 4294901760, %v76_v39  ;;  %v1584_v56 = vpack.c.bf16 %v131_v36, %v127_v35  ;;  %v139_v57 = vand.u32 4294901760, %v78_v44  ;;  %v137_v58 = vand.u32 4294901760, %v75_v45  ;;  %v90_v31 = vld [vmem:[#allocation5 + $0xf8] sm:$0xff] }
  0x43   :  { %1883 = vst [vmem:[#allocation20_spill] sm:$0xff] %v1570_v47  ;;  %1884 = vst [vmem:[#allocation21_spill] sm:$0xff] %v1576_v50  ;;  %1127 = vmatprep.subr.bf16.mxu1 %v1568_v43  ;;  %1223 = vmatprep.subr.bf16.mxu0 %v1568_v43  ;;  %v141_v59 = vand.u32 4294901760, %v77_v46  ;;  %v1586_v62 = vsub.f32 %v69_v19, %v125_v32  ;;  %v1588_v63 = vsub.f32 %v72_v23, %v127_v35  ;;  %v87_v32 = vld [vmem:[#allocation5 + $0xe0] sm:$0xff] }
  0x44   :  { %1885 = vst [vmem:[#allocation22_spill] sm:$0xff] %v1580_v52  ;;  %1886 = vst [vmem:[#allocation23_spill] sm:$0xff] %v1584_v56  ;;  %v1590_v1 = vsub.f32 %v74_v24, %v131_v36  ;;  %v143_v2 = vand.u32 4294901760, %v80_v51  ;;  %v1592_v6 = vpack.c.bf16 %v133_v54, %v129_v53  ;;  %v1594_v7 = vsub.f32 %v71_v37, %v129_v53 }
  0x45   :  { %1887 = vst [vmem:[#allocation24_spill] sm:$0xff] %v1586_v62  ;;  %v1596_v8 = vsub.f32 %v73_v38, %v133_v54  ;;  %v1598_v9 = vsub.f32 %v76_v39, %v135_v55  ;;  %v1602_v11 = vpack.c.bf16 %v139_v57, %v135_v55  ;;  %v1604_v12 = vsub.f32 %v78_v44, %v139_v57  ;;  %v89_v39 = vld [vmem:[#allocation5 + $0xf0] sm:$0xff] }
  0x46   :  { %1888 = vst [vmem:[#allocation25_spill] sm:$0xff] %v1592_v6  ;;  %1129 = vmatpush1.bf16.msra.mxu1 %v1576_v50  ;;  %1225 = vmatpush1.bf16.msra.mxu0 %v1576_v50  ;;  %v147_v13 = vand.u32 4294901760, %v82_v60  ;;  %v145_v14 = vand.u32 4294901760, %v79_v61  ;;  %v1608_v17 = vpack.c.bf16 %v141_v59, %v137_v58  ;;  %v149_v18 = vand.u32 4294901760, %v81_v3  ;;  %v57_v44 = vld [vmem:[#allocation2] sm:$0xff] }
  0x47   :  { %1889 = vst [vmem:[#allocation26_spill] sm:$0xff] %v1602_v11  ;;  %1131 = vmatprep.subr.bf16.mxu1 %v1584_v56  ;;  %1227 = vmatprep.subr.bf16.mxu0 %v1584_v56  ;;  %v151_v19 = vand.u32 4294901760, %v84_v4  ;;  %v155_v23 = vand.u32 4294901760, %v86_v5  ;;  %v1610_v24 = vsub.f32 %v75_v45, %v137_v58  ;;  %v1612_v26 = vsub.f32 %v77_v46, %v141_v59 }
  0x48   :  { %1890 = vst [vmem:[#allocation27_spill] sm:$0xff] %v1608_v17  ;;  %v1614_v27 = vsub.f32 %v80_v51, %v143_v2  ;;  %v153_v28 = vand.u32 4294901760, %v83_v10  ;;  %v1616_v35 = vpack.c.bf16 %v147_v13, %v143_v2  ;;  %v1618_v36 = vsub.f32 %v82_v60, %v147_v13 }
  0x49   :  { %v1620_v37 = vsub.f32 %v79_v61, %v145_v14  ;;  %v157_v38 = vand.u32 4294901760, %v85_v15  ;;  %v1624_v45 = vpack.c.bf16 %v149_v18, %v145_v14  ;;  %v1626_v46 = vsub.f32 %v81_v3, %v149_v18 }
  0x4a   :  { %1891 = vst [vmem:[#allocation28_spill] sm:$0xff] %v1616_v35  ;;  %1133 = vmatpush1.bf16.msra.mxu1 %v1592_v6  ;;  %1229 = vmatpush1.bf16.msra.mxu0 %v1592_v6  ;;  %v1628_v51 = vpack.c.bf16 %v155_v23, %v151_v19  ;;  %v1632_v53 = vsub.f32 %v84_v4, %v151_v19  ;;  %v159_v54 = vand.u32 4294901760, %v88_v30  ;;  %v163_v55 = vand.u32 4294901760, %v90_v31 }
  0x4b   :  { %1892 = vst [vmem:[#allocation29_spill] sm:$0xff] %v1620_v37  ;;  %1893 = vst [vmem:[#allocation30_spill] sm:$0xff] %v1624_v45  ;;  %1135 = vmatprep.subr.bf16.mxu1 %v1602_v11  ;;  %1231 = vmatprep.subr.bf16.mxu0 %v1602_v11  ;;  %v161_v57 = vand.u32 4294901760, %v87_v32  ;;  %v165_v58 = vand.u32 4294901760, %v89_v39  ;;  %v224_v59 = vand.u32 4294901760, %v1542_v20  ;;  %v236_v60 = vand.u32 4294901760, %v1549_v25 }
  0x4c   :  { %1894 = vst [vmem:[#allocation31_spill] sm:$0xff] %v1626_v46  ;;  %1895 = vst [vmem:[#allocation32_spill] sm:$0xff] %v1628_v51  ;;  %v1636_v61 = vand.u32 4294901760, %v57_v44  ;;  %v1638_v2 = vsub.f32 %v86_v5, %v155_v23  ;;  %v1640_v3 = vpack.c.bf16 %v157_v38, %v153_v28  ;;  %v1642_v13 = vsub.f32 %v83_v10, %v153_v28 }
  0x4d   :  { %1896 = vst [vmem:[#allocation33_spill] sm:$0xff] %v1632_v53  ;;  %v1644_v14 = vsub.f32 %v85_v15, %v157_v38  ;;  %v1648_v4 = vsub.f32 %v88_v30, %v159_v54  ;;  %v225_v18 = vsub.f32 %v1542_v20, %v224_v59  ;;  %v237_v19 = vsub.f32 %v1549_v25, %v236_v60 }
  0x4e   :  { %1897 = vst [vmem:[#allocation34_spill] sm:$0xff] %v1636_v61  ;;  %1898 = vst [vmem:[#allocation35_spill] sm:$0xff] %v1640_v3  ;;  %1137 = vmatpush1.bf16.msra.mxu1 %v1608_v17  ;;  %1233 = vmatpush1.bf16.msra.mxu0 %v1608_v17  ;;  %v230_v0 = vand.u32 4294901760, %v1553_v29  ;;  %v1655_v5 = vpack.c.bf16 %v163_v55, %v159_v54  ;;  %v1658_v10 = vsub.f32 %v57_v44, %v1636_v61 }
  0x4f   :  { %1139 = vmatprep.subr.bf16.mxu1 %v1616_v35  ;;  %1235 = vmatprep.subr.bf16.mxu0 %v1616_v35  ;;  %v242_v15 = vand.u32 4294901760, %v1556_v33  ;;  %v248_v23 = vand.u32 4294901760, %v1562_v40  ;;  %v1662_v28 = vsub.f32 %v90_v31, %v163_v55  ;;  %v1664_v30 = vpack.c.bf16 %v165_v58, %v161_v57 }
  0x50   :  { %1899 = vst [vmem:[#allocation36_spill] sm:$0xff] %v1655_v5  ;;  %1900 = vst [vmem:[#allocation37_spill] sm:$0xff] %v1658_v10  ;;  %v231_v38 = vsub.f32 %v1553_v29, %v230_v0  ;;  %v260_v17 = vand.u32 4294901760, %v1564_v41  ;;  %v1668_v11 = vsub.f32 %v87_v32, %v161_v57  ;;  %v202_v54 = vand.u32 4294901760, %v1658_v10 }
  0x51   :  { %1901 = vst [vmem:[#allocation38_spill] sm:$0xff] %v1664_v30  ;;  %v243_v35 = vsub.f32 %v1556_v33, %v242_v15  ;;  %v249_v44 = vsub.f32 %v1562_v40, %v248_v23  ;;  %v226_v31 = vand.u32 4294901760, %v225_v18  ;;  %v238_v55 = vand.u32 4294901760, %v237_v19 }
  0x52   :  { %1141 = vmatpush1.bf16.msra.mxu1 %v1624_v45  ;;  %1237 = vmatpush1.bf16.msra.mxu0 %v1624_v45  ;;  %v232_v6 = vand.u32 4294901760, %v231_v38  ;;  %v261_v56 = vsub.f32 %v1564_v41, %v260_v17  ;;  %v203_v32 = vsub.f32 %v1658_v10, %v202_v54  ;;  %v254_v43 = vand.u32 4294901760, %v1566_v42 }
  0x53   :  { %1143 = vmatprep.subr.bf16.mxu1 %v1628_v51  ;;  %1239 = vmatprep.subr.bf16.mxu0 %v1628_v51  ;;  %v244_v57 = vand.u32 4294901760, %v243_v35  ;;  %v250_v50 = vand.u32 4294901760, %v249_v44  ;;  %v266_v22 = vand.u32 4294901760, %v1570_v47  ;;  %v272_v45 = vand.u32 4294901760, %v1572_v48 }
  0x54   :  { %v262_v34 = vand.u32 4294901760, %v261_v56  ;;  %v284_v18 = vand.u32 4294901760, %v1574_v49  ;;  %v1683_v19 = vsub.f32 %v89_v39, %v165_v58  ;;  %v1246_v38 = vpack.c.bf16 %v236_v60, %v224_v59 }
  0x55   :  { %v255_v21 = vsub.f32 %v1566_v42, %v254_v43  ;;  %v278_v51 = vand.u32 4294901760, %v1580_v52  ;;  %v1150_v35 = vpack.c.bf16 %v238_v55, %v226_v31  ;;  %v1248_v44 = vpack.c.bf16 %v242_v15, %v230_v0 }
  0x56   :  { %1145 = vmatpush1.bf16.msra.mxu1 %v1640_v3  ;;  %1241 = vmatpush1.bf16.msra.mxu0 %v1640_v3  ;;  %v267_v56 = vsub.f32 %v1570_v47, %v266_v22  ;;  %v290_v10 = vand.u32 4294901760, %v1586_v62  ;;  %v204_v39 = vand.u32 4294901760, %v203_v32  ;;  %v1250_v58 = vpack.c.bf16 %v260_v17, %v248_v23 }
  0x57   :  { %1147 = vmatprep.subr.bf16.mxu1 %v1655_v5  ;;  %1243 = vmatprep.subr.bf16.mxu0 %v1655_v5  ;;  %v273_v59 = vsub.f32 %v1572_v48, %v272_v45  ;;  %v285_v60 = vsub.f32 %v1574_v49, %v284_v18  ;;  %v1152_v42 = vpack.c.bf16 %v244_v57, %v232_v6  ;;  %v256_v15 = vand.u32 4294901760, %v255_v21 }
  0x58   :  { %v1154_v61 = vpack.c.bf16 %v262_v34, %v250_v50  ;;  %v279_v3 = vsub.f32 %v1580_v52, %v278_v51  ;;  %v291_v0 = vsub.f32 %v1586_v62, %v290_v10  ;;  %v268_v31 = vand.u32 4294901760, %v267_v56 }
  0x59   :  { %v296_v55 = vand.u32 4294901760, %v1588_v63  ;;  %v308_v47 = vand.u32 4294901760, %v1590_v1  ;;  %v1252_v17 = vpack.c.bf16 %v266_v22, %v254_v43  ;;  %v274_v23 = vand.u32 4294901760, %v273_v59 }
  0x5a   :  { %1149 = vmatpush1.bf16.msra.mxu1 %v1664_v30  ;;  %1245 = vmatpush1.bf16.msra.mxu0 %v1664_v30  ;;  %v1254_v32 = vpack.c.bf16 %v284_v18, %v272_v45  ;;  %v302_v6 = vand.u32 4294901760, %v1594_v7  ;;  %v286_v34 = vand.u32 4294901760, %v285_v60  ;;  %v314_v57 = vand.u32 4294901760, %v1596_v8 }
  0x5b   :  { %1151 = vmatprep.subr.bf16.mxu1 %v1150_v35  ;;  %1247 = vmatprep.subr.bf16.mxu0 %v1246_v38  ;;  %v297_v50 = vsub.f32 %v1588_v63, %v296_v55  ;;  %v309_v21 = vsub.f32 %v1590_v1, %v308_v47  ;;  %v280_v56 = vand.u32 4294901760, %v279_v3  ;;  %v292_v5 = vand.u32 4294901760, %v291_v0 }
  0x5c   :  { %v1256_v62 = vpack.c.bf16 %v290_v10, %v278_v51  ;;  %v320_v52 = vand.u32 4294901760, %v1598_v9  ;;  %v1156_v22 = vpack.c.bf16 %v268_v31, %v256_v15  ;;  %v303_v43 = vsub.f32 %v1594_v7, %v302_v6 }
  0x5d   :  { %205 = vmatmul.mubr.f32.vlgmr.msra.gmra.mrb[0].mxu1 %v204_v39  ;;  %706 = vmatmul.mubr.f32.vlgmr.msra.gmra.mrb[0].mxu0 %v202_v54  ;;  %v315_v45 = vsub.f32 %v1596_v8, %v314_v57  ;;  %v298_v18 = vand.u32 4294901760, %v297_v50  ;;  %v310_v38 = vand.u32 4294901760, %v309_v21  ;;  %v332_v35 = vand.u32 4294901760, %v1604_v12 }
  0x5e   :  { %1153 = vmatpush1.bf16.msra.mxu1 %v1152_v42  ;;  %1249 = vmatpush1.bf16.msra.mxu0 %v1248_v44  ;;  %v326_v59 = vand.u32 4294901760, %v1610_v24  ;;  %v1158_v51 = vpack.c.bf16 %v286_v34, %v274_v23  ;;  %v321_v3 = vsub.f32 %v1598_v9, %v320_v52  ;;  %v338_v10 = vand.u32 4294901760, %v1612_v26 }
  0x5f   :  { %1155 = vmatprep.subr.bf16.mxu1 %v1154_v61  ;;  %1251 = vmatprep.subr.bf16.mxu0 %v1250_v58  ;;  %v344_v54 = vand.u32 4294901760, %v1614_v27  ;;  %v1160_v39 = vpack.c.bf16 %v292_v5, %v280_v56  ;;  %v333_v60 = vsub.f32 %v1604_v12, %v332_v35  ;;  %v1902_v44 = vmov 0.0  }
  0x60   :  { %v327_v42 = vsub.f32 %v1610_v24, %v326_v59  ;;  %210 = vmatprep.mubr.f32.mxu1 %v1902_v44  ;;  %711 = vmatprep.mubr.f32.mxu0 %v1902_v44  ;;  %v1258_v0 = vpack.c.bf16 %v308_v47, %v296_v55  ;;  %v304_v15 = vand.u32 4294901760, %v303_v43  ;;  %v316_v61 = vand.u32 4294901760, %v315_v45 }
  0x61   :  { %v339_v58 = vsub.f32 %v1612_v26, %v338_v10  ;;  %v1162_v31 = vpack.c.bf16 %v310_v38, %v298_v18  ;;  %v345_v23 = vsub.f32 %v1614_v27, %v344_v54  ;;  %v356_v5 = vand.u32 4294901760, %v1618_v36 }
  0x62   :  { %1157 = vmatpush1.bf16.msra.mxu1 %v1156_v22  ;;  %1253 = vmatpush1.bf16.msra.mxu0 %v1252_v17  ;;  %v350_v34 = vand.u32 4294901760, %v1620_v37  ;;  %v322_v50 = vand.u32 4294901760, %v321_v3  ;;  %v334_v21 = vand.u32 4294901760, %v333_v60  ;;  %v362_v56 = vand.u32 4294901760, %v1626_v46 }
  0x63   :  { %1159 = vmatprep.subr.bf16.mxu1 %v1158_v51  ;;  %1255 = vmatprep.subr.bf16.mxu0 %v1254_v32  ;;  %v368_v47 = vand.u32 4294901760, %v1632_v53  ;;  %v1260_v55 = vpack.c.bf16 %v314_v57, %v302_v6  ;;  %v328_v43 = vand.u32 4294901760, %v327_v42  ;;  %v340_v45 = vand.u32 4294901760, %v339_v58 }
  0x64   :  { %v357_v17 = vsub.f32 %v1618_v36, %v356_v5  ;;  %v1164_v22 = vpack.c.bf16 %v316_v61, %v304_v15  ;;  %v351_v18 = vsub.f32 %v1620_v37, %v350_v34  ;;  %v363_v38 = vsub.f32 %v1626_v46, %v362_v56  ;;  %v58_v61 = vld [vmem:[#allocation2 + $0x8] sm:$0xff] }
  0x65   :  { %v369_v30 = vsub.f32 %v1632_v53, %v368_v47  ;;  %v346_v32 = vand.u32 4294901760, %v345_v23  ;;  %v380_v3 = vand.u32 4294901760, %v1638_v2  ;;  %v374_v60 = vand.u32 4294901760, %v1642_v13 }
  0x66   :  { %1161 = vmatpush1.bf16.msra.mxu1 %v1160_v39  ;;  %1257 = vmatpush1.bf16.msra.mxu0 %v1256_v62  ;;  %v358_v51 = vand.u32 4294901760, %v357_v17  ;;  %v1166_v6 = vpack.c.bf16 %v334_v21, %v322_v50  ;;  %v1262_v57 = vpack.c.bf16 %v332_v35, %v320_v52  ;;  %v386_v42 = vand.u32 4294901760, %v1644_v14 }
  0x67   :  { %1163 = vmatprep.subr.bf16.mxu1 %v1162_v31  ;;  %1259 = vmatprep.subr.bf16.mxu0 %v1258_v0  ;;  %v392_v15 = vand.u32 4294901760, %v1648_v4  ;;  %v1168_v58 = vpack.c.bf16 %v340_v45, %v328_v43  ;;  %v1264_v46 = vpack.c.bf16 %v338_v10, %v326_v59  ;;  %v1266_v53 = vpack.c.bf16 %v356_v5, %v344_v54 }
  0x68   :  { %v381_v62 = vsub.f32 %v1638_v2, %v380_v3  ;;  %v352_v39 = vand.u32 4294901760, %v351_v18  ;;  %v364_v23 = vand.u32 4294901760, %v363_v38  ;;  %v370_v17 = vand.u32 4294901760, %v369_v30 }
  0x69   :  { %v375_v37 = vsub.f32 %v1642_v13, %v374_v60  ;;  %v1170_v0 = vpack.c.bf16 %v358_v51, %v346_v32  ;;  %v387_v52 = vsub.f32 %v1644_v14, %v386_v42  ;;  %v404_v35 = vand.u32 4294901760, %v1662_v28 }
  0x6a   :  { %1165 = vmatpush1.bf16.msra.mxu1 %v1164_v22  ;;  %1261 = vmatpush1.bf16.msra.mxu0 %v1260_v55  ;;  %v1735_v31 = vand.u32 4294901760, %v58_v61  ;;  %v382_v59 = vand.u32 4294901760, %v381_v62  ;;  %v393_v10 = vsub.f32 %v1648_v4, %v392_v15  ;;  %v398_v54 = vand.u32 4294901760, %v1668_v11 }
  0x6b   :  { %1167 = vmatprep.subr.bf16.mxu1 %v1166_v6  ;;  %1263 = vmatprep.subr.bf16.mxu0 %v1262_v57  ;;  %v410_v30 = vand.u32 4294901760, %v1683_v19  ;;  %v405_v5 = vsub.f32 %v1662_v28, %v404_v35  ;;  %v1172_v21 = vpack.c.bf16 %v364_v23, %v352_v39  ;;  %v1268_v55 = vpack.c.bf16 %v362_v56, %v350_v34  ;;  %v1903_v39 = vld [vmem:[#allocation34_spill] sm:$0xff]  ;;  %v1904_v23 = vld [vmem:[#allocation15_spill] sm:$0xff] }
  0x6c   :  { %v1742_v50 = vsub.f32 %v58_v61, %v1735_v31  ;;  %v376_v43 = vand.u32 4294901760, %v375_v37  ;;  %v388_v45 = vand.u32 4294901760, %v387_v52  ;;  %v399_v18 = vsub.f32 %v1668_v11, %v398_v54  ;;  %v1911_v52 = vld [vmem:[#allocation19_spill] sm:$0xff] }
  0x6d   :  { %v411_v38 = vsub.f32 %v1683_v19, %v410_v30  ;;  %v1174_v32 = vpack.c.bf16 %v382_v59, %v370_v17  ;;  %v1270_v51 = vpack.c.bf16 %v380_v3, %v368_v47  ;;  %v394_v6 = vand.u32 4294901760, %v393_v10  ;;  %v1905_v17 = vld [vmem:[#allocation18_spill] sm:$0xff]  ;;  %v1913_v59 = vld [vmem:[#allocation23_spill] sm:$0xff] }
  0x6e   :  { %1169 = vmatpush1.bf16.msra.mxu1 %v1168_v58  ;;  %1265 = vmatpush1.bf16.msra.mxu0 %v1264_v46  ;;  %v213_v22 = vand.u32 4294901760, %v1742_v50  ;;  %v406_v57 = vand.u32 4294901760, %v405_v5  ;;  %v1272_v34 = vpack.c.bf16 %v386_v42, %v374_v60  ;;  %v1176_v37 = vpack.c.bf16 %v388_v45, %v376_v43  ;;  %v1918_v5 = vld [vmem:[#allocation31_spill] sm:$0xff] }
  0x6f   :  { %1171 = vmatprep.subr.bf16.mxu1 %v1170_v0  ;;  %1267 = vmatprep.subr.bf16.mxu0 %v1266_v53  ;;  %v400_v56 = vand.u32 4294901760, %v399_v18  ;;  %v412_v58 = vand.u32 4294901760, %v411_v38  ;;  %v1274_v53 = vpack.c.bf16 %v404_v35, %v392_v15  ;;  %v1276_v3 = vpack.c.bf16 %v410_v30, %v398_v54  ;;  %v1907_v0 = vld [vmem:[#allocation16_spill] sm:$0xff]  ;;  %v1914_v54 = vld [vmem:[#allocation25_spill] sm:$0xff]  ;;  %v1923_v43 = vld [vmem:[#allocation35_spill] sm:$0xff] }
  0x70   :  { %v214_v61 = vsub.f32 %v1742_v50, %v213_v22  ;;  %715 = vmatmul.mubr.f32.gmra.mrb[2].mxu0 %v213_v22  ;;  %v1178_v62 = vpack.c.bf16 %v406_v57, %v394_v6  ;;  %v1182_v60 = vpack.c.bf16 %v1549_v25, %v1542_v20  ;;  %v1184_v42 = vpack.c.bf16 %v1556_v33, %v1553_v29  ;;  %v1906_v20 = vld [vmem:[#allocation20_spill] sm:$0xff]  ;;  %v1909_v33 = vld [vmem:[#allocation22_spill] sm:$0xff]  ;;  %v1926_v18 = vld [vmem:[#allocation37_spill] sm:$0xff] }
  0x71   :  { %881 = vmatprep.mubr.f32.mxu0 %v1902_v44  ;;  %v1180_v47 = vpack.c.bf16 %v412_v58, %v400_v56  ;;  %v1186_v15 = vpack.c.bf16 %v1564_v41, %v1562_v40  ;;  %v1188_v25 = vpack.c.bf16 %v1906_v20, %v1905_v17  ;;  %v1190_v29 = vpack.c.bf16 %v1574_v49, %v1572_v48  ;;  %v1910_v40 = vld [vmem:[#allocation24_spill] sm:$0xff]  ;;  %v1912_v49 = vld [vmem:[#allocation21_spill] sm:$0xff]  ;;  %v1925_v22 = vld [vmem:[#allocation38_spill] sm:$0xff] }
  0x72   :  { %1173 = vmatpush1.bf16.msra.mxu1 %v1172_v21  ;;  %1269 = vmatpush1.bf16.msra.mxu0 %v1268_v55  ;;  %v215_v46 = vand.u32 4294901760, %v214_v61  ;;  %v1192_v41 = vpack.c.bf16 %v1910_v40, %v1909_v33  ;;  %v1194_v48 = vpack.c.bf16 %v1590_v1, %v1588_v63  ;;  %v1196_v35 = vpack.c.bf16 %v1596_v8, %v1594_v7  ;;  %v1915_v1 = vld [vmem:[#allocation26_spill] sm:$0xff]  ;;  %v1916_v7 = vld [vmem:[#allocation27_spill] sm:$0xff]  ;;  %v1917_v8 = vld [vmem:[#allocation29_spill] sm:$0xff] }
  0x73   :  { %1175 = vmatprep.subr.bf16.mxu1 %v1174_v32  ;;  %1271 = vmatprep.subr.bf16.mxu0 %v1270_v51  ;;  %v1198_v10 = vpack.c.bf16 %v1604_v12, %v1598_v9  ;;  %v1200_v63 = vpack.c.bf16 %v1612_v26, %v1610_v24  ;;  %v1202_v30 = vpack.c.bf16 %v1618_v36, %v1614_v27  ;;  %v1919_v9 = vld [vmem:[#allocation28_spill] sm:$0xff]  ;;  %v1920_v12 = vld [vmem:[#allocation33_spill] sm:$0xff]  ;;  %v1921_v24 = vld [vmem:[#allocation30_spill] sm:$0xff] }
  0x74   :  { %216 = vmatmul.mubr.f32.gmra.mrb[2].mxu1 %v215_v46  ;;  %v1204_v21 = vpack.c.bf16 %v1918_v5, %v1917_v8  ;;  %v1206_v55 = vpack.c.bf16 %v1638_v2, %v1920_v12  ;;  %v1208_v26 = vpack.c.bf16 %v1644_v14, %v1642_v13  ;;  %v1922_v27 = vld [vmem:[#allocation32_spill] sm:$0xff]  ;;  %v1210_v36 = vpack.c.bf16 %v1662_v28, %v1648_v4  ;;  %v91_v4 = vld [vmem:[#allocation7] sm:$0x3] }
  0x75   :  { %446 = vmatprep.mubr.f32.mxu1 %v1902_v44  ;;  %v1212_v45 = vpack.c.bf16 %v1683_v19, %v1668_v11  ;;  %v1924_v2 = vld [vmem:[#allocation36_spill] sm:$0xff]  ;;  %v93_v13 = vlaneseq }
  0x76   :  { %1177 = vmatpush1.bf16.msra.mxu1 %v1176_v37  ;;  %1273 = vmatpush1.bf16.msra.mxu0 %v1272_v34 }
  0x77   :  { %1179 = vmatprep.subr.bf16.mxu1 %v1178_v62  ;;  %1275 = vmatprep.subr.bf16.mxu0 %v1274_v53  ;;  %v1813_v11 = vshrl.u32 %v93_v13, 7 }
  0x79   :  { %v95_v14 = vsub.s32 0, %v1813_v11  ;;  %v99_v28 = vsub.s32 1, %v1813_v11 }
  0x7a   :  { %1181 = vmatpush1.bf16.msra.mxu1 %v1180_v47  ;;  %1277 = vmatpush1.bf16.msra.mxu0 %v1276_v3 }
  0x7b   :  { %1183 = vmatprep.subr.bf16.mxu1 %v1182_v60  ;;  %1279 = vmatprep.subr.bf16.mxu0 %v1540_v16  ;;  %v1908_v16 = vld [vmem:[#allocation17_spill] sm:$0xff]  ;;  %v96_v19 = vrot.slane %v91_v4, %v95_v14  ;;  %v100_v38 = vrot.slane %v91_v4, %v99_v28 }
  0x7d   :  { %448 = vmatmul.mubr.f32.vlgmr.msra.gmra.mrb[0].mxu1 %v1903_v39  ;;  %883 = vmatmul.mubr.f32.vlgmr.msra.gmra.mrb[0].mxu0 %v1903_v39 }
  0x7e   :  { %1185 = vmatpush1.bf16.msra.mxu1 %v1184_v42  ;;  %1281 = vmatpush1.bf16.msra.mxu0 %v1904_v23 }
  0x7f   :  { %1187 = vmatprep.subr.bf16.mxu1 %v1186_v15  ;;  %1283 = vmatprep.subr.bf16.mxu0 %v1907_v0 }
  0x80   :  { %453 = vmatprep.mubr.f32.mxu1 %v1902_v44  ;;  %888 = vmatprep.mubr.f32.mxu0 %v1902_v44 }
  0x81   :  { %455 = vmatmul.mubr.f32.gmra.mrb[2].mxu1 %v1735_v31  ;;  %890 = vmatmul.mubr.f32.gmra.mrb[2].mxu0 %v1735_v31 }
  0x82   :  { %1189 = vmatpush1.bf16.msra.mxu1 %v1188_v25  ;;  %1285 = vmatpush1.bf16.msra.mxu0 %v1908_v16 }
  0x83   :  { %1191 = vmatprep.subr.bf16.mxu1 %v1190_v29  ;;  %1287 = vmatprep.subr.bf16.mxu0 %v1911_v52 }
  0x84   :  { %589 = vmatprep.mubr.f32.mxu1 %v1902_v44  ;;  %992 = vmatprep.mubr.f32.mxu0 %v1902_v44 }
  0x86   :  { %1193 = vmatpush1.bf16.msra.mxu1 %v1192_v41  ;;  %1289 = vmatpush1.bf16.msra.mxu0 %v1912_v49 }
  0x87   :  { %1195 = vmatprep.subr.bf16.mxu1 %v1194_v48  ;;  %1291 = vmatprep.subr.bf16.mxu0 %v1913_v59 }
  0x8a   :  { %1197 = vmatpush1.bf16.msra.mxu1 %v1196_v35  ;;  %1293 = vmatpush1.bf16.msra.mxu0 %v1914_v54 }
  0x8b   :  { %1199 = vmatprep.subr.bf16.mxu1 %v1198_v10  ;;  %1295 = vmatprep.subr.bf16.mxu0 %v1915_v1 }
  0x8e   :  { %1201 = vmatpush1.bf16.msra.mxu1 %v1200_v63  ;;  %1297 = vmatpush1.bf16.msra.mxu0 %v1916_v7 }
  0x8f   :  { %1203 = vmatprep.subr.bf16.mxu1 %v1202_v30  ;;  %1299 = vmatprep.subr.bf16.mxu0 %v1919_v9 }
  0x92   :  { %1205 = vmatpush1.bf16.msra.mxu1 %v1204_v21  ;;  %1301 = vmatpush1.bf16.msra.mxu0 %v1921_v24 }
  0x93   :  { %1207 = vmatprep.subr.bf16.mxu1 %v1206_v55  ;;  %1303 = vmatprep.subr.bf16.mxu0 %v1922_v27 }
  0x96   :  { %1209 = vmatpush1.bf16.msra.mxu1 %v1208_v26  ;;  %1305 = vmatpush1.bf16.msra.mxu0 %v1923_v43 }
  0x97   :  { %1211 = vmatprep.subr.bf16.mxu1 %v1210_v36  ;;  %1307 = vmatprep.subr.bf16.mxu0 %v1924_v2 }
  0x9a   :  { %1213 = vmatpush1.bf16.msra.mxu1 %v1212_v45  ;;  %1309 = vmatpush1.bf16.msra.mxu0 %v1925_v22 }
  0x9d   :  { %592 = vmatmul.mubr.f32.vlgmr.msra.gmra.mrb[0].mxu1 %v1926_v18  ;;  %994 = vmatmul.mubr.f32.vlgmr.msra.gmra.mrb[0].mxu0 %v1903_v39 }
  0x9e   :  { %597 = vmatprep.mubr.f32.mxu1 %v1902_v44  ;;  %999 = vmatprep.mubr.f32.mxu0 %v1902_v44 }
  0xa1   :  { %600 = vmatmul.mubr.f32.gmra.mrb[2].mxu1 %v1742_v50  ;;  %1001 = vmatmul.mubr.f32.gmra.mrb[2].mxu0 %v1735_v31 }
 0x170   :  { %v593_v32 = vpop.f32.mrb[0].mxu1  ;;  %v995_v51 = vpop.f32.mrb[0].mxu0 }
 0x171   :  { %v1310_v6 = vadd.f32 %v593_v32, %v96_v19  ;;  %v595_v57 = vpop.f32.mrb[1].mxu1  ;;  %v997_v44 = vpop.f32.mrb[1].mxu0 }
 0x172   :  { %v1312_v61 = vadd.f32 %v595_v57, %v100_v38 }
 0x173   :  { %v1311_v50 = vadd.f32 %v1310_v6, %v995_v51 }
 0x174   :  { %v1313_v34 = vadd.f32 %v1312_v61, %v997_v44  ;;  %v601_v31 = vpop.f32.mrb[2].mxu1  ;;  %v1002_v37 = vpop.f32.mrb[2].mxu0 }
 0x175   :  { %1007 = vst [vmem:[#allocation8] sm:$0xff] %v1311_v50  ;;  %v1314_v46 = vadd.f32 %v601_v31, %v96_v19  ;;  %v603_v56 = vpop.f32.mrb[3].mxu1  ;;  %v1004_v58 = vpop.f32.mrb[3].mxu0  ;;  %v1048_v3 = vmul.f32 %v1311_v50, %v1311_v50 }
 0x176   :  { %1008 = vst [vmem:[#allocation8 + $0x8] sm:$0xff] %v1313_v34  ;;  %v1316_v62 = vadd.f32 %v603_v56, %v100_v38  ;;  %v1049_v15 = vmul.f32 %v1313_v34, %v1313_v34 }
 0x177   :  { %v1315_v53 = vadd.f32 %v1314_v46, %v1002_v37 }
 0x178   :  { %v1317_v47 = vadd.f32 %v1316_v62, %v1004_v58 }
 0x179   :  { %1009 = vst [vmem:[#allocation8 + $0x10] sm:$0xff] %v1315_v53  ;;  %v1011_v60 = vadd.f32 %v1315_v53, %v1311_v50  ;;  %v1050_v42 = vmul.f32 %v1315_v53, %v1315_v53 }
 0x17a   :  { %1010 = vst [vmem:[#allocation8 + $0x18] sm:$0xff] %v1317_v47  ;;  %v1018_v39 = vadd.f32 %v1317_v47, %v1313_v34  ;;  %v1051_v23 = vmul.f32 %v1317_v47, %v1317_v47 }
 0x17b   :  { %v1012_v17 = vrot.slane %v1011_v60, 4  ;;  %v1052_v20 = vadd.f32 %v1050_v42, %v1048_v3 }
 0x17c   :  { %1422 = shalt.err (!%p1419_p0)
}
 0x17d   :  { %s1423_s7 = scalar_lea.hbm %s1849_s3, 512 }
 0x17e   :  { %p1424_p1 = scmp.ne.s32.totalorder %s1849_s3, %s1423_s7  ;;  %p1427_p2 = scmp.lt.u32.totalorder %s1423_s7, %s1849_s3 }
 0x180   :  { %p1429_p3 = pnand %p1427_p2, %p1424_p1 }
 0x182   :  { %1432 = shalt.err (!%p1429_p3)
}
 0x183   :  { %1097 = dma.vmem_to_hbm [thread:$0]  %s1092_s29, 512, %s1849_s3, [#allocation4], %s1464_s25, %s1464_s25, %s1465_s26   ;;  %v1019_v25 = vrot.slane %v1018_v39, 4  ;;  %v1059_v0 = vadd.f32 %v1051_v23, %v1049_v15  ;;  %v1013_v29 = vadd.f32 %v1012_v17, %v1011_v60  ;;  %v1053_v16 = vrot.slane %v1052_v20, 4 }
 0x184   :  { %v1472_v33 = vmov 1966171168   ;;  %vm1045_vm0 = vcmp.lt.s32.totalorder %v93_v13, 256  ;;  %s1473_s3 = smov [#allocation9]  }
 0x185   :  { %v1029_v40 = vunpack.c.l.s4 %v1472_v33  ;;  %v1020_v41 = vadd.f32 %v1019_v25, %v1018_v39  ;;  %v1060_v52 = vrot.slane %v1059_v0, 4  ;;  %v1014_v48 = vrot.slane %v1013_v29, 2  ;;  %s1104_s25 = sshll.u32 %s1473_s3, 4  ;;  %s1105_s25 = int_to_ptr.vmem [resolvable:$true] %s1104_s25 }
 0x186   :  { %v1054_v49 = vadd.f32 %v1053_v16, %v1052_v20  ;;  %s1433_s26 = scalar_lea.vmem %s1105_s25, 64  ;;  %p1438_p5 = scmp.lt.s32.totalorder %s1105_s25, %s1105_s25 }
 0x187   :  { %v1021_v35 = vrot.slane %v1020_v41, 2  ;;  %v1061_v59 = vadd.f32 %v1060_v52, %v1059_v0  ;;  %v1015_v10 = vadd.f32 %v1014_v48, %v1013_v29  ;;  %v1030_v63 = vunpack.c.0.s8 %v1029_v40  ;;  %p1434_p4 = scmp.ne.s32.totalorder %s1105_s25, %s1433_s26  ;;  %p1439_p6 = scmp.lt.s32.totalorder %s1433_s26, %s1433_s26 }
 0x188   :  { %v1055_v54 = vrot.slane %v1054_v49, 2 }
 0x189   :  { %v1022_v1 = vadd.f32 %v1021_v35, %v1020_v41  ;;  %v1062_v30 = vrot.slane %v1061_v59, 2  ;;  %v1016_v7 = vrot.slane %v1015_v10, 1  ;;  %v1033_v55 = vsub.s32 %v1030_v63, %v1813_v11  ;;  %p1440_p7 = por %p1439_p6, %p1438_p5 }
 0x18a   :  { %v1056_v8 = vadd.f32 %v1055_v54, %v1054_v49 }
 0x18b   :  { %v1023_v5 = vrot.slane %v1022_v1, 1  ;;  %v1063_v21 = vadd.f32 %v1062_v30, %v1061_v59  ;;  %v1017_v9 = vadd.f32 %v1016_v7, %v1015_v10  ;;  %p1441_p8 = pnand %p1440_p7, %p1434_p4 }
 0x18c   :  { %v1057_v12 = vrot.slane %v1056_v8, 1 }
 0x18d   :  { %v1024_v24 = vadd.f32 %v1023_v5, %v1022_v1  ;;  %v1064_v26 = vrot.slane %v1063_v21, 1 }
 0x18e   :  { %v1058_v27 = vadd.f32 %v1057_v12, %v1056_v8 }
 0x18f   :  { %v1065_v36 = vadd.f32 %v1064_v26, %v1063_v21  ;;  %v1027_v43 = vcombine.low %v1017_v9, %v1024_v24 }
 0x191   :  { %v1034_v45 = vrot.slane %v1027_v43, %v1033_v55  ;;  %v1068_v2 = vcombine.low %v1058_v27, %v1065_v36 }
 0x193   :  { %v1041_v22 = vrot.slane %v1034_v45, %v1033_v55  ;;  %v1075_v18 = vrot.slane %v1068_v2, %v1033_v55 }
 0x195   :  { %1047 = vst.msk [vmem:[#allocation9] ss:$2 sm:$0x3] %vm1045_vm0, %v1041_v22  ;;  %v1082_v14 = vrot.slane %v1075_v18, %v1033_v55 }
 0x197   :  { %1085 = vst.msk [vmem:[#allocation9 + $0x1] ss:$2 sm:$0x3] %vm1045_vm0, %v1082_v14 }
 0x198   :  { %1444 = shalt.err (!%p1441_p8)
}
 0x199   :  { %s1445_s15 = scalar_lea.hbm %s1850_s4, 64 }
 0x19a   :  { %p1446_p9 = scmp.ne.s32.totalorder %s1850_s4, %s1445_s15  ;;  %p1449_p10 = scmp.lt.u32.totalorder %s1445_s15, %s1850_s4 }
 0x19c   :  { %p1451_p11 = pnand %p1449_p10, %p1446_p9 }
 0x19e   :  { %1454 = shalt.err (!%p1451_p11)
}
 0x19f   :  { %1107 = dma.vmem_to_hbm [thread:$0]  %s1105_s25, 64, %s1850_s4, [#allocation10]  }
 0x1a0   :  { %1459 = dma.done.wait [#allocation4], 512  }
 0x1a1   :  { %1460 = vsyncadd [#allocation4], 4294966784 }
 0x1a2   :  { %1461 = dma.done.wait [#allocation10], 64  }
 0x1a3   :  { %1462 = vsyncadd [#allocation10], 4294967232 }
 0x1a4   :  { %1114 = vsyncpa [#allocation3], 1 }
 0x1a5   :  { %1115 = vsyncpa [#allocation6], 1 }
 0x1a6   :  { %1116 = vsyncpa [#allocation4], 1 }
 0x1a7   :  { %1117 = vsyncpa [#allocation10], 1 }

// kernel: basic_res_block.4
= control target key start
LH: loop header
LB: loop body
LE: loop exit
PB: predicated region body
PF: predicated region fallthrough
CT: control target
= control target key end

     0   :  { %11 = vsyncpa [#allocation4], 0  ;;  %s5887_s0 = inlined_call_operand.hbm [shape: f32[32,128], index: 0, kind: input, shape index: {}]   ;;  %s5888_s1 = inlined_call_operand.hbm [shape: f32[1,128], index: 1, kind: input, shape index: {}]   ;;  %s5889_s2 = inlined_call_operand.hbm [shape: f32[1,128], index: 2, kind: input, shape index: {}]   ;;  %s5890_s3 = inlined_call_operand.hbm [shape: f32[3,128,128], index: 3, kind: input, shape index: {}]   ;;  %s5891_s4 = inlined_call_operand.hbm [shape: f32[32,128], index: 4, kind: output, shape index: {0}]   ;;  %s5892_s5 = inlined_call_operand.hbm [shape: f32[2,2,128], index: 5, kind: output, shape index: {1}]  }
   0x1   :  { %13 = vsyncpa [#allocation4 + $0x1], 0 }
   0x2   :  { %14 = vsyncpa [#allocation7], 0 }
   0x3   :  { %15 = vsyncpa [#allocation10], 0 }
   0x4   :  { %16 = vsyncpa [#allocation5], 0 }
   0x5   :  { %18 = vsyncpa [#allocation5 + $0x1], 0 }
   0x6   :  { %19 = vsyncpa [#allocation13], 0 }
   0x7   :  { %21 = vsyncpa [#allocation13 + $0x1], 0  ;;  %s4563_s18 = smov 0   ;;  %s4565_s19 = smov 0  }
   0x8   :  { %s4567_s20 = smov 0   ;;  %s4569_s21 = smov 0  }
   0x9 LB: > { %s4584_s22 = sadd.s32 4294967295, %s4520_s21   ;;  %s2622_s23 = sadd.s32 4294967294, %s4520_s21   ;;  %s4520_s21 = sphi %s4569_s21, %s6241_s21   ;;  %s4516_s20 = sphi %s4567_s20, %s6240_s20   ;;  %s4512_s19 = sphi %s4565_s19, %s6239_s19   ;;  %s4508_s18 = sphi %s4563_s18, %s6238_s18  }
   0xa   : > { %p47_p0 = scmp.ne.s32.totalorder %s4512_s19, %s4508_s18  ;;  %p5893_p1 = scmp.eq.s32.totalorder %s4584_s22, 0 }
   0xb   : > { %p140_p3 = scmp.eq.s32.totalorder %s2622_s23, 1  ;;  %p2623_p5 = scmp.ge.s32.totalorder %s4520_s21, 1 }
   0xc   : > { %p4593_p4 = por %p5893_p1, %p47_p0  ;;  %p173_p7 = scmp.lt.s32.totalorder %s4520_s21, 3 }
   0xd   : > { %p4598_p6 = por %p140_p3, %p47_p0  ;;  %s4522_s27 = smov [#allocation6]  }
   0xe   : > { %s6033_s24 = scalar_select %p4593_p4, 1, 0 }
   0xf   : > { %s6034_s25 = scalar_select %p4598_p6, 1, 0 }
  0x10   : > { %p4603_p8 = pnand %p2623_p5, %p173_p7  ;;  %s186_s28 = sshll.u32 %s4522_s27, 4  ;;  %s187_s28 = int_to_ptr.vmem [resolvable:$true] %s186_s28 }
  0x11   : > { %s4523_s29 = smov [#allocation8]   ;;  %s4524_s7 = smov [#allocation9]  }
  0x12   : > { %s6035_s26 = scalar_select %p4603_p8, 1, 0 }
  0x13   : > { %p4231_p10 = pneg %p4603_p8  ;;  %s197_s30 = sshll.u32 %s4523_s29, 4  ;;  %s4616_s30 = int_to_ptr.vmem [resolvable:$true] %s197_s30 }
  0x14   : > { %s207_s8 = sshll.u32 %s4524_s7, 4  ;;  %s4300_s11 = scalar_lea.hbm %s5888_s1, 16  ;;  %s4618_s8 = int_to_ptr.vmem [resolvable:$true] %s207_s8 }
  0x15   : > { %p4612_p11 = pnand %p4231_p10, %p5893_p1  ;;  %p4301_p12 = scmp.ne.s32.totalorder %s5888_s1, %s4300_s11 }
  0x16   : > { %p4307_p5 = scmp.lt.u32.totalorder %s4300_s11, %s5888_s1 }
  0x17   : > { %p4628_p13 = pneg %p4612_p11 }
  0x19   : > { %p4303_p0 = pnand %p4628_p13, %p4301_p12 }
  0x1b   : > { %p4304_p3 = pneg %p4303_p0 }
  0x1d   : > { %p4309_p7 = pnand %p4307_p5, %p4304_p3 }
  0x1f   : > { %4312 = shalt.err (!%p4309_p7)
}
  0x20   : > { %s4313_s17 = scalar_lea.vmem %s187_s28, 16  ;;  %s4320_s23 = scalar_lea.vmem %s187_s28, 32 }
  0x21   : > { %p4314_p10 = scmp.ne.s32.totalorder %s187_s28, %s4313_s17  ;;  %p4321_p2 = scmp.lt.s32.totalorder %s187_s28, %s187_s28 }
  0x22   : > { %p4322_p6 = scmp.lt.s32.totalorder %s4320_s23, %s4313_s17 }
  0x23   : > { %p4316_p9 = pnand %p4314_p10, %p4628_p13 }
  0x24   : > { %p4323_p4 = por %p4322_p6, %p4321_p2 }
  0x25   : > { %p4317_p1 = pneg %p4316_p9 }
  0x27   : > { %p4324_p8 = pnand %p4323_p4, %p4317_p1 }
  0x29   : > { %4327 = shalt.err (!%p4324_p8)
}
  0x2a   : > { %4234 = dma.hbm_to_vmem [thread:$0]  (!%p4612_p11), %s5888_s1, 16, %s187_s28, [#allocation7]  }
  0x2b   : > { %s4328_s10 = scalar_lea.hbm %s5889_s2, 16 }
  0x2c   : > { %p4329_p9 = scmp.ne.s32.totalorder %s5889_s2, %s4328_s10  ;;  %p4335_p1 = scmp.lt.u32.totalorder %s4328_s10, %s5889_s2 }
  0x2e   : > { %p4331_p12 = pnand %p4329_p9, %p4628_p13 }
  0x30   : > { %p4332_p2 = pneg %p4331_p12 }
  0x32   : > { %p4337_p4 = pnand %p4335_p1, %p4332_p2 }
  0x34   : > { %4340 = shalt.err (!%p4337_p4)
}
  0x35   : > { %s4341_s28 = scalar_lea.vmem %s4616_s30, 16  ;;  %s4348_s16 = scalar_lea.vmem %s4616_s30, 32 }
  0x36   : > { %p4342_p6 = scmp.ne.s32.totalorder %s4616_s30, %s4341_s28  ;;  %p4349_p3 = scmp.lt.s32.totalorder %s4616_s30, %s4616_s30 }
  0x37   : > { %p4350_p5 = scmp.lt.s32.totalorder %s4348_s16, %s4341_s28 }
  0x38   : > { %p4344_p8 = pnand %p4342_p6, %p4628_p13 }
  0x39   : > { %p4351_p7 = por %p4350_p5, %p4349_p3 }
  0x3a   : > { %p4345_p0 = pneg %p4344_p8 }
  0x3c   : > { %p4352_p10 = pnand %p4351_p7, %p4345_p0 }
  0x3e   : > { %4355 = shalt.err (!%p4352_p10)
}
  0x3f   : > { %4237 = dma.hbm_to_vmem [thread:$0]  (!%p4612_p11), %s5889_s2, 16, %s4616_s30, [#allocation7]  }
  0x40   : > { %s4356_s7 = scalar_lea.hbm %s5890_s3, 6144 }
  0x41   : > { %p4357_p9 = scmp.ne.s32.totalorder %s5890_s3, %s4356_s7  ;;  %p4363_p1 = scmp.lt.u32.totalorder %s4356_s7, %s5890_s3 }
  0x43   : > { %p4359_p12 = pnand %p4357_p9, %p4628_p13 }
  0x45   : > { %p4360_p2 = pneg %p4359_p12 }
  0x47   : > { %p4365_p4 = pnand %p4363_p1, %p4360_p2 }
  0x49   : > { %4368 = shalt.err (!%p4365_p4)
}
  0x4a   : > { %s4369_s30 = scalar_lea.vmem %s4618_s8, 6144  ;;  %p4377_p3 = scmp.lt.s32.totalorder %s4618_s8, %s4618_s8 }
  0x4b   : > { %p4370_p6 = scmp.ne.s32.totalorder %s4618_s8, %s4369_s30  ;;  %p4378_p5 = scmp.lt.s32.totalorder %s4369_s30, %s4369_s30 }
  0x4d   : > { %p4372_p8 = pnand %p4370_p6, %p4628_p13  ;;  %p4379_p7 = por %p4378_p5, %p4377_p3 }
  0x4f   : > { %p4373_p0 = pneg %p4372_p8 }
  0x51   : > { %p4380_p10 = pnand %p4379_p7, %p4373_p0 }
  0x53   : > { %4383 = shalt.err (!%p4380_p10)
}
  0x54   : > { %s4525_s13 = smov 128   ;;  %s4526_s14 = smov 8  }
  0x55   : > { %4240 = dma.hbm_to_vmem [thread:$0]  (!%p4612_p11), %s5890_s3, 6144, %s4618_s8, [#allocation10], %s4525_s13, %s4525_s13, %s4526_s14  }
  0x56   : > { %s4695_s16 = sadd.s32 1, %s4520_s21   ;;  %s34_s23 = sadd.s32 1, %s4516_s20 }
  0x57   : > { %s31_s17 = ssub.s32 %s4520_s21, %s4695_s16  ;;  %p41_p9 = scmp.ne.s32.totalorder %s4516_s20, %s4512_s19 }
  0x58   : > { %p32_p13 = scmp.eq.s32.totalorder %s31_s17, 0  ;;  %p42_p12 = scmp.eq.s32.totalorder %s4520_s21, 0 }
  0x59   : > { %p4255_p2 = scmp.lt.s32.totalorder %s4520_s21, 2  ;;  %p6038_p4 = scmp.eq.s32.totalorder %s4584_s22, 1 }
  0x5a   : > { %s4705_s27 = scalar_select %p32_p13, %s4516_s20, %s34_s23  }
  0x5b   : > { %p43_p1 = por %p42_p12, %p41_p9  ;;  %p4709_p6 = por %p6038_p4, %p41_p9 }
  0x5c   : > { %s221_s29 = sand.u32 1, %s4516_s20   ;;  %s2647_s7 = sshll.u32 %s4520_s21, 8 }
  0x5d   : > { %s2628_s8 = sshll.u32 %s221_s29, 4  ;;  %s4718_s11 = scalar_lea.hbm %s5887_s0, %s2647_s7 }
  0x5e   : > { %s225_s12 = scalar_lea.vmem [#allocation3], %s2628_s8  ;;  %p4720_p11 = pnand %p4255_p2, %p43_p1 }
  0x5f   : > { %s232_s30 = sshll.u32 %s225_s12, 4  ;;  %s4726_s28 = scalar_lea.sflag [#allocation4], %s221_s29  ;;  %s4724_s30 = int_to_ptr.vmem [resolvable:$true] %s232_s30 }
  0x60   : > { %s4384_s17 = scalar_lea.hbm %s4718_s11, 256  ;;  %p4386_p0 = pneg %p4720_p11 }
  0x61   : > { %p4385_p8 = scmp.ne.s32.totalorder %s4718_s11, %s4384_s17  ;;  %s4389_s8 = scalar_lea.hbm %s5887_s0, 512 }
  0x62   : > { %p4390_p7 = scmp.lt.u32.totalorder %s4718_s11, %s5887_s0  ;;  %p4391_p10 = scmp.lt.u32.totalorder %s4389_s8, %s4384_s17 }
  0x63   : > { %p4387_p3 = pnand %p4386_p0, %p4385_p8  ;;  %p4393_p9 = scmp.lt.u32.totalorder %s4384_s17, %s4718_s11 }
  0x64   : > { %p4392_p13 = por %p4391_p10, %p4390_p7 }
  0x65   : > { %p4388_p5 = pneg %p4387_p3 }
  0x66   : > { %p4394_p12 = por %p4393_p9, %p4392_p13 }
  0x68   : > { %p4395_p2 = pnand %p4394_p12, %p4388_p5 }
  0x6a   : > { %4398 = shalt.err (!%p4395_p2)
}
  0x6b   : > { %s4399_s29 = scalar_lea.vmem %s4724_s30, 256  ;;  %s4527_s12 = smov [#allocation3]  }
  0x6c   : > { %p4400_p1 = scmp.ne.s32.totalorder %s4724_s30, %s4399_s29  ;;  %s4404_s23 = sshll.u32 %s4527_s12, 4  ;;  %s4405_s23 = int_to_ptr.vmem [resolvable:$false] %s4404_s23 }
  0x6d   : > { %s4406_s7 = scalar_lea.vmem %s4405_s23, 512  ;;  %p4407_p3 = scmp.lt.s32.totalorder %s4724_s30, %s4405_s23 }
  0x6e   : > { %p4402_p4 = pnand %p4400_p1, %p4386_p0  ;;  %p4408_p7 = scmp.lt.s32.totalorder %s4406_s7, %s4399_s29 }
  0x70   : > { %p4403_p8 = pneg %p4402_p4  ;;  %p4409_p10 = por %p4408_p7, %p4407_p3 }
  0x72   : > { %p4410_p13 = pnand %p4409_p10, %p4403_p8 }
  0x74   : > { %4413 = shalt.err (!%p4410_p13)
}
  0x75   : > { %4244 = dma.hbm_to_vmem [thread:$0]  (!%p4720_p11), %s4718_s11, 256, %s4724_s30, %s4726_s28, %s4525_s13, %s4525_s13, %s4526_s14  }
  0x76   : > { %p6041_p0 = scmp.ne.s32.totalorder %s6035_s26, 0 }
  0x78   : > { %244 = sbr.rel (%p6041_p0) target bundleno = 691 (0x2b3), region = 36 }
  0x7f   : > { %s4760_s17 = sand.u32 1, %s4512_s19   ;;  %p6042_p5 = scmp.ne.s32.totalorder %s6033_s24, 0 }
  0x80   : > { %s2632_s8 = sshll.u32 %s4760_s17, 4  ;;  %s247_s9 = scalar_lea.sflag [#allocation4], %s4760_s17 }
  0x81   : > { %s4766_s15 = scalar_lea.vmem [#allocation3], %s2632_s8 }
  0x82   : > { %4487 = dma.done.wait (%p6042_p5), %s247_s9, 256  }
  0x83   : > { %4489 = vsyncadd (%p6042_p5), %s247_s9, 4294967040  ;;  %p6043_p11 = scmp.eq.s32.totalorder %s4584_s22, 0 }
  0x85   : > { %4491 = dma.done.wait (%p6043_p11), [#allocation7], 32   ;;  %p6044_p9 = pmov %p6043_p11 }
  0x87   : > { %4493 = vsyncadd (%p6044_p9), [#allocation7], 4294967264  ;;  %p6045_p12 = pmov %p6044_p9 }
  0x88   : > { %p6046_p2 = pmov %p6044_p9 }
  0x89   : > { %4495 = dma.done.wait (%p6045_p12), [#allocation10], 6144  }
  0x8a   : > { %4497 = vsyncadd (%p6046_p2), [#allocation10], 4294961152  ;;  %v4528_v0 = vmov 0.0   ;;  %v4780_v1 = vld [vmem:[#allocation9 + $0x80] sm:$0xff]  ;;  %v4782_v2 = vld [vmem:[#allocation9 + $0x88] sm:$0xff]  ;;  %s286_s24 = scalar_lea.vmem [#allocation11], %s2632_s8 }
  0x8b   : > { %322 = vst [vmem:[#allocation2] sm:$0x1] %v4528_v0  ;;  %325 = vst [vmem:[#allocation2 + $0x11] sm:$0x1] %v4528_v0  ;;  %v4784_v3 = vld [vmem:[#allocation9] sm:$0xff]  ;;  %v364_v4 = vand.u32 4294901760, %v4780_v1 }
  0x8c   : > { %v367_v5 = vand.u32 4294901760, %v4782_v2  ;;  %v4788_v6 = vld [vmem:[#allocation9 + $0x8] sm:$0xff]  ;;  %v1048_v7 = vand.u32 4294901760, %v4784_v3  ;;  %v4791_v8 = vld [vmem:[#allocation9 + $0x90] sm:$0xff]  ;;  %v4793_v9 = vld [vmem:[#allocation9 + $0x98] sm:$0xff]  ;;  %s2475_s26 = sshll.u32 %s286_s24, 4  ;;  %s5807_s26 = int_to_ptr.vmem [resolvable:$true] %s2475_s26 }
  0x8d   : > { %v1051_v10 = vand.u32 4294901760, %v4788_v6  ;;  %v370_v11 = vand.u32 4294901760, %v4791_v8  ;;  %v373_v12 = vand.u32 4294901760, %v4793_v9  ;;  %v4798_v13 = vld [vmem:[#allocation9 + $0x10] sm:$0xff]  ;;  %v4800_v14 = vld [vmem:[#allocation9 + $0x18] sm:$0xff]  ;;  %v4802_v15 = vld [vmem:[#allocation9 + $0xa0] sm:$0xff] }
  0x8e   : > { %v4808_v16 = vpack.c.bf16 %v367_v5, %v364_v4  ;;  %v5913_v17 = vand.u32 4294901760, %v4798_v13  ;;  %v5911_v18 = vand.u32 4294901760, %v4800_v14  ;;  %v4812_v19 = vld [vmem:[#allocation9 + $0xa8] sm:$0xff]  ;;  %v376_v20 = vand.u32 4294901760, %v4802_v15  ;;  %v4815_v21 = vld [vmem:[#allocation9 + $0x20] sm:$0xff]  ;;  %v4833_v27 = vld [vmem:[#allocation9 + $0xb0] sm:$0xff] }
  0x8f   : > { %v4817_v22 = vld [vmem:[#allocation9 + $0x28] sm:$0xff]  ;;  %v4823_v23 = vpack.c.bf16 %v1051_v10, %v1048_v7  ;;  %v4829_v24 = vpack.c.bf16 %v373_v12, %v370_v11  ;;  %v5910_v25 = vand.u32 4294901760, %v4812_v19  ;;  %v5907_v26 = vand.u32 4294901760, %v4815_v21  ;;  %v4835_v28 = vld [vmem:[#allocation9 + $0xb8] sm:$0xff]  ;;  %v4837_v29 = vld [vmem:[#allocation9 + $0x30] sm:$0xff]  ;;  %s2648_s13 = sshll.u32 %s4584_s22, 8 }
  0x90   : > { %6047 = vst [vmem:[#allocation19_spill] sm:$0xff] %v4808_v16  ;;  %3604 = vmatprep.subr.bf16.mxu1 %v4808_v16  ;;  %v4844_v30 = vpack.c.bf16 %v5911_v18, %v5913_v17  ;;  %v5899_v31 = vand.u32 4294901760, %v4817_v22  ;;  %v4847_v32 = vld [vmem:[#allocation9 + $0x38] sm:$0xff]  ;;  %v4849_v33 = vld [vmem:[#allocation9 + $0xc0] sm:$0xff]  ;;  %v4851_v34 = vld [vmem:[#allocation9 + $0xc8] sm:$0xff]  ;;  %v5906_v35 = vand.u32 4294901760, %v4833_v27  ;;  %v4988_v18 = vsub.f32 %v4793_v9, %v373_v12  ;;  %s5812_s30 = scalar_lea.hbm %s5891_s4, %s2648_s13 }
  0x91   : > { %6048 = vst [vmem:[#allocation20_spill] sm:$0xff] %v4829_v24  ;;  %3892 = vmatprep.subr.bf16.mxu0 %v4823_v23  ;;  %3606 = vmatpush3.bf16.msra.mxu1 %v4808_v16  ;;  %v4856_v36 = vld [vmem:[#allocation9 + $0x40] sm:$0xff]  ;;  %v4858_v37 = vld [vmem:[#allocation9 + $0x48] sm:$0xff]  ;;  %v4866_v38 = vpack.c.bf16 %v5910_v25, %v376_v20  ;;  %v5898_v39 = vand.u32 4294901760, %v4835_v28  ;;  %v5897_v40 = vand.u32 4294901760, %v4837_v29  ;;  %v5896_v41 = vand.u32 4294901760, %v4847_v32 }
  0x92   : > { %3894 = vmatpush3.bf16.msra.mxu0 %v4823_v23  ;;  %3608 = vmatprep.subr.bf16.mxu1 %v4829_v24  ;;  %v4871_v42 = vld [vmem:[#allocation9 + $0xd0] sm:$0xff]  ;;  %v4873_v43 = vld [vmem:[#allocation9 + $0xd8] sm:$0xff]  ;;  %v4880_v44 = vpack.c.bf16 %v5899_v31, %v5907_v26  ;;  %v5901_v45 = vand.u32 4294901760, %v4849_v33  ;;  %v5900_v46 = vand.u32 4294901760, %v4851_v34  ;;  %v5903_v47 = vand.u32 4294901760, %v4856_v36  ;;  %v4893_v53 = vld [vmem:[#allocation9 + $0xe0] sm:$0xff] }
  0x93   : > { %6049 = vst [vmem:[#allocation21_spill] sm:$0xff] %v4866_v38  ;;  %3896 = vmatprep.subr.bf16.mxu0 %v4844_v30  ;;  %v5902_v48 = vand.u32 4294901760, %v4858_v37  ;;  %v4886_v49 = vld [vmem:[#allocation9 + $0x50] sm:$0xff]  ;;  %v4888_v50 = vld [vmem:[#allocation9 + $0x58] sm:$0xff]  ;;  %v5905_v51 = vand.u32 4294901760, %v4871_v42  ;;  %v5904_v52 = vand.u32 4294901760, %v4873_v43  ;;  %v4902_v55 = vpack.c.bf16 %v5898_v39, %v5906_v35 }
  0x94   : > { %6050 = vst [vmem:[#allocation22_spill] sm:$0xff] %v4880_v44  ;;  %v296_v54 = vld [vmem:[%s4766_s15] sm:$0xff]  ;;  %v4908_v56 = vpack.c.bf16 %v5896_v41, %v5897_v40  ;;  %v297_v58 = vld [vmem:[%s4766_s15 + $0x8] sm:$0xff]  ;;  %v4918_v60 = vpack.c.bf16 %v5900_v46, %v5901_v45  ;;  %v5909_v61 = vand.u32 4294901760, %v4886_v49  ;;  %v5908_v62 = vand.u32 4294901760, %v4888_v50  ;;  %s2457_s28 = scalar_lea.sflag [#allocation5], %s4760_s17 }
  0x95   : > { %3610 = vmatpush3.bf16.msra.mxu1 %v4829_v24  ;;  %6051 = vst [vmem:[#allocation23_spill] sm:$0xff] %v4902_v55  ;;  %v4910_v57 = vld [vmem:[#allocation9 + $0xe8] sm:$0xff]  ;;  %v2638_v59 = vld [vmem:[#allocation6] ss:$0 sm:$0xff]  ;;  %v4922_v63 = vld [vmem:[#allocation9 + $0x60] sm:$0xff]  ;;  %v4928_v40 = vpack.c.bf16 %v5902_v48, %v5903_v47  ;;  %v5916_v39 = vand.u32 4294901760, %v4893_v53  ;;  %v4934_v46 = vsub.f32 %v4780_v1, %v364_v4 }
  0x96   : > { %3898 = vmatpush3.bf16.msra.mxu0 %v4844_v30  ;;  %3612 = vmatprep.subr.bf16.mxu1 %v4866_v38  ;;  %6052 = vst [vmem:[#allocation24_spill] sm:$0xff] %v4908_v56  ;;  %6053 = vst [vmem:[#allocation25_spill] sm:$0xff] %v4918_v60  ;;  %v305_v0 = vmul.f32 %v2638_v59, %v296_v54  ;;  %v2639_v41 = vld [vmem:[#allocation8] ss:$0 sm:$0xff]  ;;  %v306_v31 = vmul.f32 %v2638_v59, %v297_v58  ;;  %v5915_v45 = vand.u32 4294901760, %v4910_v57  ;;  %v4944_v48 = vld [vmem:[#allocation9 + $0x68] sm:$0xff] }
  0x97   : > { %3900 = vmatprep.subr.bf16.mxu0 %v4880_v44  ;;  %6054 = vst [vmem:[#allocation26_spill] sm:$0xff] %v4928_v40  ;;  %v4941_v54 = vpack.c.bf16 %v5904_v52, %v5905_v51  ;;  %v4949_v58 = vsub.f32 %v4782_v2, %v367_v5  ;;  %v5918_v1 = vand.u32 4294901760, %v4922_v63  ;;  %v4954_v4 = vld [vmem:[#allocation9 + $0xf0] sm:$0xff]  ;;  %v5912_v52 = vand.u32 4294901760, %v4934_v46  ;;  %v4969_v5 = vld [vmem:[#allocation9 + $0xf8] sm:$0xff]  ;;  %s4414_s10 = scalar_lea.vmem %s5807_s26, 256 }
  0x98   : > { %v314_v47 = vadd.f32 %v2639_v41, %v305_v0  ;;  %v315_v59 = vadd.f32 %v2639_v41, %v306_v31  ;;  %v4960_v0 = vsub.f32 %v4791_v8, %v370_v11  ;;  %v4967_v2 = vpack.c.bf16 %v5908_v62, %v5909_v61  ;;  %v4973_v35 = vld [vmem:[#allocation9 + $0x70] sm:$0xff]  ;;  %v4975_v8 = vld [vmem:[#allocation9 + $0x78] sm:$0xff]  ;;  %p4415_p1 = scmp.ne.s32.totalorder %s5807_s26, %s4414_s10  ;;  %s4529_s29 = smov [#allocation11]  }
  0x99   : > { %3614 = vmatpush3.bf16.msra.mxu1 %v4866_v38  ;;  %6055 = vst [vmem:[#allocation27_spill] sm:$0xff] %v4941_v54  ;;  %v5914_v31 = vand.u32 4294901760, %v4949_v58  ;;  %v5917_v41 = vand.u32 4294901760, %v4944_v48  ;;  %v468_v11 = vsub.f32 %v4934_v46, %v5912_v52  ;;  %v5001_v9 = vpack.c.bf16 %v5915_v45, %v5916_v39  ;;  %s4418_s12 = sshll.u32 %s4529_s29, 4  ;;  %s4419_s12 = int_to_ptr.vmem [resolvable:$false] %s4418_s12 }
  0x9a   : > { %3902 = vmatpush3.bf16.msra.mxu0 %v4880_v44  ;;  %3616 = vmatprep.subr.bf16.mxu1 %v4902_v55  ;;  %6056 = vst [vmem:[#allocation28_spill] sm:$0xff] %v4967_v2  ;;  %vm316_vm0 = vcmp.gt.f32.partialorder %v314_v47, 0.0  ;;  %v318_v51 = vmul.f32 0.01, %v314_v47  ;;  %vm317_vm1 = vcmp.gt.f32.partialorder %v315_v59, 0.0  ;;  %v5922_v12 = vand.u32 4294901760, %v4973_v35  ;;  %p4416_p4 = pnand %p4415_p1, %p4709_p6  ;;  %p4421_p3 = scmp.lt.s32.totalorder %s5807_s26, %s4419_s12 }
  0x9b   : > { %3904 = vmatprep.subr.bf16.mxu0 %v4908_v56  ;;  %v319_v26 = vmul.f32 0.01, %v315_v59  ;;  %v475_v25 = vsub.f32 %v4949_v58, %v5914_v31  ;;  %6057 = vst [vmem:[#allocation29_spill] sm:$0xff] %v5001_v9  ;;  %v5018_v45 = vsub.f32 %v4788_v6, %v1051_v10  ;;  %v6062_v10 = vand.u32 4294901760, %v4798_v13  ;;  %s4420_s23 = scalar_lea.vmem %s4419_s12, 512 }
  0x9c   : > { %v320_v61 = vsel %vm316_vm0, %v314_v47, %v318_v51  ;;  %v5919_v47 = vand.u32 4294901760, %v4960_v0  ;;  %p4417_p8 = pneg %p4416_p4  ;;  %p4422_p7 = scmp.lt.s32.totalorder %s4420_s23, %s4414_s10 }
  0x9d   : > { %3618 = vmatpush3.bf16.msra.mxu1 %v4902_v55  ;;  %323 = vst [vmem:[#allocation2 + $0x1] sm:$0xff] %v320_v61  ;;  %v4993_v17 = vand.u32 4294901760, %v320_v61  ;;  %v321_v62 = vsel %vm317_vm1, %v315_v59, %v319_v26  ;;  %v469_v26 = vand.u32 4294901760, %v468_v11  ;;  %v5013_v59 = vsub.f32 %v4784_v3, %v1048_v7  ;;  %6059 = vst [vmem:[#allocation31_spill] sm:$0xff] %v5018_v45 }
  0x9e   : > { %3906 = vmatpush3.bf16.msra.mxu0 %v4908_v56  ;;  %3620 = vmatprep.subr.bf16.mxu1 %v4918_v60  ;;  %324 = vst [vmem:[#allocation2 + $0x9] sm:$0xff] %v321_v62  ;;  %v5005_v31 = vand.u32 4294901760, %v321_v62  ;;  %v476_v39 = vand.u32 4294901760, %v475_v25  ;;  %v5028_v11 = vsub.f32 %v4802_v15, %v376_v20  ;;  %v5036_v3 = vpack.c.bf16 %v5917_v41, %v5918_v1  ;;  %p4423_p10 = por %p4422_p7, %p4421_p3 }
  0x9f   : > { %3908 = vmatprep.subr.bf16.mxu0 %v4928_v40  ;;  %v5008_v52 = vsub.f32 %v320_v61, %v4993_v17  ;;  %6058 = vst [vmem:[#allocation30_spill] sm:$0xff] %v5013_v59  ;;  %v482_v7 = vsub.f32 %v4960_v0, %v5919_v47  ;;  %v5045_v15 = vsub.f32 %v4798_v13, %v6062_v10  ;;  %v6064_v20 = vand.u32 4294901760, %v4954_v4 }
  0xa0   : > { %v5022_v51 = vsub.f32 %v321_v62, %v5005_v31  ;;  %6061 = vst [vmem:[#allocation33_spill] sm:$0xff] %v5036_v3  ;;  %v6065_v25 = vand.u32 4294901760, %v4969_v5  ;;  %v6066_v41 = vand.u32 4294901760, %v4975_v8  ;;  %v6068_v47 = vand.u32 4294901760, %v4800_v14  ;;  %p4424_p13 = pnand %p4423_p10, %p4417_p8 }
  0xa1   : > { %3622 = vmatpush3.bf16.msra.mxu1 %v4918_v60  ;;  %v5925_v6 = vand.u32 4294901760, %v5008_v52  ;;  %6063 = vst [vmem:[#allocation34_spill] sm:$0xff] %v5045_v15  ;;  %v6070_v13 = vand.u32 4294901760, %v4812_v19 }
  0xa2   : > { %6060 = vst [vmem:[#allocation32_spill] sm:$0xff] %v5022_v51  ;;  %3910 = vmatpush3.bf16.msra.mxu0 %v4928_v40  ;;  %3624 = vmatprep.subr.bf16.mxu1 %v4941_v54  ;;  %v5052_v62 = vpack.c.bf16 %v6065_v25, %v6064_v20  ;;  %v5058_v1 = vpack.c.bf16 %v6066_v41, %v5922_v12  ;;  %v483_v41 = vand.u32 4294901760, %v482_v7 }
  0xa3   : > { %3912 = vmatprep.subr.bf16.mxu0 %v4967_v2  ;;  %v5063_v61 = vsub.f32 %v4800_v14, %v6068_v47  ;;  %v5068_v10 = vsub.f32 %v4812_v19, %v6070_v13  ;;  %v447_v20 = vsub.f32 %v5008_v52, %v5925_v6  ;;  %v3635_v12 = vpack.c.bf16 %v476_v39, %v469_v26 }
  0xa4   : > { %6067 = vst [vmem:[#allocation35_spill] sm:$0xff] %v5058_v1  ;;  %v326_v14 = vld [vmem:[#allocation2] sm:$0xff]  ;;  %v6071_v47 = vand.u32 4294901760, %v4988_v18  ;;  %v6074_v19 = vand.u32 4294901760, %v4815_v21  ;;  %v6077_v39 = vand.u32 4294901760, %v5022_v51 }
  0xa5   : > { %6069 = vst [vmem:[#allocation36_spill] sm:$0xff] %v5063_v61  ;;  %3626 = vmatpush3.bf16.msra.mxu1 %v4941_v54  ;;  %v448_v6 = vand.u32 4294901760, %v447_v20  ;;  %v5084_v60 = vand.u32 4294901760, %v326_v14  ;;  %v327_v25 = vld [vmem:[#allocation2 + $0x8] sm:$0xff]  ;;  %v6076_v54 = vand.u32 4294901760, %v4833_v27 }
  0xa6   : > { %v489_v55 = vsub.f32 %v4988_v18, %v6071_v47  ;;  %3914 = vmatpush3.bf16.msra.mxu0 %v4967_v2  ;;  %3628 = vmatprep.subr.bf16.mxu1 %v5001_v9  ;;  %v5088_v26 = vand.u32 4294901760, %v327_v25  ;;  %v5094_v13 = vsub.f32 %v4815_v21, %v6074_v19  ;;  %v457_v38 = vsub.f32 %v5022_v51, %v6077_v39 }
  0xa7   : > { %6072 = vst [vmem:[#allocation37_spill] sm:$0xff] %v5084_v60  ;;  %3916 = vmatprep.subr.bf16.mxu0 %v5036_v3  ;;  %v5099_v20 = vsub.f32 %v4833_v27, %v6076_v54  ;;  %3005 = vmatprep.mubr.f32.mxu1 %v448_v6  ;;  %v5102_v7 = vsub.f32 %v326_v14, %v5084_v60  ;;  %v6078_v47 = vand.u32 4294901760, %v4817_v22  ;;  %v6080_v21 = vand.u32 4294901760, %v4835_v28 }
  0xa8   : > { %6073 = vst [vmem:[#allocation38_spill] sm:$0xff] %v5088_v26  ;;  %6075 = vst [vmem:[#allocation39_spill] sm:$0xff] %v5094_v13  ;;  %v5119_v27 = vsub.f32 %v327_v25, %v5088_v26  ;;  %v490_v54 = vand.u32 4294901760, %v489_v55  ;;  %v6082_v6 = vand.u32 4294901760, %v5028_v11  ;;  %v6083_v39 = vand.u32 4294901760, %v5068_v10 }
  0xa9   : > { %v5110_v24 = vsub.f32 %v4817_v22, %v6078_v47  ;;  %v5115_v19 = vsub.f32 %v4835_v28, %v6080_v21  ;;  %3630 = vmatpush3.bf16.msra.mxu1 %v5001_v9  ;;  %v5940_v28 = vand.u32 4294901760, %v5102_v7  ;;  %v6084_v55 = vand.u32 4294901760, %v4849_v33 }
  0xaa   : > { %6081 = vst [vmem:[#allocation41_spill] sm:$0xff] %v5119_v27  ;;  %v496_v14 = vsub.f32 %v5028_v11, %v6082_v6  ;;  %v503_v22 = vsub.f32 %v5068_v10, %v6083_v39  ;;  %3918 = vmatpush3.bf16.msra.mxu0 %v5036_v3  ;;  %3632 = vmatprep.subr.bf16.mxu1 %v5052_v62  ;;  %v6085_v6 = vand.u32 4294901760, %v5013_v59  ;;  %v6086_v39 = vand.u32 4294901760, %v5018_v45 }
  0xab   : > { %6079 = vst [vmem:[#allocation40_spill] sm:$0xff] %v5110_v24  ;;  %v5135_v21 = vsub.f32 %v4849_v33, %v6084_v55  ;;  %3920 = vmatprep.subr.bf16.mxu0 %v5058_v1  ;;  %3320 = vmatprep.mubr.f32.mxu0 %v5940_v28  ;;  %v458_v47 = vand.u32 4294901760, %v457_v38  ;;  %v6087_v33 = vand.u32 4294901760, %v4851_v34  ;;  %v3639_v16 = vpack.c.bf16 %v490_v54, %v483_v41 }
  0xac   : > { %v3923_v9 = vpack.c.bf16 %v6086_v39, %v6085_v6  ;;  %v6088_v6 = vand.u32 4294901760, %v5045_v15  ;;  %v6089_v39 = vand.u32 4294901760, %v5063_v61  ;;  %v497_v28 = vand.u32 4294901760, %v496_v14 }
  0xad   : > { %v5150_v55 = vsub.f32 %v4851_v34, %v6087_v33  ;;  %3634 = vmatpush3.bf16.msra.mxu1 %v5052_v62  ;;  %v504_v38 = vand.u32 4294901760, %v503_v22  ;;  %v6090_v25 = vand.u32 4294901760, %v5099_v20  ;;  %v6091_v33 = vand.u32 4294901760, %v5115_v19 }
  0xae   : > { %v3927_v51 = vpack.c.bf16 %v6089_v39, %v6088_v6  ;;  %3922 = vmatpush3.bf16.msra.mxu0 %v5058_v1  ;;  %3636 = vmatprep.subr.bf16.mxu1 %v3635_v12  ;;  %v6092_v61 = vand.u32 4294901760, %v4837_v29  ;;  %v6094_v22 = vand.u32 4294901760, %v4847_v32  ;;  %v6096_v54 = vand.u32 4294901760, %v4871_v42 }
  0xaf   : > { %v510_v34 = vsub.f32 %v5099_v20, %v6090_v25  ;;  %v517_v59 = vsub.f32 %v5115_v19, %v6091_v33  ;;  %3924 = vmatprep.subr.bf16.mxu0 %v3923_v9  ;;  %v6097_v6 = vand.u32 4294901760, %v4873_v43  ;;  %v6098_v33 = vand.u32 4294901760, %v5094_v13 }
  0xb0   : > { %v5169_v14 = vsub.f32 %v4837_v29, %v6092_v61  ;;  %v5174_v41 = vsub.f32 %v4847_v32, %v6094_v22  ;;  %v5179_v25 = vsub.f32 %v4871_v42, %v6096_v54  ;;  %3006 = vmatmul.mubr.f32.vlgmr.msra.gmra.mrb[0].mxu1 %v458_v47  ;;  %v6099_v29 = vand.u32 4294901760, %v5110_v24 }
  0xb1   : > { %v5184_v39 = vsub.f32 %v4873_v43, %v6097_v6  ;;  %v6100_v45 = vand.u32 4294901760, %v5135_v21  ;;  %3638 = vmatpush3.bf16.msra.mxu1 %v3635_v12  ;;  %v6101_v22 = vand.u32 4294901760, %v5119_v27  ;;  %v3643_v42 = vpack.c.bf16 %v504_v38, %v497_v28  ;;  %3040 = vmatprep.mubr.f32.mxu1 %v4993_v17 }
  0xb2   : > { %6093 = vst [vmem:[#allocation42_spill] sm:$0xff] %v5169_v14  ;;  %6095 = vst [vmem:[#allocation43_spill] sm:$0xff] %v5174_v41  ;;  %v3931_v61 = vpack.c.bf16 %v6099_v29, %v6098_v33  ;;  %v6102_v54 = vand.u32 4294901760, %v5150_v55  ;;  %v5948_v47 = vand.u32 4294901760, %v5179_v25  ;;  %3640 = vmatprep.subr.bf16.mxu1 %v3639_v16  ;;  %v511_v33 = vand.u32 4294901760, %v510_v34 }
  0xb3   : > { %v524_v32 = vsub.f32 %v5135_v21, %v6100_v45  ;;  %3321 = vmatmul.mubr.f32.vlgmr.msra.gmra.mrb[0].mxu0 %v6101_v22  ;;  %v5947_v6 = vand.u32 4294901760, %v5184_v39  ;;  %v518_v29 = vand.u32 4294901760, %v517_v59  ;;  %v6103_v24 = vand.u32 4294901760, %v4893_v53 }
  0xb4   : > { %v531_v43 = vsub.f32 %v5150_v55, %v6102_v54  ;;  %3926 = vmatpush3.bf16.msra.mxu0 %v3923_v9  ;;  %v6104_v12 = vand.u32 4294901760, %v4910_v57  ;;  %v5950_v38 = vand.u32 4294901760, %v5169_v14  ;;  %v5949_v22 = vand.u32 4294901760, %v5174_v41  ;;  %3355 = vmatprep.mubr.f32.mxu0 %v5084_v60 }
  0xb5   : > { %v5203_v45 = vsub.f32 %v4893_v53, %v6103_v24  ;;  %3928 = vmatprep.subr.bf16.mxu0 %v3927_v51  ;;  %v6105_v9 = vand.u32 4294901760, %v4856_v36  ;;  %v6107_v59 = vand.u32 4294901760, %v4858_v37  ;;  %v525_v53 = vand.u32 4294901760, %v524_v32  ;;  %3642 = vmatpush3.bf16.msra.mxu1 %v3639_v16 }
  0xb6   : > { %v5208_v28 = vsub.f32 %v4910_v57, %v6104_v12  ;;  %v6109_v57 = vand.u32 4294901760, %v4886_v49  ;;  %v532_v12 = vand.u32 4294901760, %v531_v43  ;;  %3644 = vmatprep.subr.bf16.mxu1 %v3643_v42  ;;  %v6113_v43 = vand.u32 4294901760, %v4954_v4 }
  0xb7   : > { %v5215_v34 = vsub.f32 %v4856_v36, %v6105_v9  ;;  %v5220_v24 = vsub.f32 %v4858_v37, %v6107_v59  ;;  %v538_v36 = vsub.f32 %v5179_v25, %v5948_v47  ;;  %v545_v37 = vsub.f32 %v5184_v39, %v5947_v6 }
  0xb8   : > { %v5226_v54 = vsub.f32 %v4886_v49, %v6109_v57  ;;  %v6111_v9 = vand.u32 4294901760, %v4888_v50  ;;  %3930 = vmatpush3.bf16.msra.mxu0 %v3927_v51  ;;  %v3647_v49 = vpack.c.bf16 %v518_v29, %v511_v33  ;;  %v5951_v59 = vand.u32 4294901760, %v5203_v45 }
  0xb9   : > { %6106 = vst [vmem:[#allocation44_spill] sm:$0xff] %v5215_v34  ;;  %6108 = vst [vmem:[#allocation45_spill] sm:$0xff] %v5220_v24  ;;  %v5245_v57 = vsub.f32 %v4954_v4, %v6113_v43  ;;  %3932 = vmatprep.subr.bf16.mxu0 %v3931_v61  ;;  %v3935_v6 = vpack.c.bf16 %v5949_v22, %v5950_v38  ;;  %v6114_v33 = vand.u32 4294901760, %v4969_v5  ;;  %3646 = vmatpush3.bf16.msra.mxu1 %v3643_v42 }
  0xba   : > { %6110 = vst [vmem:[#allocation46_spill] sm:$0xff] %v5226_v54  ;;  %v5238_v32 = vsub.f32 %v4888_v50, %v6111_v9  ;;  %v5952_v50 = vand.u32 4294901760, %v5215_v34  ;;  %v5954_v9 = vand.u32 4294901760, %v5226_v54  ;;  %v3651_v4 = vpack.c.bf16 %v532_v12, %v525_v53  ;;  %3648 = vmatprep.subr.bf16.mxu1 %v3647_v49  ;;  %v1747_v54 = vld [vmem:[#allocation9 + $0x168] sm:$0xff] }
  0xbb   : > { %v5256_v29 = vsub.f32 %v4969_v5, %v6114_v33  ;;  %v539_v43 = vand.u32 4294901760, %v538_v36  ;;  %v546_v47 = vand.u32 4294901760, %v545_v37  ;;  %v552_v22 = vsub.f32 %v5203_v45, %v5951_v59 }
  0xbc   : > { %6112 = vst [vmem:[#allocation47_spill] sm:$0xff] %v5238_v32  ;;  %v5953_v16 = vand.u32 4294901760, %v5238_v32  ;;  %3934 = vmatpush3.bf16.msra.mxu0 %v3931_v61  ;;  %v6115_v38 = vand.u32 4294901760, %v5208_v28  ;;  %v5955_v5 = vand.u32 4294901760, %v5245_v57  ;;  %v6116_v42 = vand.u32 4294901760, %v5220_v24 }
  0xbd   : > { %v572_v33 = vand.u32 4294901760, %v5256_v29  ;;  %3936 = vmatprep.subr.bf16.mxu0 %v3935_v6  ;;  %v6117_v61 = vand.u32 4294901760, %v4922_v63  ;;  %v6119_v36 = vand.u32 4294901760, %v4944_v48  ;;  %3650 = vmatpush3.bf16.msra.mxu1 %v3647_v49  ;;  %v6121_v49 = vand.u32 4294901760, %v4973_v35 }
  0xbe   : > { %v559_v51 = vsub.f32 %v5208_v28, %v6115_v38  ;;  %v3939_v53 = vpack.c.bf16 %v6116_v42, %v5952_v50  ;;  %v3655_v38 = vpack.c.bf16 %v546_v47, %v539_v43  ;;  %v3943_v59 = vpack.c.bf16 %v5953_v16, %v5954_v9  ;;  %3652 = vmatprep.subr.bf16.mxu1 %v3651_v4 }
  0xbf   : > { %v5275_v12 = vsub.f32 %v4922_v63, %v6117_v61  ;;  %v5280_v37 = vsub.f32 %v4944_v48, %v6119_v36  ;;  %v553_v42 = vand.u32 4294901760, %v552_v22  ;;  %v566_v63 = vsub.f32 %v5245_v57, %v5955_v5 }
  0xc0   : > { %3938 = vmatpush3.bf16.msra.mxu0 %v3935_v6  ;;  %v560_v50 = vand.u32 4294901760, %v559_v51  ;;  %v573_v61 = vsub.f32 %v5256_v29, %v572_v33  ;;  %v5295_v43 = vsub.f32 %v4973_v35, %v6121_v49  ;;  %v6123_v6 = vand.u32 4294901760, %v4975_v8 }
  0xc1   : > { %6118 = vst [vmem:[#allocation48_spill] sm:$0xff] %v5275_v12  ;;  %6120 = vst [vmem:[#allocation49_spill] sm:$0xff] %v5280_v37  ;;  %3940 = vmatprep.subr.bf16.mxu0 %v3939_v53  ;;  %v5959_v48 = vand.u32 4294901760, %v5275_v12  ;;  %v5956_v47 = vand.u32 4294901760, %v5280_v37  ;;  %3654 = vmatpush3.bf16.msra.mxu1 %v3651_v4  ;;  %v567_v36 = vand.u32 4294901760, %v566_v63  ;;  %v6125_v5 = vand.u32 4294901760, %v4934_v46 }
  0xc2   : > { %6122 = vst [vmem:[#allocation50_spill] sm:$0xff] %v5295_v43  ;;  %v5300_v22 = vsub.f32 %v4975_v8, %v6123_v6  ;;  %3656 = vmatprep.subr.bf16.mxu1 %v3655_v38  ;;  %v3659_v51 = vpack.c.bf16 %v560_v50, %v553_v42  ;;  %v574_v16 = vand.u32 4294901760, %v573_v61  ;;  %v5958_v35 = vand.u32 4294901760, %v5295_v43 }
  0xc3   : > { %v3947_v9 = vpack.c.bf16 %v5956_v47, %v5959_v48  ;;  %v6126_v8 = vand.u32 4294901760, %v4949_v58  ;;  %v6127_v50 = vand.u32 4294901760, %v4960_v0  ;;  %v6129_v61 = vand.u32 4294901760, %v5028_v11 }
  0xc4   : > { %6124 = vst [vmem:[#allocation51_spill] sm:$0xff] %v5300_v22  ;;  %3942 = vmatpush3.bf16.msra.mxu0 %v3939_v53  ;;  %v5957_v49 = vand.u32 4294901760, %v5300_v22  ;;  %v6128_v53 = vand.u32 4294901760, %v4988_v18  ;;  %v3663_v63 = vpack.c.bf16 %v574_v16, %v567_v36  ;;  %v6130_v6 = vand.u32 4294901760, %v5068_v10 }
  0xc5   : > { %3944 = vmatprep.subr.bf16.mxu0 %v3943_v59  ;;  %v5312_v4 = vpack.c.bf16 %v6126_v8, %v6125_v5  ;;  %3658 = vmatpush3.bf16.msra.mxu1 %v3655_v38  ;;  %v6131_v16 = vand.u32 4294901760, %v5099_v20  ;;  %v6132_v38 = vand.u32 4294901760, %v5115_v19  ;;  %v6133_v8 = vand.u32 4294901760, %v5135_v21 }
  0xc6   : > { %v5318_v42 = vpack.c.bf16 %v6128_v53, %v6127_v50  ;;  %3660 = vmatprep.subr.bf16.mxu1 %v3659_v51  ;;  %v5324_v47 = vpack.c.bf16 %v6130_v6, %v6129_v61  ;;  %v3951_v5 = vpack.c.bf16 %v5957_v49, %v5958_v35  ;;  %v6134_v50 = vand.u32 4294901760, %v5150_v55 }
  0xc7   : > { %v5336_v36 = vpack.c.bf16 %v6132_v38, %v6131_v16  ;;  %v6138_v61 = vand.u32 4294901760, %v5208_v28 }
  0xc8   : > { %3946 = vmatpush3.bf16.msra.mxu0 %v3943_v59  ;;  %v3667_v59 = vpack.c.bf16 %v4949_v58, %v4934_v46  ;;  %v5342_v53 = vpack.c.bf16 %v6134_v50, %v6133_v8  ;;  %v6135_v46 = vand.u32 4294901760, %v5179_v25  ;;  %v6136_v58 = vand.u32 4294901760, %v5184_v39  ;;  %v1736_v8 = vld [vmem:[#allocation9 + $0x110] sm:$0xff] }
  0xc9   : > { %3948 = vmatprep.subr.bf16.mxu0 %v3947_v9  ;;  %3662 = vmatpush3.bf16.msra.mxu1 %v3659_v51 }
  0xca   : > { %3664 = vmatprep.subr.bf16.mxu1 %v3663_v63  ;;  %v5351_v51 = vpack.c.bf16 %v6136_v58, %v6135_v46  ;;  %v1757_v46 = vand.u32 4294901760, %v1736_v8 }
  0xcc   : > { %3950 = vmatpush3.bf16.msra.mxu0 %v3947_v9  ;;  %v3671_v9 = vpack.c.bf16 %v4988_v18, %v4960_v0  ;;  %v3675_v18 = vpack.c.bf16 %v5068_v10, %v5028_v11  ;;  %v6139_v0 = vand.u32 4294901760, %v5245_v57  ;;  %v3683_v11 = vpack.c.bf16 %v5150_v55, %v5135_v21  ;;  %v1731_v10 = vld [vmem:[#allocation2 + $0x2] sm:$0xff] }
  0xcd   : > { %3952 = vmatprep.subr.bf16.mxu0 %v3951_v5  ;;  %3666 = vmatpush3.bf16.msra.mxu1 %v3663_v63  ;;  %v6137_v63 = vand.u32 4294901760, %v5203_v45  ;;  %v1734_v21 = vld [vmem:[#allocation9 + $0x100] sm:$0xff]  ;;  %v1735_v55 = vld [vmem:[#allocation9 + $0x108] sm:$0xff] }
  0xce   : > { %3668 = vmatprep.subr.bf16.mxu1 %v3667_v59  ;;  %v1754_v38 = vand.u32 4294901760, %v1735_v55 }
  0xcf   : > { %v5359_v6 = vpack.c.bf16 %v6138_v61, %v6137_v63  ;;  %v1739_v63 = vld [vmem:[#allocation9 + $0x128] sm:$0xff]  ;;  %v5405_v61 = vsub.f32 %v1736_v8, %v1757_v46 }
  0xd0   : > { %3954 = vmatpush3.bf16.msra.mxu0 %v3951_v5  ;;  %3041 = vmatmul.mubr.f32.vlgmr.msra.gmra.mrb[0].mxu1 %v5005_v31  ;;  %v5369_v5 = vpack.c.bf16 %v572_v33, %v6139_v0  ;;  %v3687_v33 = vpack.c.bf16 %v5184_v39, %v5179_v25  ;;  %v3695_v25 = vpack.c.bf16 %v5256_v29, %v5245_v57  ;;  %v1751_v39 = vand.u32 4294901760, %v1734_v21  ;;  %v1738_v29 = vld [vmem:[#allocation9 + $0x120] sm:$0xff]  ;;  %v6142_v8 = vld [vmem:[#allocation32_spill] sm:$0xff] }
  0xd1   : > { %3956 = vmatprep.subr.bf16.mxu0 %v4823_v23  ;;  %3670 = vmatpush3.bf16.msra.mxu1 %v3667_v59  ;;  %v3679_v59 = vpack.c.bf16 %v5115_v19, %v5099_v20  ;;  %v5383_v20 = vand.u32 4294901760, %v1731_v10  ;;  %v3691_v19 = vpack.c.bf16 %v5208_v28, %v5203_v45  ;;  %v1737_v45 = vld [vmem:[#allocation9 + $0x118] sm:$0xff] }
  0xd2   : > { %3672 = vmatprep.subr.bf16.mxu1 %v3671_v9  ;;  %3075 = vmatprep.mubr.f32.mxu1 %v5008_v52  ;;  %v5397_v50 = vsub.f32 %v1734_v21, %v1751_v39  ;;  %v1760_v58 = vand.u32 4294901760, %v1737_v45  ;;  %v5403_v57 = vpack.c.bf16 %v1754_v38, %v1751_v39  ;;  %v1740_v39 = vld [vmem:[#allocation9 + $0x130] sm:$0xff] }
  0xd3   : > { %3356 = vmatmul.mubr.f32.vlgmr.msra.gmra.mrb[0].mxu0 %v5088_v26  ;;  %v5390_v16 = vsub.f32 %v1731_v10, %v5383_v20  ;;  %v6140_v10 = vld [vmem:[#allocation19_spill] sm:$0xff] }
  0xd4   : > { %3958 = vmatpush3.bf16.msra.mxu0 %v4823_v23  ;;  %3390 = vmatprep.mubr.f32.mxu0 %v5084_v60  ;;  %v5962_v0 = vand.u32 4294901760, %v5397_v50 }
  0xd5   : > { %3960 = vmatprep.subr.bf16.mxu0 %v4844_v30  ;;  %3674 = vmatpush3.bf16.msra.mxu1 %v3671_v9  ;;  %v5960_v28 = vand.u32 4294901760, %v5390_v16  ;;  %v5399_v9 = vsub.f32 %v1735_v55, %v1754_v38  ;;  %v5423_v55 = vpack.c.bf16 %v1760_v58, %v1757_v46  ;;  %v1741_v38 = vld [vmem:[#allocation9 + $0x138] sm:$0xff]  ;;  %v6143_v46 = vld [vmem:[#allocation20_spill] sm:$0xff] }
  0xd6   : > { %3676 = vmatprep.subr.bf16.mxu1 %v3675_v18 }
  0xd8   : > { %3962 = vmatpush3.bf16.msra.mxu0 %v4844_v30 }
  0xd9   : > { %3964 = vmatprep.subr.bf16.mxu0 %v4880_v44  ;;  %3678 = vmatpush3.bf16.msra.mxu1 %v3675_v18  ;;  %v1834_v18 = vsub.f32 %v5390_v16, %v5960_v28  ;;  %v1772_v28 = vand.u32 4294901760, %v1741_v38 }
  0xda   : > { %3680 = vmatprep.subr.bf16.mxu1 %v3679_v59 }
  0xdb   : > { %v5451_v37 = vsub.f32 %v1741_v38, %v1772_v28  ;;  %v1745_v38 = vld [vmem:[#allocation9 + $0x158] sm:$0xff] }
  0xdc   : > { %3966 = vmatpush3.bf16.msra.mxu0 %v4880_v44 }
  0xdd   : > { %3968 = vmatprep.subr.bf16.mxu0 %v4908_v56  ;;  %3682 = vmatpush3.bf16.msra.mxu1 %v3679_v59  ;;  %v5961_v59 = vand.u32 4294901760, %v5399_v9  ;;  %v6170_v44 = vand.u32 4294901760, %v5451_v37 }
  0xde   : > { %3684 = vmatprep.subr.bf16.mxu1 %v3683_v11 }
  0xdf   : > { %v5420_v21 = vpack.c.bf16 %v5961_v59, %v5962_v0  ;;  %v1743_v59 = vld [vmem:[#allocation9 + $0x148] sm:$0xff]  ;;  %v6146_v0 = vand.u32 4294901760, %v5008_v52 }
  0xe0   : > { %3970 = vmatpush3.bf16.msra.mxu0 %v4908_v56 }
  0xe1   : > { %3972 = vmatprep.subr.bf16.mxu0 %v4928_v40  ;;  %3686 = vmatpush3.bf16.msra.mxu1 %v3683_v11  ;;  %v5412_v11 = vsub.f32 %v1737_v45, %v1760_v58  ;;  %6141 = vst [vmem:[#allocation19_spill] sm:$0xff] %v5420_v21  ;;  %v1835_v45 = vand.u32 4294901760, %v1834_v18  ;;  %v1769_v58 = vand.u32 4294901760, %v1740_v39 }
  0xe2   : > { %3688 = vmatprep.subr.bf16.mxu1 %v3687_v33 }
  0xe3   : > { %v5970_v49 = vand.u32 4294901760, %v5412_v11  ;;  %v5449_v43 = vsub.f32 %v1740_v39, %v1769_v58  ;;  %v1744_v39 = vld [vmem:[#allocation9 + $0x150] sm:$0xff] }
  0xe4   : > { %3974 = vmatpush3.bf16.msra.mxu0 %v4928_v40 }
  0xe5   : > { %3976 = vmatprep.subr.bf16.mxu0 %v4967_v2  ;;  %3690 = vmatpush3.bf16.msra.mxu1 %v3687_v33  ;;  %v1763_v33 = vand.u32 4294901760, %v1738_v29 }
  0xe6   : > { %3692 = vmatprep.subr.bf16.mxu1 %v3691_v19 }
  0xe7   : > { %v5428_v35 = vsub.f32 %v1738_v29, %v1763_v33 }
  0xe8   : > { %3978 = vmatpush3.bf16.msra.mxu0 %v4967_v2 }
  0xe9   : > { %3980 = vmatprep.subr.bf16.mxu0 %v5036_v3  ;;  %3694 = vmatpush3.bf16.msra.mxu1 %v3691_v19  ;;  %v1766_v19 = vand.u32 4294901760, %v1739_v63 }
  0xea   : > { %3696 = vmatprep.subr.bf16.mxu1 %v3695_v25 }
  0xeb   : > { %v5430_v48 = vsub.f32 %v1739_v63, %v1766_v19  ;;  %v5443_v29 = vpack.c.bf16 %v1766_v19, %v1763_v33  ;;  %v1742_v63 = vld [vmem:[#allocation9 + $0x140] sm:$0xff]  ;;  %v6147_v33 = vld [vmem:[#allocation21_spill] sm:$0xff] }
  0xec   : > { %3982 = vmatpush3.bf16.msra.mxu0 %v5036_v3  ;;  %v1775_v19 = vand.u32 4294901760, %v1742_v63 }
  0xed   : > { %3984 = vmatprep.subr.bf16.mxu0 %v5058_v1  ;;  %3698 = vmatpush3.bf16.msra.mxu1 %v3695_v25  ;;  %v5971_v25 = vand.u32 4294901760, %v5405_v61  ;;  %6145 = vst [vmem:[#allocation20_spill] sm:$0xff] %v5443_v29  ;;  %v5976_v22 = vand.u32 4294901760, %v5430_v48 }
  0xee   : > { %3700 = vmatprep.subr.bf16.mxu1 %v6140_v10  ;;  %v5467_v12 = vsub.f32 %v1742_v63, %v1775_v19 }
  0xef   : > { %v5440_v18 = vpack.c.bf16 %v5970_v49, %v5971_v25  ;;  %v1778_v49 = vand.u32 4294901760, %v1743_v59  ;;  %v5988_v25 = vand.u32 4294901760, %v5451_v37 }
  0xf0   : > { %3986 = vmatpush3.bf16.msra.mxu0 %v5058_v1  ;;  %3076 = vmatmul.mubr.f32.vlgmr.msra.gmra.mrb[0].mxu1 %v6142_v8  ;;  %v6002_v60 = vand.u32 4294901760, %v5467_v12 }
  0xf1   : > { %3988 = vmatprep.subr.bf16.mxu0 %v5403_v57  ;;  %3702 = vmatpush3.bf16.msra.mxu1 %v6140_v10  ;;  %6144 = vst [vmem:[#allocation32_spill] sm:$0xff] %v5440_v18  ;;  %v5469_v32 = vsub.f32 %v1743_v59, %v1778_v49  ;;  %v5481_v63 = vpack.c.bf16 %v1778_v49, %v1775_v19  ;;  %v1746_v59 = vld [vmem:[#allocation9 + $0x160] sm:$0xff]  ;;  %v1790_v19 = vand.u32 4294901760, %v1747_v54 }
  0xf2   : > { %3704 = vmatprep.subr.bf16.mxu1 %v6143_v46  ;;  %3110 = vmatprep.mubr.f32.mxu1 %v6146_v0  ;;  %v5463_v0 = vpack.c.bf16 %v1772_v28, %v1769_v58  ;;  %v1732_v28 = vld [vmem:[#allocation2 + $0xa] sm:$0xff]  ;;  %v1787_v49 = vand.u32 4294901760, %v1746_v59 }
  0xf3   : > { %3391 = vmatmul.mubr.f32.vlgmr.msra.gmra.mrb[0].mxu0 %v5088_v26  ;;  %v5977_v26 = vand.u32 4294901760, %v5428_v35  ;;  %6152 = vst [vmem:[#allocation53_spill] sm:$0xff] %v5481_v63  ;;  %v6001_v18 = vand.u32 4294901760, %v5469_v32  ;;  %v5490_v21 = vand.u32 4294901760, %v1732_v28  ;;  %v5507_v13 = vsub.f32 %v1747_v54, %v1790_v19 }
  0xf4   : > { %3990 = vmatpush3.bf16.msra.mxu0 %v5403_v57  ;;  %3425 = vmatprep.mubr.f32.mxu0 %v1835_v45  ;;  %6149 = vst [vmem:[#allocation52_spill] sm:$0xff] %v5463_v0  ;;  %v5989_v45 = vand.u32 4294901760, %v5449_v43  ;;  %v5505_v1 = vsub.f32 %v1746_v59, %v1787_v49  ;;  %v5522_v54 = vpack.c.bf16 %v1790_v19, %v1787_v49  ;;  %v6159_v59 = vand.u32 4294901760, %v5397_v50  ;;  %v6161_v19 = vld [vmem:[#allocation29_spill] sm:$0xff] }
  0xf5   : > { %3992 = vmatprep.subr.bf16.mxu0 %v5423_v55  ;;  %3706 = vmatpush3.bf16.msra.mxu1 %v6143_v46  ;;  %v5460_v52 = vpack.c.bf16 %v5976_v22, %v5977_v26  ;;  %v6150_v22 = vld [vmem:[#allocation23_spill] sm:$0xff]  ;;  %v1781_v26 = vand.u32 4294901760, %v1744_v39  ;;  %v5511_v27 = vsub.f32 %v1732_v28, %v5490_v21  ;;  %v6017_v2 = vand.u32 4294901760, %v5507_v13 }
  0xf6   : > { %3708 = vmatprep.subr.bf16.mxu1 %v6147_v33  ;;  %v5478_v58 = vpack.c.bf16 %v5988_v25, %v5989_v45  ;;  %v6153_v25 = vld [vmem:[#allocation25_spill] sm:$0xff]  ;;  %v5498_v45 = vpack.c.bf16 %v6001_v18, %v6002_v60  ;;  %v6156_v18 = vld [vmem:[#allocation27_spill] sm:$0xff]  ;;  %6158 = vst [vmem:[#allocation55_spill] sm:$0xff] %v5522_v54  ;;  %v1855_v28 = vsub.f32 %v5397_v50, %v6159_v59  ;;  %v6018_v3 = vand.u32 4294901760, %v5505_v1 }
  0xf7   : > { %6148 = vst [vmem:[#allocation21_spill] sm:$0xff] %v5460_v52  ;;  %v1784_v52 = vand.u32 4294901760, %v1745_v38  ;;  %v5485_v24 = vsub.f32 %v1744_v39, %v1781_v26 }
  0xf8   : > { %3994 = vmatpush3.bf16.msra.mxu0 %v5423_v55  ;;  %6151 = vst [vmem:[#allocation23_spill] sm:$0xff] %v5478_v58  ;;  %6154 = vst [vmem:[#allocation25_spill] sm:$0xff] %v5498_v45  ;;  %v1749_v58 = vld [vmem:[#allocation9 + $0x178] sm:$0xff]  ;;  %v6160_v45 = vand.u32 4294901760, %v5399_v9 }
  0xf9   : > { %3996 = vmatprep.subr.bf16.mxu0 %v5443_v29  ;;  %3710 = vmatpush3.bf16.msra.mxu1 %v6147_v33  ;;  %v5487_v34 = vsub.f32 %v1745_v38, %v1784_v52  ;;  %v5501_v39 = vpack.c.bf16 %v1784_v52, %v1781_v26  ;;  %v1748_v38 = vld [vmem:[#allocation9 + $0x170] sm:$0xff]  ;;  %v6013_v41 = vand.u32 4294901760, %v5485_v24  ;;  %v1796_v52 = vand.u32 4294901760, %v1749_v58 }
  0xfa   : > { %3712 = vmatprep.subr.bf16.mxu1 %v6150_v22  ;;  %v1793_v26 = vand.u32 4294901760, %v1748_v38  ;;  %v1862_v15 = vsub.f32 %v5399_v9, %v6160_v45  ;;  %v5546_v45 = vpack.c.bf16 %v6017_v2, %v6018_v3  ;;  %v6165_v2 = vand.u32 4294901760, %v5511_v27 }
  0xfb   : > { %6155 = vst [vmem:[#allocation54_spill] sm:$0xff] %v5501_v39  ;;  %v6012_v14 = vand.u32 4294901760, %v5487_v34 }
  0xfc   : > { %3998 = vmatpush3.bf16.msra.mxu0 %v5443_v29  ;;  %v5540_v59 = vpack.c.bf16 %v1796_v52, %v1793_v26  ;;  %6162 = vst [vmem:[#allocation29_spill] sm:$0xff] %v5546_v45  ;;  %v1844_v3 = vsub.f32 %v5511_v27, %v6165_v2 }
  0xfd   : > { %4000 = vmatprep.subr.bf16.mxu0 %v5463_v0  ;;  %3714 = vmatpush3.bf16.msra.mxu1 %v6150_v22  ;;  %v5519_v60 = vpack.c.bf16 %v6012_v14, %v6013_v41  ;;  %v5534_v14 = vsub.f32 %v1749_v58, %v1796_v52  ;;  %v1856_v58 = vand.u32 4294901760, %v1855_v28  ;;  %v6163_v41 = vand.u32 4294901760, %v5405_v61 }
  0xfe   : > { %3716 = vmatprep.subr.bf16.mxu1 %v6153_v25  ;;  %v1845_v2 = vand.u32 4294901760, %v1844_v3 }
  0xff   : > { %6157 = vst [vmem:[#allocation27_spill] sm:$0xff] %v5519_v60  ;;  %v1869_v49 = vsub.f32 %v5405_v61, %v6163_v41  ;;  %v6164_v60 = vand.u32 4294901760, %v5412_v11  ;;  %v1959_v52 = vand.u32 4294901760, %v5534_v14 }
 0x100   : > { %4002 = vmatpush3.bf16.msra.mxu0 %v5463_v0 }
 0x101   : > { %4004 = vmatprep.subr.bf16.mxu0 %v5481_v63  ;;  %3718 = vmatpush3.bf16.msra.mxu1 %v6153_v25  ;;  %v1870_v0 = vand.u32 4294901760, %v1869_v49  ;;  %v1904_v49 = vsub.f32 %v5451_v37, %v6170_v44 }
 0x102   : > { %3720 = vmatprep.subr.bf16.mxu1 %v6156_v18 }
 0x104   : > { %4006 = vmatpush3.bf16.msra.mxu0 %v5481_v63  ;;  %v5532_v63 = vsub.f32 %v1748_v38, %v1793_v26  ;;  %v1863_v38 = vand.u32 4294901760, %v1862_v15  ;;  %v6166_v15 = vand.u32 4294901760, %v5428_v35 }
 0x105   : > { %4008 = vmatprep.subr.bf16.mxu0 %v5501_v39  ;;  %3722 = vmatpush3.bf16.msra.mxu1 %v6156_v18 }
 0x106   : > { %3724 = vmatprep.subr.bf16.mxu1 %v6161_v19  ;;  %v1952_v26 = vand.u32 4294901760, %v5532_v63  ;;  %v1883_v41 = vsub.f32 %v5428_v35, %v6166_v15  ;;  %v4019_v40 = vpack.c.bf16 %v1863_v38, %v1856_v58  ;;  %v6172_v58 = vand.u32 4294901760, %v5467_v12 }
 0x108   : > { %4010 = vmatpush3.bf16.msra.mxu0 %v5501_v39  ;;  %v1876_v39 = vsub.f32 %v5412_v11, %v6164_v60  ;;  %v6167_v60 = vand.u32 4294901760, %v5430_v48  ;;  %v5569_v45 = vpack.c.bf16 %v1959_v52, %v1952_v26  ;;  %v1911_v38 = vsub.f32 %v5467_v12, %v6172_v58 }
 0x109   : > { %4012 = vmatprep.subr.bf16.mxu0 %v5522_v54  ;;  %3726 = vmatpush3.bf16.msra.mxu1 %v6161_v19 }
 0x10a   : > { %3728 = vmatprep.subr.bf16.mxu1 %v5052_v62  ;;  %v1890_v28 = vsub.f32 %v5430_v48, %v6167_v60  ;;  %6168 = vst [vmem:[#allocation56_spill] sm:$0xff] %v5569_v45  ;;  %v1877_v56 = vand.u32 4294901760, %v1876_v39  ;;  %v6169_v60 = vand.u32 4294901760, %v5449_v43  ;;  %v6171_v39 = vand.u32 4294901760, %v6142_v8 }
 0x10b   : > { %v6175_v8 = vand.u32 4294901760, %v5487_v34 }
 0x10c   : > { %4014 = vmatpush3.bf16.msra.mxu0 %v5522_v54  ;;  %v1884_v54 = vand.u32 4294901760, %v1883_v41  ;;  %v1891_v15 = vand.u32 4294901760, %v1890_v28  ;;  %v4023_v29 = vpack.c.bf16 %v1877_v56, %v1870_v0  ;;  %v1897_v45 = vsub.f32 %v5449_v43, %v6169_v60 }
 0x10d   : > { %4016 = vmatprep.subr.bf16.mxu0 %v5540_v59  ;;  %3730 = vmatpush3.bf16.msra.mxu1 %v5052_v62  ;;  %v1905_v0 = vand.u32 4294901760, %v1904_v49  ;;  %v6173_v41 = vand.u32 4294901760, %v5469_v32  ;;  %v1912_v28 = vand.u32 4294901760, %v1911_v38  ;;  %v6176_v60 = vand.u32 4294901760, %v5505_v1 }
 0x10e   : > { %3732 = vmatprep.subr.bf16.mxu1 %v5312_v4  ;;  %v4027_v3 = vpack.c.bf16 %v1891_v15, %v1884_v54  ;;  %v1898_v56 = vand.u32 4294901760, %v1897_v45  ;;  %v1932_v54 = vsub.f32 %v5487_v34, %v6175_v8  ;;  %v1960_v38 = vsub.f32 %v5534_v14, %v1959_v52  ;;  %v6198_v8 = vld [vmem:[#allocation41_spill] sm:$0xff] }
 0x10f   : > { %v1918_v44 = vsub.f32 %v5469_v32, %v6173_v41  ;;  %v1939_v49 = vsub.f32 %v5505_v1, %v6176_v60 }
 0x110   : > { %4018 = vmatpush3.bf16.msra.mxu0 %v5540_v59  ;;  %3111 = vmatmul.mubr.f32.vlgmr.msra.gmra.mrb[0].mxu1 %v6171_v39  ;;  %v4031_v45 = vpack.c.bf16 %v1905_v0, %v1898_v56  ;;  %v6177_v39 = vand.u32 4294901760, %v5507_v13  ;;  %v1953_v0 = vsub.f32 %v5532_v63, %v1952_v26 }
 0x111   : > { %4020 = vmatprep.subr.bf16.mxu0 %v4019_v40  ;;  %3734 = vmatpush3.bf16.msra.mxu1 %v5312_v4 }
 0x112   : > { %3736 = vmatprep.subr.bf16.mxu1 %v5318_v42  ;;  %3145 = vmatprep.mubr.f32.mxu1 %v4993_v17  ;;  %v1946_v58 = vsub.f32 %v5507_v13, %v6177_v39 }
 0x113   : > { %3426 = vmatmul.mubr.f32.vlgmr.msra.gmra.mrb[0].mxu0 %v1845_v2  ;;  %v1919_v2 = vand.u32 4294901760, %v1918_v44  ;;  %v1954_v44 = vand.u32 4294901760, %v1953_v0 }
 0x114   : > { %4022 = vmatpush3.bf16.msra.mxu0 %v4019_v40  ;;  %3460 = vmatprep.mubr.f32.mxu0 %v5383_v20  ;;  %v6174_v40 = vand.u32 4294901760, %v5485_v24  ;;  %v1947_v56 = vand.u32 4294901760, %v1946_v58 }
 0x115   : > { %4024 = vmatprep.subr.bf16.mxu0 %v4023_v29  ;;  %3738 = vmatpush3.bf16.msra.mxu1 %v5318_v42  ;;  %v4035_v15 = vpack.c.bf16 %v1919_v2, %v1912_v28  ;;  %v6200_v28 = vld [vmem:[#allocation39_spill] sm:$0xff] }
 0x116   : > { %3740 = vmatprep.subr.bf16.mxu1 %v5324_v47  ;;  %v1925_v4 = vsub.f32 %v5485_v24, %v6174_v40  ;;  %v6201_v2 = vand.u32 4294901760, %v6200_v28 }
 0x118   : > { %4026 = vmatpush3.bf16.msra.mxu0 %v4023_v29  ;;  %v1926_v42 = vand.u32 4294901760, %v1925_v4  ;;  %v1933_v29 = vand.u32 4294901760, %v1932_v54  ;;  %v6197_v4 = vld [vmem:[#allocation55_spill] sm:$0xff]  ;;  %v6199_v54 = vand.u32 4294901760, %v6198_v8 }
 0x119   : > { %4028 = vmatprep.subr.bf16.mxu0 %v4027_v3  ;;  %3742 = vmatpush3.bf16.msra.mxu1 %v5324_v47 }
 0x11a   : > { %3744 = vmatprep.subr.bf16.mxu1 %v5336_v36  ;;  %v4039_v47 = vpack.c.bf16 %v1933_v29, %v1926_v42  ;;  %v1180_v42 = vsub.f32 %v6200_v28, %v6201_v2  ;;  %v6202_v29 = vld [vmem:[#allocation40_spill] sm:$0xff] }
 0x11c   : > { %4030 = vmatpush3.bf16.msra.mxu0 %v4027_v3  ;;  %v1940_v3 = vand.u32 4294901760, %v1939_v49  ;;  %v6204_v49 = vld [vmem:[#allocation35_spill] sm:$0xff] }
 0x11d   : > { %4032 = vmatprep.subr.bf16.mxu0 %v4031_v45  ;;  %3746 = vmatpush3.bf16.msra.mxu1 %v5336_v36  ;;  %v1961_v36 = vand.u32 4294901760, %v1960_v38 }
 0x11e   : > { %3748 = vmatprep.subr.bf16.mxu1 %v5342_v53  ;;  %v4043_v41 = vpack.c.bf16 %v1947_v56, %v1940_v3  ;;  %v1181_v56 = vand.u32 4294901760, %v1180_v42  ;;  %v6224_v42 = vld [vmem:[#allocation49_spill] sm:$0xff] }
 0x11f   : > { %v4047_v40 = vpack.c.bf16 %v1961_v36, %v1954_v44 }
 0x120   : > { %4034 = vmatpush3.bf16.msra.mxu0 %v4031_v45  ;;  %v1141_v45 = vsub.f32 %v6198_v8, %v6199_v54  ;;  %v6222_v54 = vld [vmem:[#allocation48_spill] sm:$0xff] }
 0x121   : > { %4036 = vmatprep.subr.bf16.mxu0 %v4035_v15  ;;  %3750 = vmatpush3.bf16.msra.mxu1 %v5342_v53  ;;  %v4051_v53 = vpack.c.bf16 %v5399_v9, %v5397_v50  ;;  %v6189_v50 = vld [vmem:[#allocation31_spill] sm:$0xff] }
 0x122   : > { %3752 = vmatprep.subr.bf16.mxu1 %v5351_v51  ;;  %v6190_v9 = vand.u32 4294901760, %v6189_v50  ;;  %v1142_v3 = vand.u32 4294901760, %v1141_v45  ;;  %v6223_v45 = vand.u32 4294901760, %v6222_v54 }
 0x124   : > { %4038 = vmatpush3.bf16.msra.mxu0 %v4035_v15  ;;  %v6203_v15 = vand.u32 4294901760, %v6202_v29  ;;  %v1236_v2 = vsub.f32 %v6222_v54, %v6223_v45 }
 0x125   : > { %4040 = vmatprep.subr.bf16.mxu0 %v4039_v47  ;;  %3754 = vmatpush3.bf16.msra.mxu1 %v5351_v51  ;;  %v4055_v51 = vpack.c.bf16 %v5412_v11, %v5405_v61  ;;  %v1159_v61 = vsub.f32 %v6189_v50, %v6190_v9  ;;  %v6191_v11 = vld [vmem:[#allocation54_spill] sm:$0xff] }
 0x126   : > { %3756 = vmatprep.subr.bf16.mxu1 %v5359_v6  ;;  %v1187_v60 = vsub.f32 %v6202_v29, %v6203_v15  ;;  %v6225_v15 = vand.u32 4294901760, %v6224_v42 }
 0x128   : > { %4042 = vmatpush3.bf16.msra.mxu0 %v4039_v47  ;;  %v1188_v0 = vand.u32 4294901760, %v1187_v60  ;;  %v1243_v60 = vsub.f32 %v6224_v42, %v6225_v15 }
 0x129   : > { %4044 = vmatprep.subr.bf16.mxu0 %v4043_v41  ;;  %3758 = vmatpush3.bf16.msra.mxu1 %v5359_v6  ;;  %v4059_v6 = vpack.c.bf16 %v5430_v48, %v5428_v35  ;;  %v4071_v48 = vpack.c.bf16 %v5487_v34, %v5485_v24  ;;  %v6178_v34 = vand.u32 4294901760, %v5102_v7 }
 0x12a   : > { %3760 = vmatprep.subr.bf16.mxu1 %v5369_v5 }
 0x12b   : > { %v1131_v24 = vsub.f32 %v5102_v7, %v6178_v34 }
 0x12c   : > { %4046 = vmatpush3.bf16.msra.mxu0 %v4043_v41  ;;  %v6205_v41 = vld [vmem:[#allocation42_spill] sm:$0xff] }
 0x12d   : > { %4048 = vmatprep.subr.bf16.mxu0 %v4047_v40  ;;  %3762 = vmatpush3.bf16.msra.mxu1 %v5369_v5  ;;  %v4063_v5 = vpack.c.bf16 %v5451_v37, %v5449_v43  ;;  %v4075_v37 = vpack.c.bf16 %v5507_v13, %v5505_v1  ;;  %v1132_v1 = vand.u32 4294901760, %v1131_v24  ;;  %v6180_v13 = vld [vmem:[#allocation22_spill] sm:$0xff]  ;;  %v6186_v43 = vld [vmem:[#allocation28_spill] sm:$0xff]  ;;  %v6206_v44 = vand.u32 4294901760, %v6205_v41 }
 0x12e   : > { %3764 = vmatprep.subr.bf16.mxu1 %v6140_v10 }
 0x12f   : > { %v1194_v36 = vsub.f32 %v6205_v41, %v6206_v44 }
 0x130   : > { %4050 = vmatpush3.bf16.msra.mxu0 %v4047_v40  ;;  %3146 = vmatmul.mubr.f32.vlgmr.msra.gmra.mrb[0].mxu1 %v5005_v31  ;;  %v6207_v40 = vld [vmem:[#allocation43_spill] sm:$0xff] }
 0x131   : > { %4052 = vmatprep.subr.bf16.mxu0 %v4051_v53  ;;  %3766 = vmatpush3.bf16.msra.mxu1 %v6140_v10  ;;  %v6192_v10 = vld [vmem:[#allocation33_spill] sm:$0xff] }
 0x132   : > { %3768 = vmatprep.subr.bf16.mxu1 %v6143_v46  ;;  %3180 = vmatprep.mubr.f32.mxu1 %v4993_v17  ;;  %v4067_v17 = vpack.c.bf16 %v5469_v32, %v5467_v12  ;;  %v4079_v32 = vpack.c.bf16 %v5534_v14, %v5532_v63  ;;  %v6183_v14 = vld [vmem:[#allocation52_spill] sm:$0xff]  ;;  %v6184_v12 = vld [vmem:[#allocation26_spill] sm:$0xff] }
 0x133   : > { %3461 = vmatmul.mubr.f32.vlgmr.msra.gmra.mrb[0].mxu0 %v5490_v21 }
 0x134   : > { %4054 = vmatpush3.bf16.msra.mxu0 %v4051_v53  ;;  %3495 = vmatprep.mubr.f32.mxu0 %v5390_v16  ;;  %v6208_v53 = vand.u32 4294901760, %v6207_v40 }
 0x135   : > { %4056 = vmatprep.subr.bf16.mxu0 %v4055_v51  ;;  %3770 = vmatpush3.bf16.msra.mxu1 %v6143_v46  ;;  %v1160_v46 = vand.u32 4294901760, %v1159_v61 }
 0x136   : > { %3772 = vmatprep.subr.bf16.mxu1 %v6147_v33 }
 0x138   : > { %4058 = vmatpush3.bf16.msra.mxu0 %v4055_v51  ;;  %v1201_v51 = vsub.f32 %v6207_v40, %v6208_v53  ;;  %v6231_v53 = vld [vmem:[#allocation25_spill] sm:$0xff] }
 0x139   : > { %4060 = vmatprep.subr.bf16.mxu0 %v4059_v6  ;;  %3774 = vmatpush3.bf16.msra.mxu1 %v6147_v33 }
 0x13a   : > { %3776 = vmatprep.subr.bf16.mxu1 %v6150_v22 }
 0x13c   : > { %4062 = vmatpush3.bf16.msra.mxu0 %v4059_v6  ;;  %v6209_v6 = vld [vmem:[#allocation19_spill] sm:$0xff] }
 0x13d   : > { %4064 = vmatprep.subr.bf16.mxu0 %v4063_v5  ;;  %3778 = vmatpush3.bf16.msra.mxu1 %v6150_v22  ;;  %v6187_v22 = vld [vmem:[#allocation30_spill] sm:$0xff] }
 0x13e   : > { %3780 = vmatprep.subr.bf16.mxu1 %v6153_v25  ;;  %v6188_v35 = vand.u32 4294901760, %v6187_v22 }
 0x140   : > { %4066 = vmatpush3.bf16.msra.mxu0 %v4063_v5  ;;  %v6210_v5 = vand.u32 4294901760, %v5511_v27 }
 0x141   : > { %4068 = vmatprep.subr.bf16.mxu0 %v4067_v17  ;;  %3782 = vmatpush3.bf16.msra.mxu1 %v6153_v25 }
 0x142   : > { %3784 = vmatprep.subr.bf16.mxu1 %v6156_v18 }
 0x144   : > { %4070 = vmatpush3.bf16.msra.mxu0 %v4067_v17  ;;  %v3835_v17 = vpack.c.bf16 %v1188_v0, %v1181_v56 }
 0x145   : > { %4072 = vmatprep.subr.bf16.mxu0 %v4071_v48  ;;  %3786 = vmatpush3.bf16.msra.mxu1 %v6156_v18  ;;  %v6193_v18 = vld [vmem:[#allocation34_spill] sm:$0xff] }
 0x146   : > { %3788 = vmatprep.subr.bf16.mxu1 %v6161_v19  ;;  %v6194_v33 = vand.u32 4294901760, %v6193_v18 }
 0x148   : > { %4074 = vmatpush3.bf16.msra.mxu0 %v4071_v48  ;;  %v1166_v63 = vsub.f32 %v6193_v18, %v6194_v33  ;;  %v1195_v48 = vand.u32 4294901760, %v1194_v36  ;;  %v6221_v33 = vld [vmem:[#allocation21_spill] sm:$0xff] }
 0x149   : > { %4076 = vmatprep.subr.bf16.mxu0 %v4075_v37  ;;  %3790 = vmatpush3.bf16.msra.mxu1 %v6161_v19  ;;  %v6195_v19 = vld [vmem:[#allocation36_spill] sm:$0xff] }
 0x14a   : > { %3792 = vmatprep.subr.bf16.mxu1 %v5052_v62  ;;  %v6196_v26 = vand.u32 4294901760, %v6195_v19  ;;  %v1167_v58 = vand.u32 4294901760, %v1166_v63 }
 0x14c   : > { %4078 = vmatpush3.bf16.msra.mxu0 %v4075_v37  ;;  %v1173_v52 = vsub.f32 %v6195_v19, %v6196_v26  ;;  %v1202_v37 = vand.u32 4294901760, %v1201_v51 }
 0x14d   : > { %4080 = vmatprep.subr.bf16.mxu0 %v4079_v32  ;;  %3794 = vmatpush3.bf16.msra.mxu1 %v5052_v62  ;;  %v6179_v62 = vand.u32 4294901760, %v5390_v16  ;;  %v1152_v16 = vsub.f32 %v6187_v22, %v6188_v35 }
 0x14e   : > { %3796 = vmatprep.subr.bf16.mxu1 %v4823_v23  ;;  %v1174_v47 = vand.u32 4294901760, %v1173_v52 }
 0x14f   : > { %v1153_v25 = vand.u32 4294901760, %v1152_v16  ;;  %v6219_v16 = vld [vmem:[#allocation47_spill] sm:$0xff] }
 0x150   : > { %4082 = vmatpush3.bf16.msra.mxu0 %v4079_v32  ;;  %3181 = vmatmul.mubr.f32.vlgmr.msra.gmra.mrb[0].mxu1 %v5005_v31  ;;  %v6181_v31 = vld [vmem:[#allocation20_spill] sm:$0xff]  ;;  %v3831_v38 = vpack.c.bf16 %v1174_v47, %v1167_v58  ;;  %v6220_v9 = vand.u32 4294901760, %v6219_v16  ;;  %v1237_v58 = vand.u32 4294901760, %v1236_v2  ;;  %v1244_v47 = vand.u32 4294901760, %v1243_v60 }
 0x151   : > { %4084 = vmatprep.subr.bf16.mxu0 %v5403_v57  ;;  %3798 = vmatpush3.bf16.msra.mxu1 %v4823_v23  ;;  %v6182_v23 = vld [vmem:[#allocation24_spill] sm:$0xff]  ;;  %v3827_v39 = vpack.c.bf16 %v1160_v46, %v1153_v25 }
 0x152   : > { %3800 = vmatprep.subr.bf16.mxu1 %v4844_v30  ;;  %3215 = vmatprep.mubr.f32.mxu1 %v1132_v1  ;;  %v6211_v32 = vld [vmem:[#allocation44_spill] sm:$0xff]  ;;  %v6213_v1 = vld [vmem:[#allocation45_spill] sm:$0xff]  ;;  %v1229_v61 = vsub.f32 %v6219_v16, %v6220_v9  ;;  %v3851_v51 = vpack.c.bf16 %v1244_v47, %v1237_v58 }
 0x153   : > { %3496 = vmatmul.mubr.f32.vlgmr.msra.gmra.mrb[0].mxu0 %v5511_v27  ;;  %v6212_v34 = vand.u32 4294901760, %v6211_v32  ;;  %v6217_v27 = vld [vmem:[#allocation46_spill] sm:$0xff] }
 0x154   : > { %4086 = vmatpush3.bf16.msra.mxu0 %v5403_v57  ;;  %3530 = vmatprep.mubr.f32.mxu0 %v6179_v62  ;;  %v6214_v62 = vand.u32 4294901760, %v6213_v1  ;;  %v1230_v26 = vand.u32 4294901760, %v1229_v61 }
 0x155   : > { %4088 = vmatprep.subr.bf16.mxu0 %v5423_v55  ;;  %3802 = vmatpush3.bf16.msra.mxu1 %v4844_v30  ;;  %v6185_v30 = vld [vmem:[#allocation53_spill] sm:$0xff]  ;;  %v1208_v24 = vsub.f32 %v6211_v32, %v6212_v34  ;;  %v3859_v34 = vpack.c.bf16 %v6189_v50, %v6187_v22  ;;  %v3867_v22 = vpack.c.bf16 %v6202_v29, %v6200_v28 }
 0x156   : > { %3804 = vmatprep.subr.bf16.mxu1 %v6180_v13  ;;  %v3871_v50 = vpack.c.bf16 %v6207_v40, %v6205_v41 }
 0x157   : > { %v1209_v25 = vand.u32 4294901760, %v1208_v24  ;;  %v6234_v24 = vld [vmem:[#allocation56_spill] sm:$0xff] }
 0x158   : > { %4090 = vmatpush3.bf16.msra.mxu0 %v5423_v55 }
 0x159   : > { %4092 = vmatprep.subr.bf16.mxu0 %v6181_v31  ;;  %3806 = vmatpush3.bf16.msra.mxu1 %v6180_v13  ;;  %v1215_v13 = vsub.f32 %v6213_v1, %v6214_v62  ;;  %v3863_v62 = vpack.c.bf16 %v6195_v19, %v6193_v18 }
 0x15a   : > { %3808 = vmatprep.subr.bf16.mxu1 %v6182_v23 }
 0x15b   : > { %v1216_v46 = vand.u32 4294901760, %v1215_v13  ;;  %v6235_v13 = vld [vmem:[#allocation38_spill] sm:$0xff] }
 0x15c   : > { %4094 = vmatpush3.bf16.msra.mxu0 %v6181_v31 }
 0x15d   : > { %4096 = vmatprep.subr.bf16.mxu0 %v6183_v14  ;;  %3810 = vmatpush3.bf16.msra.mxu1 %v6182_v23  ;;  %v6215_v23 = vld [vmem:[#allocation32_spill] sm:$0xff]  ;;  %v3843_v52 = vpack.c.bf16 %v1216_v46, %v1209_v25 }
 0x15e   : > { %3812 = vmatprep.subr.bf16.mxu1 %v6184_v12 }
 0x160   : > { %4098 = vmatpush3.bf16.msra.mxu0 %v6183_v14 }
 0x161   : > { %4100 = vmatprep.subr.bf16.mxu0 %v6185_v30  ;;  %3814 = vmatpush3.bf16.msra.mxu1 %v6184_v12  ;;  %v6216_v12 = vld [vmem:[#allocation37_spill] sm:$0xff] }
 0x162   : > { %3816 = vmatprep.subr.bf16.mxu1 %v6186_v43 }
 0x164   : > { %4102 = vmatpush3.bf16.msra.mxu0 %v6185_v30 }
 0x165   : > { %4104 = vmatprep.subr.bf16.mxu0 %v6191_v11  ;;  %3818 = vmatpush3.bf16.msra.mxu1 %v6186_v43  ;;  %v6218_v43 = vand.u32 4294901760, %v6217_v27 }
 0x166   : > { %3820 = vmatprep.subr.bf16.mxu1 %v6192_v10 }
 0x167   : > { %v1222_v35 = vsub.f32 %v6217_v27, %v6218_v43 }
 0x168   : > { %4106 = vmatpush3.bf16.msra.mxu0 %v6191_v11 }
 0x169   : > { %4108 = vmatprep.subr.bf16.mxu0 %v6197_v4  ;;  %3822 = vmatpush3.bf16.msra.mxu1 %v6192_v10  ;;  %v3839_v10 = vpack.c.bf16 %v1202_v37, %v1195_v48  ;;  %v1223_v63 = vand.u32 4294901760, %v1222_v35  ;;  %v6233_v37 = vld [vmem:[#allocation29_spill] sm:$0xff] }
 0x16a   : > { %3824 = vmatprep.subr.bf16.mxu1 %v6204_v49 }
 0x16c   : > { %4110 = vmatpush3.bf16.msra.mxu0 %v6197_v4 }
 0x16d   : > { %4112 = vmatprep.subr.bf16.mxu0 %v5540_v59  ;;  %3826 = vmatpush3.bf16.msra.mxu1 %v6204_v49  ;;  %v6226_v49 = vld [vmem:[#allocation23_spill] sm:$0xff] }
 0x16e   : > { %3828 = vmatprep.subr.bf16.mxu1 %v3827_v39 }
 0x170   : > { %4114 = vmatpush3.bf16.msra.mxu0 %v5540_v59  ;;  %3216 = vmatmul.mubr.f32.vlgmr.msra.gmra.mrb[0].mxu1 %v1142_v3  ;;  %v6227_v3 = vld [vmem:[#allocation50_spill] sm:$0xff] }
 0x171   : > { %4116 = vmatprep.subr.bf16.mxu0 %v6209_v6  ;;  %3830 = vmatpush3.bf16.msra.mxu1 %v3827_v39  ;;  %v3847_v39 = vpack.c.bf16 %v1230_v26, %v1223_v63  ;;  %v6228_v56 = vand.u32 4294901760, %v6227_v3 }
 0x172   : > { %3832 = vmatprep.subr.bf16.mxu1 %v3831_v38  ;;  %3250 = vmatprep.mubr.f32.mxu1 %v6216_v12 }
 0x173   : > { %3531 = vmatmul.mubr.f32.vlgmr.msra.gmra.mrb[0].mxu0 %v6210_v5  ;;  %v1250_v0 = vsub.f32 %v6227_v3, %v6228_v56 }
 0x174   : > { %4118 = vmatpush3.bf16.msra.mxu0 %v6209_v6  ;;  %3565 = vmatprep.mubr.f32.mxu0 %v5383_v20 }
 0x175   : > { %4120 = vmatprep.subr.bf16.mxu0 %v6215_v23  ;;  %3834 = vmatpush3.bf16.msra.mxu1 %v3831_v38  ;;  %v6229_v38 = vld [vmem:[#allocation51_spill] sm:$0xff]  ;;  %v1251_v6 = vand.u32 4294901760, %v1250_v0 }
 0x176   : > { %3836 = vmatprep.subr.bf16.mxu1 %v3835_v17  ;;  %v6230_v44 = vand.u32 4294901760, %v6229_v38 }
 0x178   : > { %4122 = vmatpush3.bf16.msra.mxu0 %v6215_v23  ;;  %v1257_v36 = vsub.f32 %v6229_v38, %v6230_v44 }
 0x179   : > { %4124 = vmatprep.subr.bf16.mxu0 %v6221_v33  ;;  %3838 = vmatpush3.bf16.msra.mxu1 %v3835_v17  ;;  %v6232_v17 = vld [vmem:[#allocation27_spill] sm:$0xff] }
 0x17a   : > { %3840 = vmatprep.subr.bf16.mxu1 %v3839_v10  ;;  %v1258_v5 = vand.u32 4294901760, %v1257_v36 }
 0x17c   : > { %4126 = vmatpush3.bf16.msra.mxu0 %v6221_v33  ;;  %v3855_v48 = vpack.c.bf16 %v1258_v5, %v1251_v6 }
 0x17d   : > { %4128 = vmatprep.subr.bf16.mxu0 %v6226_v49  ;;  %3842 = vmatpush3.bf16.msra.mxu1 %v3839_v10 }
 0x17e   : > { %3844 = vmatprep.subr.bf16.mxu1 %v3843_v52 }
 0x180   : > { %4130 = vmatpush3.bf16.msra.mxu0 %v6226_v49 }
 0x181   : > { %4132 = vmatprep.subr.bf16.mxu0 %v6231_v53  ;;  %3846 = vmatpush3.bf16.msra.mxu1 %v3843_v52 }
 0x182   : > { %3848 = vmatprep.subr.bf16.mxu1 %v3847_v39 }
 0x184   : > { %4134 = vmatpush3.bf16.msra.mxu0 %v6231_v53 }
 0x185   : > { %4136 = vmatprep.subr.bf16.mxu0 %v6232_v17  ;;  %3850 = vmatpush3.bf16.msra.mxu1 %v3847_v39 }
 0x186   : > { %3852 = vmatprep.subr.bf16.mxu1 %v3851_v51 }
 0x188   : > { %4138 = vmatpush3.bf16.msra.mxu0 %v6232_v17 }
 0x189   : > { %4140 = vmatprep.subr.bf16.mxu0 %v6233_v37  ;;  %3854 = vmatpush3.bf16.msra.mxu1 %v3851_v51 }
 0x18a   : > { %3856 = vmatprep.subr.bf16.mxu1 %v3855_v48 }
 0x18c   : > { %4142 = vmatpush3.bf16.msra.mxu0 %v6233_v37 }
 0x18d   : > { %4144 = vmatprep.subr.bf16.mxu0 %v6234_v24  ;;  %3858 = vmatpush3.bf16.msra.mxu1 %v3855_v48 }
 0x18e   : > { %3860 = vmatprep.subr.bf16.mxu1 %v3859_v34 }
 0x190   : > { %4146 = vmatpush3.bf16.msra.mxu0 %v6234_v24  ;;  %3251 = vmatmul.mubr.f32.vlgmr.msra.gmra.mrb[0].mxu1 %v6235_v13 }
 0x191   : > { %4148 = vmatprep.subr.bf16.mxu0 %v5403_v57  ;;  %3862 = vmatpush3.bf16.msra.mxu1 %v3859_v34 }
 0x192   : > { %3864 = vmatprep.subr.bf16.mxu1 %v3863_v62  ;;  %3285 = vmatprep.mubr.f32.mxu1 %v5102_v7  ;;  %v3879_v7 = vpack.c.bf16 %v6219_v16, %v6217_v27 }
 0x193   : > { %3566 = vmatmul.mubr.f32.vlgmr.msra.gmra.mrb[0].mxu0 %v5490_v21 }
 0x194   : > { %4150 = vmatpush3.bf16.msra.mxu0 %v5403_v57  ;;  %3600 = vmatprep.mubr.f32.mxu0 %v5383_v20  ;;  %v3875_v57 = vpack.c.bf16 %v6213_v1, %v6211_v32  ;;  %v3883_v20 = vpack.c.bf16 %v6224_v42, %v6222_v54 }
 0x195   : > { %4152 = vmatprep.subr.bf16.mxu0 %v5423_v55  ;;  %3866 = vmatpush3.bf16.msra.mxu1 %v3863_v62 }
 0x196   : > { %3868 = vmatprep.subr.bf16.mxu1 %v3867_v22 }
 0x198   : > { %4154 = vmatpush3.bf16.msra.mxu0 %v5423_v55  ;;  %v3887_v55 = vpack.c.bf16 %v6229_v38, %v6227_v3 }
 0x199   : > { %4156 = vmatprep.subr.bf16.mxu0 %v6181_v31  ;;  %3870 = vmatpush3.bf16.msra.mxu1 %v3867_v22 }
 0x19a   : > { %3872 = vmatprep.subr.bf16.mxu1 %v3871_v50 }
 0x19c   : > { %4158 = vmatpush3.bf16.msra.mxu0 %v6181_v31 }
 0x19d   : > { %4160 = vmatprep.subr.bf16.mxu0 %v6183_v14  ;;  %3874 = vmatpush3.bf16.msra.mxu1 %v3871_v50 }
 0x19e   : > { %3876 = vmatprep.subr.bf16.mxu1 %v3875_v57 }
 0x1a0   : > { %4162 = vmatpush3.bf16.msra.mxu0 %v6183_v14 }
 0x1a1   : > { %4164 = vmatprep.subr.bf16.mxu0 %v6185_v30  ;;  %3878 = vmatpush3.bf16.msra.mxu1 %v3875_v57 }
 0x1a2   : > { %3880 = vmatprep.subr.bf16.mxu1 %v3879_v7 }
 0x1a4   : > { %4166 = vmatpush3.bf16.msra.mxu0 %v6185_v30 }
 0x1a5   : > { %4168 = vmatprep.subr.bf16.mxu0 %v6191_v11  ;;  %3882 = vmatpush3.bf16.msra.mxu1 %v3879_v7 }
 0x1a6   : > { %3884 = vmatprep.subr.bf16.mxu1 %v3883_v20 }
 0x1a8   : > { %4170 = vmatpush3.bf16.msra.mxu0 %v6191_v11 }
 0x1a9   : > { %4172 = vmatprep.subr.bf16.mxu0 %v6197_v4  ;;  %3886 = vmatpush3.bf16.msra.mxu1 %v3883_v20 }
 0x1aa   : > { %3888 = vmatprep.subr.bf16.mxu1 %v3887_v55 }
 0x1ac   : > { %4174 = vmatpush3.bf16.msra.mxu0 %v6197_v4 }
 0x1ad   : > { %4176 = vmatprep.subr.bf16.mxu0 %v5540_v59  ;;  %3890 = vmatpush3.bf16.msra.mxu1 %v3887_v55 }
 0x1b0   : > { %4178 = vmatpush3.bf16.msra.mxu0 %v5540_v59  ;;  %3286 = vmatmul.mubr.f32.vlgmr.msra.gmra.mrb[0].mxu1 %v6198_v8 }
 0x1b3   : > { %3601 = vmatmul.mubr.f32.vlgmr.msra.gmra.mrb[0].mxu0 %v5490_v21 }
 0x283   : > { %v3287_v31 = vpop.f32.mrb[0].mxu1 }
 0x284   : > { %v1405_v30 = vpop.f32.mrb[1].mxu1 }
 0x286   : > { %v3602_v14 = vpop.f32.mrb[0].mxu0 }
 0x287   : > { %v4179_v11 = vadd.f32 %v3602_v14, %v3287_v31  ;;  %v2424_v18 = vpop.f32.mrb[1].mxu0 }
 0x288   : > { %v4180_v21 = vadd.f32 %v2424_v18, %v1405_v30 }
 0x289   : > { %2437 = vst [vmem:[%s286_s24 + $0x8] sm:$0xff] %v4179_v11  ;;  %v2447_v59 = vmul.f32 %v4179_v11, %v4179_v11 }
 0x28a   : > { %2436 = vst [vmem:[%s286_s24] sm:$0xff] %v4180_v21  ;;  %v2438_v19 = vadd.f32 %v4180_v21, %v4179_v11  ;;  %v2446_v4 = vmul.f32 %v4180_v21, %v4180_v21 }
 0x28b   : > { %4427 = shalt.err (!%p4424_p13)
}
 0x28c   : > { %s4428_s7 = scalar_lea.hbm %s5812_s30, 256  ;;  %s4432_s15 = scalar_lea.hbm %s5891_s4, 512 }
 0x28d   : > { %p4429_p0 = scmp.ne.s32.totalorder %s5812_s30, %s4428_s7  ;;  %p4433_p9 = scmp.lt.u32.totalorder %s5812_s30, %s5891_s4 }
 0x28e   : > { %p4434_p12 = scmp.lt.u32.totalorder %s4432_s15, %s4428_s7  ;;  %p4436_p1 = scmp.lt.u32.totalorder %s4428_s7, %s5812_s30 }
 0x28f   : > { %p4430_p5 = pnand %p4429_p0, %p4709_p6 }
 0x290   : > { %p4435_p2 = por %p4434_p12, %p4433_p9 }
 0x291   : > { %p4431_p11 = pneg %p4430_p5 }
 0x292   : > { %p4437_p4 = por %p4436_p1, %p4435_p2 }
 0x294   : > { %p4438_p8 = pnand %p4437_p4, %p4431_p11 }
 0x296   : > { %4441 = shalt.err (!%p4438_p8)
}
 0x297   : > { %s4530_s14 = smov 128   ;;  %s4531_s11 = smov 8   ;;  %v2439_v8 = vrot.slane %v2438_v19, 4  ;;  %v2448_v28 = vadd.f32 %v2447_v59, %v2446_v4 }
 0x298   : > { %4227 = dma.vmem_to_hbm [thread:$0]  (%p4709_p6), %s5807_s26, 256, %s5812_s30, %s2457_s28, %s4530_s14, %s4530_s14, %s4531_s11  }
 0x299   : > { %v2440_v29 = vadd.f32 %v2439_v8, %v2438_v19  ;;  %v2449_v41 = vrot.slane %v2448_v28, 4  ;;  %s2637_s10 = sshll.u32 %s4760_s17, 1  ;;  %s2644_s29 = sshll.u32 %s4584_s22, 5 }
 0x29a   : > { %s293_s12 = scalar_lea.vmem [#allocation12], %s2637_s10  ;;  %s5843_s28 = scalar_lea.hbm %s5892_s5, %s2644_s29 }
 0x29b   : > { %v2441_v40 = vrot.slane %v2440_v29, 2  ;;  %v2450_v32 = vadd.f32 %v2449_v41, %v2448_v28  ;;  %s2491_s23 = sshll.u32 %s293_s12, 4  ;;  %s2462_s7 = scalar_lea.sflag [#allocation13], %s4760_s17  ;;  %s5845_s23 = int_to_ptr.vmem [resolvable:$true] %s2491_s23 }
 0x29c   : > { %s4442_s8 = scalar_lea.vmem %s5845_s23, 32  ;;  %s4532_s22 = smov [#allocation12]  }
 0x29d   : > { %v2442_v1 = vadd.f32 %v2441_v40, %v2440_v29  ;;  %v2451_v23 = vrot.slane %v2450_v32, 2  ;;  %p4443_p3 = scmp.ne.s32.totalorder %s5845_s23, %s4442_s8  ;;  %s4446_s9 = sshll.u32 %s4532_s22, 4  ;;  %s4447_s9 = int_to_ptr.vmem [resolvable:$false] %s4446_s9 }
 0x29e   : > { %s4448_s15 = scalar_lea.vmem %s4447_s9, 64  ;;  %p4449_p13 = scmp.lt.s32.totalorder %s5845_s23, %s4447_s9 }
 0x29f   : > { %v2443_v12 = vrot.slane %v2442_v1, 1  ;;  %v2452_v27 = vadd.f32 %v2451_v23, %v2450_v32  ;;  %p4444_p7 = pnand %p4443_p3, %p4709_p6  ;;  %p4450_p0 = scmp.lt.s32.totalorder %s4448_s15, %s4442_s8 }
 0x2a1   : > { %v2444_v43 = vadd.f32 %v2443_v12, %v2442_v1  ;;  %v2453_v35 = vrot.slane %v2452_v27, 1  ;;  %p4445_p10 = pneg %p4444_p7  ;;  %p4451_p5 = por %p4450_p0, %p4449_p13 }
 0x2a3   : > { %2445 = vst [vmem:[%s293_s12] sm:$0x1] %v2444_v43  ;;  %v2454_v16 = vadd.f32 %v2453_v35, %v2452_v27  ;;  %p4452_p11 = pnand %p4451_p5, %p4445_p10 }
 0x2a5   : > { %2455 = vst [vmem:[%s293_s12 + $0x1] sm:$0x1] %v2454_v16 }
 0x2a6   : > { %4455 = shalt.err (!%p4452_p11)
}
 0x2a7   : > { %s4456_s17 = scalar_lea.hbm %s5843_s28, 32  ;;  %s4460_s14 = scalar_lea.hbm %s5892_s5, 64 }
 0x2a8   : > { %p4457_p9 = scmp.ne.s32.totalorder %s5843_s28, %s4456_s17  ;;  %p4461_p1 = scmp.lt.u32.totalorder %s5843_s28, %s5892_s5 }
 0x2a9   : > { %p4462_p4 = scmp.lt.u32.totalorder %s4460_s14, %s4456_s17  ;;  %p4464_p3 = scmp.lt.u32.totalorder %s4456_s17, %s5843_s28 }
 0x2aa   : > { %p4458_p12 = pnand %p4457_p9, %p4709_p6 }
 0x2ab   : > { %p4463_p8 = por %p4462_p4, %p4461_p1 }
 0x2ac   : > { %p4459_p2 = pneg %p4458_p12 }
 0x2ad   : > { %p4465_p7 = por %p4464_p3, %p4463_p8 }
 0x2af   : > { %p4466_p10 = pnand %p4465_p7, %p4459_p2 }
 0x2b1   : > { %4469 = shalt.err (!%p4466_p10)
}
 0x2b2   : > { %4228 = dma.vmem_to_hbm [thread:$0]  (%p4709_p6), %s5845_s23, 32, %s5843_s28, %s2462_s7  }
 0x2b3 PF: > { %s2503_s29 = sand.u32 1, %s4508_s18   ;;  %p6236_p13 = scmp.ne.s32.totalorder %s6034_s25, 0 }
 0x2b4   : > { %p6237_p0 = scmp.ge.s32.totalorder %s4520_s21, 2  ;;  %s2504_s12 = scalar_lea.sflag [#allocation5], %s2503_s29 }
 0x2b6   : > { %p4246_p5 = pnand %p6237_p0, %p6236_p13 }
 0x2b8   : > { %4499 = dma.done.wait (!%p4246_p5), %s2504_s12, 256  }
 0x2b9   : > { %4501 = vsyncadd (!%p4246_p5), %s2504_s12, 4294967040  ;;  %s2513_s26 = scalar_lea.sflag [#allocation13], %s2503_s29 }
 0x2ba   : > { %4503 = dma.done.wait (!%p4246_p5), %s2513_s26, 32  }
 0x2bb   : > { %4505 = vsyncadd (!%p4246_p5), %s2513_s26, 4294967264  ;;  %p24_p6 = scmp.ge.s32.totalorder %s4695_s16, 4   ;;  %s6238_s18 = smov %s4512_s19 }
 0x2bc   : > { %s6239_s19 = smov %s4516_s20  ;;  %s6240_s20 = smov %s4705_s27 }
 0x2bd   : > { %s6241_s21 = smov %s4695_s16  ;;  %26 = sbr.rel (!%p24_p6) target bundleno = 9 (0x9), region = 112 }
 0x2c4   :  { %2518 = vsyncpa [#allocation4], 1 }
 0x2c5   :  { %2520 = vsyncpa [#allocation4 + $0x1], 1 }
 0x2c6   :  { %2521 = vsyncpa [#allocation7], 1 }
 0x2c7   :  { %2522 = vsyncpa [#allocation10], 1 }
 0x2c8   :  { %2523 = vsyncpa [#allocation5], 1 }
 0x2c9   :  { %2525 = vsyncpa [#allocation5 + $0x1], 1 }
 0x2ca   :  { %2526 = vsyncpa [#allocation13], 1 }
 0x2cb   :  { %2528 = vsyncpa [#allocation13 + $0x1], 1 }

// kernel: squeeze.42
= control target key start
LH: loop header
LB: loop body
LE: loop exit
PB: predicated region body
PF: predicated region fallthrough
CT: control target
= control target key end

     0   :  { %s130_s8 = smov 104   ;;  %s131_s9 = smov 112   ;;  %vm7_vm0 = vcmask 64512   ;;  %s221_s0 = inlined_call_operand.vmem [shape: f32[128], index: 0, kind: input, shape index: {}]   ;;  %s222_s1 = inlined_call_operand.vmem [shape: f32[16,8], index: 1, kind: output, shape index: {}]  }
   0x1   :  { %v4_v0 = vld [vmem:[%s221_s0] sm:$0x1]  ;;  %s129_s0 = smov 120   ;;  %s132_s10 = smov 96  }
   0x2   :  { %5 = vst [vmem:[#allocation0] sm:$0x1] %v4_v0  ;;  %s133_s11 = smov 88   ;;  %s134_s12 = smov 80  }
   0x3   :  { %s135_s13 = smov 72   ;;  %s136_s14 = smov 64  }
   0x4   :  { %s137_s17 = smov 56   ;;  %s138_s18 = smov 48  }
   0x5   :  { %s139_s19 = smov 40   ;;  %s140_s20 = smov 32  }
   0x6   :  { %s141_s21 = smov 24   ;;  %s142_s22 = smov 16  }
   0x7   :  { %s143_s23 = smov 8  }
   0x9   :  { %v9_v1 = vld [vmem:[#allocation0] sm:$0x1]  }
   0xa   :  { %v21_v2 = vld [vmem:[#allocation0] sm:$0x1]   ;;  %10 = vrot.lane.b32.xlu0 %v9_v1, %s129_s0 }
   0xb   :  { %22 = vrot.lane.b32.xlu1 %v21_v2, %s130_s8  ;;  %v15_v3 = vld [vmem:[#allocation0] sm:$0x1]  }
   0xc   :  { %v27_v4 = vld [vmem:[#allocation0] sm:$0x1]  }
   0xd   :  { %v33_v5 = vld [vmem:[#allocation0] sm:$0x1]  }
   0xe   :  { %16 = vrot.lane.b32.xlu0 %v15_v3, %s131_s9  ;;  %v39_v6 = vld [vmem:[#allocation0] sm:$0x1]  }
   0xf   :  { %28 = vrot.lane.b32.xlu1 %v27_v4, %s132_s10  ;;  %v45_v7 = vld [vmem:[#allocation0] sm:$0x1]  }
  0x10   :  { %v51_v8 = vld [vmem:[#allocation0] sm:$0x1]  }
  0x11   :  { %v57_v9 = vld [vmem:[#allocation0] sm:$0x1]  }
  0x12   :  { %34 = vrot.lane.b32.xlu0 %v33_v5, %s133_s11  ;;  %v63_v10 = vld [vmem:[#allocation0] sm:$0x1]  }
  0x13   :  { %40 = vrot.lane.b32.xlu1 %v39_v6, %s134_s12  ;;  %v6_v11 = vld [vmem:[#allocation0] sm:$0x1]  }
  0x14   :  { %8 = vst.msk [vmem:[%s222_s1] sm:$0x1] %vm7_vm0, %v6_v11   ;;  %v69_v12 = vld [vmem:[#allocation0] sm:$0x1]  }
  0x15   :  { %v75_v13 = vld [vmem:[#allocation0] sm:$0x1]  }
  0x16   :  { %46 = vrot.lane.b32.xlu0 %v45_v7, %s135_s13  ;;  %v81_v14 = vld [vmem:[#allocation0] sm:$0x1]  }
  0x17   :  { %52 = vrot.lane.b32.xlu1 %v51_v8, %s136_s14  ;;  %v87_v15 = vld [vmem:[#allocation0] sm:$0x1]  }
  0x18   :  { %v93_v16 = vld [vmem:[#allocation0] sm:$0x1]  }
  0x1a   :  { %58 = vrot.lane.b32.xlu0 %v57_v9, %s137_s17 }
  0x1b   :  { %64 = vrot.lane.b32.xlu1 %v63_v10, %s138_s18 }
  0x1e   :  { %70 = vrot.lane.b32.xlu0 %v69_v12, %s139_s19 }
  0x1f   :  { %76 = vrot.lane.b32.xlu1 %v75_v13, %s140_s20 }
  0x22   :  { %82 = vrot.lane.b32.xlu0 %v81_v14, %s141_s21 }
  0x23   :  { %88 = vrot.lane.b32.xlu1 %v87_v15, %s142_s22 }
  0x26   :  { %94 = vrot.lane.b32.xlu0 %v93_v16, %s143_s23 }
  0x7c   :  { %v11_v17 = vpop.permute.xlu0 %10  }
  0x7d   :  { %v23_v18 = vpop.permute.xlu1 %22   ;;  %99 = vst.msk [vmem:[%s222_s1 + $0x1] sm:$0x1] %vm7_vm0, %v11_v17  }
  0x7e   :  { %101 = vst.msk [vmem:[%s222_s1 + $0x3] sm:$0x1] %vm7_vm0, %v23_v18  }
  0x80   :  { %v17_v19 = vpop.permute.xlu0 %16  }
  0x81   :  { %v29_v20 = vpop.permute.xlu1 %28   ;;  %100 = vst.msk [vmem:[%s222_s1 + $0x2] sm:$0x1] %vm7_vm0, %v17_v19  }
  0x82   :  { %102 = vst.msk [vmem:[%s222_s1 + $0x4] sm:$0x1] %vm7_vm0, %v29_v20  }
  0x84   :  { %v35_v21 = vpop.permute.xlu0 %34  }
  0x85   :  { %v41_v22 = vpop.permute.xlu1 %40   ;;  %103 = vst.msk [vmem:[%s222_s1 + $0x5] sm:$0x1] %vm7_vm0, %v35_v21  }
  0x86   :  { %104 = vst.msk [vmem:[%s222_s1 + $0x6] sm:$0x1] %vm7_vm0, %v41_v22  }
  0x88   :  { %v47_v23 = vpop.permute.xlu0 %46  }
  0x89   :  { %v53_v24 = vpop.permute.xlu1 %52   ;;  %105 = vst.msk [vmem:[%s222_s1 + $0x7] sm:$0x1] %vm7_vm0, %v47_v23  }
  0x8a   :  { %106 = vst.msk [vmem:[%s222_s1 + $0x8] sm:$0x1] %vm7_vm0, %v53_v24  }
  0x8c   :  { %v59_v25 = vpop.permute.xlu0 %58  }
  0x8d   :  { %v65_v26 = vpop.permute.xlu1 %64   ;;  %107 = vst.msk [vmem:[%s222_s1 + $0x9] sm:$0x1] %vm7_vm0, %v59_v25  }
  0x8e   :  { %108 = vst.msk [vmem:[%s222_s1 + $0xa] sm:$0x1] %vm7_vm0, %v65_v26  }
  0x90   :  { %v71_v27 = vpop.permute.xlu0 %70  }
  0x91   :  { %v77_v28 = vpop.permute.xlu1 %76   ;;  %109 = vst.msk [vmem:[%s222_s1 + $0xb] sm:$0x1] %vm7_vm0, %v71_v27  }
  0x92   :  { %110 = vst.msk [vmem:[%s222_s1 + $0xc] sm:$0x1] %vm7_vm0, %v77_v28  }
  0x94   :  { %v83_v29 = vpop.permute.xlu0 %82  }
  0x95   :  { %v89_v30 = vpop.permute.xlu1 %88   ;;  %111 = vst.msk [vmem:[%s222_s1 + $0xd] sm:$0x1] %vm7_vm0, %v83_v29  }
  0x96   :  { %112 = vst.msk [vmem:[%s222_s1 + $0xe] sm:$0x1] %vm7_vm0, %v89_v30  }
  0x98   :  { %v95_v31 = vpop.permute.xlu0 %94  }
  0x99   :  { %113 = vst.msk [vmem:[%s222_s1 + $0xf] sm:$0x1] %vm7_vm0, %v95_v31  }

// kernel: basic_res_block.5
= control target key start
LH: loop header
LB: loop body
LE: loop exit
PB: predicated region body
PF: predicated region fallthrough
CT: control target
= control target key end

     0   :  { %s5888_s0 = inlined_call_operand.hbm [shape: f32[32,128], index: 0, kind: input, shape index: {}]   ;;  %s5889_s1 = inlined_call_operand.hbm [shape: f32[1,128], index: 1, kind: input, shape index: {}]   ;;  %s5890_s2 = inlined_call_operand.hbm [shape: f32[1,128], index: 2, kind: input, shape index: {}]   ;;  %s5891_s3 = inlined_call_operand.hbm [shape: f32[3,128,128], index: 3, kind: input, shape index: {}]   ;;  %s5892_s4 = inlined_call_operand.hbm [shape: f32[32,128], index: 4, kind: input, shape index: {}]   ;;  %s5893_s5 = inlined_call_operand.hbm [shape: f32[32,128], index: 5, kind: output, shape index: {}]  }
   0x1   :  { %6044 = sst [smem:[#allocation60_spill]] %s5888_s0 }
   0x2   :  { %6045 = sst [smem:[#allocation61_spill]] %s5889_s1 }
   0x3   :  { %10 = vsyncpa [#allocation4], 0 }
   0x4   :  { %12 = vsyncpa [#allocation4 + $0x1], 0 }
   0x5   :  { %13 = vsyncpa [#allocation7], 0 }
   0x6   :  { %14 = vsyncpa [#allocation10], 0 }
   0x7   :  { %15 = vsyncpa [#allocation5], 0 }
   0x8   :  { %17 = vsyncpa [#allocation5 + $0x1], 0  ;;  %s4550_s18 = smov 0   ;;  %s4552_s19 = smov 0  }
   0x9   :  { %s4554_s20 = smov 0   ;;  %s4556_s21 = smov 0  }
   0xa LB: > { %6046 = sst [smem:[#allocation18_spill]] %s4503_s20  ;;  %s4571_s22 = sadd.s32 4294967295, %s4507_s21   ;;  %s4507_s21 = sphi %s4556_s21, %s6267_s21   ;;  %s4503_s20 = sphi %s4554_s20, %s6269_s20   ;;  %s4499_s19 = sphi %s4552_s19, %s6271_s19   ;;  %s4495_s18 = sphi %s4550_s18, %s6270_s18  }
   0xb   : > { %6047 = sst [smem:[#allocation19_spill]] %s4507_s21  ;;  %s2605_s23 = sadd.s32 4294967294, %s4507_s21  }
   0xc   : > { %p43_p0 = scmp.ne.s32.totalorder %s4499_s19, %s4495_s18  ;;  %p5894_p1 = scmp.eq.s32.totalorder %s4571_s22, 0 }
   0xd   : > { %p162_p3 = scmp.eq.s32.totalorder %s2605_s23, 1  ;;  %p2606_p5 = scmp.ge.s32.totalorder %s4507_s21, 1 }
   0xe   : > { %p4580_p4 = por %p5894_p1, %p43_p0  ;;  %p169_p7 = scmp.lt.s32.totalorder %s4507_s21, 3 }
   0xf   : > { %p4585_p6 = por %p162_p3, %p43_p0  ;;  %s4509_s27 = smov [#allocation6]  }
  0x10   : > { %s6048_s24 = scalar_select %p4580_p4, 1, 0 }
  0x11   : > { %s6049_s25 = scalar_select %p4585_p6, 1, 0 }
  0x12   : > { %p4590_p8 = pnand %p2606_p5, %p169_p7  ;;  %s182_s28 = sshll.u32 %s4509_s27, 4  ;;  %s183_s28 = int_to_ptr.vmem [resolvable:$true] %s182_s28 }
  0x13   : > { %s4598_s29 = sadd.s32 1, %s4507_s21   ;;  %s30_s8 = sadd.s32 1, %s4503_s20 }
  0x14   : > { %s6050_s26 = scalar_select %p4590_p8, 1, 0 }
  0x15   : > { %p4216_p10 = pneg %p4590_p8  ;;  %6051 = sst [smem:[#allocation20_spill]] %s4598_s29 }
  0x16   : > { %s27_s6 = ssub.s32 %s4507_s21, %s4598_s29  ;;  %s6054_s1 = sld [smem:[#allocation61_spill]] }
  0x17   : > { %p4602_p11 = pnand %p4216_p10, %p5894_p1  ;;  %p4608_p12 = scmp.eq.s32.totalorder %s27_s6, 0 }
  0x19   : > { %s6052_s30 = scalar_select %p4602_p11, 1, 0 }
  0x1a   : > { %s6053_s7 = scalar_select %p4608_p12, 1, 0 }
  0x1b   : > { %p4623_p3 = pneg %p4602_p11 }
  0x1c   : > { %s4285_s11 = scalar_lea.hbm %s6054_s1, 16 }
  0x1d   : > { %p4286_p0 = scmp.ne.s32.totalorder %s6054_s1, %s4285_s11  ;;  %p4292_p10 = scmp.lt.u32.totalorder %s4285_s11, %s6054_s1 }
  0x1f   : > { %p4288_p5 = pnand %p4623_p3, %p4286_p0 }
  0x21   : > { %p4289_p7 = pneg %p4288_p5 }
  0x23   : > { %p4294_p9 = pnand %p4292_p10, %p4289_p7 }
  0x25   : > { %4297 = shalt.err (!%p4294_p9)
}
  0x26   : > { %s4298_s17 = scalar_lea.vmem %s183_s28, 16  ;;  %s4305_s23 = scalar_lea.vmem %s183_s28, 32 }
  0x27   : > { %p4299_p1 = scmp.ne.s32.totalorder %s183_s28, %s4298_s17  ;;  %p4306_p6 = scmp.lt.s32.totalorder %s183_s28, %s183_s28 }
  0x28   : > { %p4307_p4 = scmp.lt.s32.totalorder %s4305_s23, %s4298_s17 }
  0x29   : > { %p4301_p2 = pnand %p4299_p1, %p4623_p3 }
  0x2a   : > { %p4308_p8 = por %p4307_p4, %p4306_p6 }
  0x2b   : > { %p4302_p13 = pneg %p4301_p2 }
  0x2d   : > { %p4309_p12 = pnand %p4308_p8, %p4302_p13 }
  0x2f   : > { %4312 = shalt.err (!%p4309_p12)
}
  0x30   : > { %4219 = dma.hbm_to_vmem [thread:$0]  (!%p4602_p11), %s6054_s1, 16, %s183_s28, [#allocation7]  }
  0x31   : > { %p6056_p1 = scmp.ne.s32.totalorder %s6053_s7, 0  ;;  %p38_p2 = scmp.eq.s32.totalorder %s4507_s21, 0 }
  0x32   : > { %p6058_p4 = scmp.ne.s32.totalorder %s4503_s20, %s4499_s19  ;;  %p6059_p6 = scmp.eq.s32.totalorder %s4571_s22, 1 }
  0x33   : > { %s4642_s9 = scalar_select %p6056_p1, %s4503_s20, %s30_s8  }
  0x34   : > { %p4650_p8 = por %p6059_p6, %p6058_p4  ;;  %p6061_p9 = pmov %p6058_p4 }
  0x35   : > { %6057 = sst [smem:[#allocation21_spill]] %s4642_s9  ;;  %p4240_p13 = scmp.lt.s32.totalorder %s4507_s21, 2 }
  0x36   : > { %s6060_s10 = scalar_select %p4650_p8, 1, 0 }
  0x37   : > { %p39_p12 = por %p38_p2, %p6061_p9  ;;  %s217_s11 = sand.u32 1, %s4507_s21  }
  0x38   : > { %s219_s12 = sand.u32 1, %s4503_s20   ;;  %s2631_s15 = sshll.u32 %s4507_s21, 8 }
  0x39   : > { %s2611_s13 = sshll.u32 %s219_s12, 4  ;;  %s6062_s0 = sld [smem:[#allocation60_spill]] }
  0x3a   : > { %s221_s7 = scalar_lea.vmem [#allocation3], %s2611_s13  ;;  %p4668_p0 = pnand %p4240_p13, %p39_p12 }
  0x3b   : > { %s228_s8 = sshll.u32 %s221_s7, 4  ;;  %s4675_s12 = scalar_lea.hbm %s5892_s4, %s2631_s15  ;;  %s4666_s8 = int_to_ptr.vmem [resolvable:$true] %s228_s8 }
  0x3c   : > { %s6063_s23 = scalar_select %p4668_p0, 1, 0 }
  0x3d   : > { %s242_s16 = scalar_lea.vmem [#allocation11], %s2611_s13  ;;  %s4679_s1 = scalar_lea.sflag [#allocation4], %s217_s11 }
  0x3e   : > { %s4677_s17 = sshll.u32 %s242_s16, 4  ;;  %p5904_p7 = pneg %p4668_p0  ;;  %s4711_s17 = int_to_ptr.vmem [resolvable:$true] %s4677_s17 }
  0x3f   : > { %s4664_s28 = scalar_lea.hbm %s6062_s0, %s2631_s15  ;;  %s4318_s27 = scalar_lea.hbm %s6062_s0, 512 }
  0x40   : > { %s4313_s7 = scalar_lea.hbm %s4664_s28, 256  ;;  %p4319_p2 = scmp.lt.u32.totalorder %s4664_s28, %s6062_s0 }
  0x41   : > { %p4314_p5 = scmp.ne.s32.totalorder %s4664_s28, %s4313_s7  ;;  %p4320_p4 = scmp.lt.u32.totalorder %s4318_s27, %s4313_s7 }
  0x42   : > { %p4322_p9 = scmp.lt.u32.totalorder %s4313_s7, %s4664_s28 }
  0x43   : > { %p4316_p10 = pnand %p5904_p7, %p4314_p5  ;;  %p4321_p6 = por %p4320_p4, %p4319_p2 }
  0x45   : > { %p4317_p1 = pneg %p4316_p10  ;;  %p4323_p12 = por %p4322_p9, %p4321_p6 }
  0x47   : > { %p4324_p13 = pnand %p4323_p12, %p4317_p1 }
  0x49   : > { %4327 = shalt.err (!%p4324_p13)
}
  0x4a   : > { %s4328_s11 = scalar_lea.vmem %s4666_s8, 256  ;;  %s4510_s20 = smov [#allocation3]  }
  0x4b   : > { %p4329_p5 = scmp.ne.s32.totalorder %s4666_s8, %s4328_s11  ;;  %s4333_s9 = sshll.u32 %s4510_s20, 4  ;;  %s4334_s9 = int_to_ptr.vmem [resolvable:$false] %s4333_s9 }
  0x4c   : > { %s4335_s13 = scalar_lea.vmem %s4334_s9, 512  ;;  %p4336_p11 = scmp.lt.s32.totalorder %s4666_s8, %s4334_s9 }
  0x4d   : > { %p4331_p10 = pnand %p4329_p5, %p5904_p7  ;;  %p4337_p2 = scmp.lt.s32.totalorder %s4335_s13, %s4328_s11 }
  0x4f   : > { %p4332_p8 = pneg %p4331_p10  ;;  %p4338_p4 = por %p4337_p2, %p4336_p11 }
  0x51   : > { %p4339_p6 = pnand %p4338_p4, %p4332_p8 }
  0x53   : > { %4342 = shalt.err (!%p4339_p6)
}
  0x54   : > { %s4511_s16 = smov 128   ;;  %s4512_s7 = smov 8  }
  0x55   : > { %4229 = dma.hbm_to_vmem [thread:$0]  (!%p4668_p0), %s4664_s28, 256, %s4666_s8, %s4679_s1, %s4511_s16, %s4511_s16, %s4512_s7  }
  0x56   : > { %s4513_s27 = smov [#allocation8]   ;;  %s4514_s15 = smov [#allocation9]  }
  0x57   : > { %s193_s6 = sshll.u32 %s4513_s27, 4  ;;  %s203_s11 = sshll.u32 %s4514_s15, 4  ;;  %s194_s6 = int_to_ptr.vmem [resolvable:$true] %s193_s6  ;;  %s204_s11 = int_to_ptr.vmem [resolvable:$true] %s203_s11 }
  0x58   : > { %s4343_s13 = scalar_lea.hbm %s5890_s2, 16 }
  0x59   : > { %p4344_p11 = scmp.ne.s32.totalorder %s5890_s2, %s4343_s13  ;;  %p4350_p9 = scmp.lt.u32.totalorder %s4343_s13, %s5890_s2 }
  0x5b   : > { %p4346_p8 = pnand %p4344_p11, %p4623_p3 }
  0x5d   : > { %p4347_p1 = pneg %p4346_p8 }
  0x5f   : > { %p4352_p12 = pnand %p4350_p9, %p4347_p1 }
  0x61   : > { %4355 = shalt.err (!%p4352_p12)
}
  0x62   : > { %s4356_s8 = scalar_lea.vmem %s194_s6, 16  ;;  %s4363_s27 = scalar_lea.vmem %s194_s6, 32 }
  0x63   : > { %p4357_p13 = scmp.ne.s32.totalorder %s194_s6, %s4356_s8  ;;  %p4364_p2 = scmp.lt.s32.totalorder %s194_s6, %s194_s6 }
  0x64   : > { %p4365_p4 = scmp.lt.s32.totalorder %s4363_s27, %s4356_s8 }
  0x65   : > { %p4359_p5 = pnand %p4357_p13, %p4623_p3 }
  0x66   : > { %p4366_p6 = por %p4365_p4, %p4364_p2 }
  0x67   : > { %p4360_p10 = pneg %p4359_p5 }
  0x69   : > { %p4367_p7 = pnand %p4366_p6, %p4360_p10 }
  0x6b   : > { %4370 = shalt.err (!%p4367_p7)
}
  0x6c   : > { %p6064_p11 = scmp.ne.s32.totalorder %s6052_s30, 0  ;;  %s4371_s20 = scalar_lea.hbm %s5891_s3, 6144 }
  0x6d   : > { %p4372_p8 = scmp.ne.s32.totalorder %s5891_s3, %s4371_s20  ;;  %p4378_p7 = scmp.lt.u32.totalorder %s4371_s20, %s5891_s3 }
  0x6e   : > { %4222 = dma.hbm_to_vmem [thread:$0]  (!%p6064_p11), %s5890_s2, 16, %s194_s6, [#allocation7]  }
  0x6f   : > { %p4374_p1 = pnand %p4372_p8, %p4623_p3 }
  0x71   : > { %p4375_p9 = pneg %p4374_p1 }
  0x73   : > { %p4380_p12 = pnand %p4378_p7, %p4375_p9 }
  0x75   : > { %4383 = shalt.err (!%p4380_p12)
}
  0x76   : > { %s4384_s27 = scalar_lea.vmem %s204_s11, 6144  ;;  %p4392_p2 = scmp.lt.s32.totalorder %s204_s11, %s204_s11 }
  0x77   : > { %p4385_p13 = scmp.ne.s32.totalorder %s204_s11, %s4384_s27  ;;  %p4393_p4 = scmp.lt.s32.totalorder %s4384_s27, %s4384_s27 }
  0x79   : > { %p4387_p5 = pnand %p4385_p13, %p4623_p3  ;;  %p4394_p6 = por %p4393_p4, %p4392_p2 }
  0x7b   : > { %p4388_p10 = pneg %p4387_p5 }
  0x7d   : > { %p4395_p0 = pnand %p4394_p6, %p4388_p10 }
  0x7f   : > { %4398 = shalt.err (!%p4395_p0)
}
  0x80   : > { %4225 = dma.hbm_to_vmem [thread:$0]  (!%p6064_p11), %s5891_s3, 6144, %s204_s11, [#allocation10], %s4511_s16, %s4511_s16, %s4512_s7  }
  0x81   : > { %s4399_s14 = scalar_lea.hbm %s4675_s12, 256  ;;  %p6065_p8 = scmp.ne.s32.totalorder %s6063_s23, 0 }
  0x82   : > { %p4400_p3 = scmp.ne.s32.totalorder %s4675_s12, %s4399_s14  ;;  %s4404_s21 = scalar_lea.hbm %s5892_s4, 512 }
  0x83   : > { %p6066_p1 = pneg %p6065_p8  ;;  %p4405_p7 = scmp.lt.u32.totalorder %s4675_s12, %s5892_s4 }
  0x84   : > { %p4406_p12 = scmp.lt.u32.totalorder %s4404_s21, %s4399_s14  ;;  %p4408_p5 = scmp.lt.u32.totalorder %s4399_s14, %s4675_s12 }
  0x85   : > { %p4402_p9 = pnand %p4400_p3, %p6066_p1 }
  0x86   : > { %p4407_p13 = por %p4406_p12, %p4405_p7 }
  0x87   : > { %p4403_p0 = pneg %p4402_p9 }
  0x88   : > { %p4409_p10 = por %p4408_p5, %p4407_p13 }
  0x8a   : > { %p4410_p2 = pnand %p4409_p10, %p4403_p0 }
  0x8c   : > { %4413 = shalt.err (!%p4410_p2)
}
  0x8d   : > { %s4414_s11 = scalar_lea.vmem %s4711_s17, 256  ;;  %p6067_p4 = pmov %p6066_p1 }
  0x8e   : > { %p4415_p11 = scmp.ne.s32.totalorder %s4711_s17, %s4414_s11  ;;  %s4515_s9 = smov [#allocation11]  }
  0x8f   : > { %s4419_s13 = sshll.u32 %s4515_s9, 4  ;;  %s4420_s13 = int_to_ptr.vmem [resolvable:$false] %s4419_s13 }
  0x90   : > { %p4417_p6 = pnand %p4415_p11, %p6067_p4  ;;  %s4421_s28 = scalar_lea.vmem %s4420_s13, 512 }
  0x91   : > { %p4422_p1 = scmp.lt.s32.totalorder %s4711_s17, %s4420_s13  ;;  %p4423_p9 = scmp.lt.s32.totalorder %s4421_s28, %s4414_s11 }
  0x92   : > { %p4418_p3 = pneg %p4417_p6 }
  0x93   : > { %p4424_p7 = por %p4423_p9, %p4422_p1 }
  0x95   : > { %p4425_p12 = pnand %p4424_p7, %p4418_p3 }
  0x97   : > { %4428 = shalt.err (!%p4425_p12)
}
  0x98   : > { %4232 = dma.hbm_to_vmem [thread:$0]  (!%p6065_p8), %s4675_s12, 256, %s4711_s17, %s4679_s1, %s4511_s16, %s4511_s16, %s4512_s7  }
  0x99   : > { %p6068_p0 = scmp.ne.s32.totalorder %s6050_s26, 0 }
  0x9b   : > { %261 = sbr.rel (%p6068_p0) target bundleno = 705 (0x2c1), region = 40 }
  0xa2   : > { %s263_s8 = sand.u32 1, %s4571_s22   ;;  %s265_s27 = sand.u32 1, %s4499_s19  }
  0xa3   : > { %s4785_s6 = sshll.u32 %s265_s27, 4  ;;  %s264_s23 = scalar_lea.sflag [#allocation4], %s263_s8 }
  0xa4   : > { %s267_s0 = scalar_lea.vmem [#allocation3], %s4785_s6  ;;  %p6069_p13 = scmp.ne.s32.totalorder %s6048_s24, 0 }
  0xa6   : > { %4474 = dma.done.wait (%p6069_p13), %s264_s23, 256  }
  0xa7   : > { %4476 = vsyncadd (%p6069_p13), %s264_s23, 4294967040  ;;  %p6070_p8 = scmp.eq.s32.totalorder %s4571_s22, 0 }
  0xa9   : > { %4478 = dma.done.wait (%p6070_p8), [#allocation7], 32   ;;  %p6071_p5 = pmov %p6070_p8 }
  0xab   : > { %4480 = vsyncadd (%p6071_p5), [#allocation7], 4294967264  ;;  %p6072_p10 = pmov %p6071_p5 }
  0xac   : > { %p6073_p2 = pmov %p6071_p5 }
  0xad   : > { %4482 = dma.done.wait (%p6072_p10), [#allocation10], 6144  }
  0xae   : > { %4484 = vsyncadd (%p6073_p2), [#allocation10], 4294961152  ;;  %s288_s1 = scalar_lea.vmem [#allocation11], %s4785_s6 }
  0xaf   : > { %4486 = dma.done.wait (%p6069_p13), %s264_s23, 256  }
  0xb0   : > { %4488 = vsyncadd (%p6069_p13), %s264_s23, 4294967040  ;;  %v4516_v0 = vmov 0.0   ;;  %v4805_v1 = vld [vmem:[#allocation9 + $0x80] sm:$0xff]  ;;  %v4807_v2 = vld [vmem:[#allocation9 + $0x88] sm:$0xff]  ;;  %s319_s24 = scalar_lea.vmem [#allocation12], %s4785_s6  ;;  %s2633_s12 = sshll.u32 %s4571_s22, 8 }
  0xb1   : > { %349 = vst [vmem:[#allocation2] sm:$0x1] %v4516_v0  ;;  %352 = vst [vmem:[#allocation2 + $0x11] sm:$0x1] %v4516_v0  ;;  %v4809_v3 = vld [vmem:[#allocation9] sm:$0xff]  ;;  %v391_v4 = vand.u32 4294901760, %v4805_v1  ;;  %s5842_s7 = scalar_lea.hbm %s5893_s5, %s2633_s12 }
  0xb2   : > { %v394_v5 = vand.u32 4294901760, %v4807_v2  ;;  %v4813_v6 = vld [vmem:[#allocation9 + $0x8] sm:$0xff]  ;;  %v1075_v7 = vand.u32 4294901760, %v4809_v3  ;;  %v4816_v8 = vld [vmem:[#allocation9 + $0x90] sm:$0xff]  ;;  %v4818_v9 = vld [vmem:[#allocation9 + $0x98] sm:$0xff]  ;;  %s2483_s26 = sshll.u32 %s319_s24, 4  ;;  %s5837_s26 = int_to_ptr.vmem [resolvable:$true] %s2483_s26 }
  0xb3   : > { %v1078_v10 = vand.u32 4294901760, %v4813_v6  ;;  %v397_v11 = vand.u32 4294901760, %v4816_v8  ;;  %v400_v12 = vand.u32 4294901760, %v4818_v9  ;;  %v4823_v13 = vld [vmem:[#allocation9 + $0x10] sm:$0xff]  ;;  %v4825_v14 = vld [vmem:[#allocation9 + $0x18] sm:$0xff]  ;;  %v4827_v15 = vld [vmem:[#allocation9 + $0xa0] sm:$0xff] }
  0xb4   : > { %v4833_v16 = vpack.c.bf16 %v394_v5, %v391_v4  ;;  %v5924_v17 = vand.u32 4294901760, %v4823_v13  ;;  %v5922_v18 = vand.u32 4294901760, %v4825_v14  ;;  %v4837_v19 = vld [vmem:[#allocation9 + $0xa8] sm:$0xff]  ;;  %v403_v20 = vand.u32 4294901760, %v4827_v15  ;;  %v4840_v21 = vld [vmem:[#allocation9 + $0x20] sm:$0xff]  ;;  %v4858_v27 = vld [vmem:[#allocation9 + $0xb0] sm:$0xff] }
  0xb5   : > { %v4842_v22 = vld [vmem:[#allocation9 + $0x28] sm:$0xff]  ;;  %v4848_v23 = vpack.c.bf16 %v1078_v10, %v1075_v7  ;;  %v4854_v24 = vpack.c.bf16 %v400_v12, %v397_v11  ;;  %v5921_v25 = vand.u32 4294901760, %v4837_v19  ;;  %v5918_v26 = vand.u32 4294901760, %v4840_v21  ;;  %v4860_v28 = vld [vmem:[#allocation9 + $0xb8] sm:$0xff]  ;;  %v4862_v29 = vld [vmem:[#allocation9 + $0x30] sm:$0xff]  ;;  %s5846_s22 = scalar_lea.sflag [#allocation5], %s265_s27 }
  0xb6   : > { %6074 = vst [vmem:[#allocation22_spill] sm:$0xff] %v4833_v16  ;;  %3589 = vmatprep.subr.bf16.mxu1 %v4833_v16  ;;  %v4869_v30 = vpack.c.bf16 %v5922_v18, %v5924_v17  ;;  %v5910_v31 = vand.u32 4294901760, %v4842_v22  ;;  %v4872_v32 = vld [vmem:[#allocation9 + $0x38] sm:$0xff]  ;;  %v4874_v33 = vld [vmem:[#allocation9 + $0xc0] sm:$0xff]  ;;  %v4876_v34 = vld [vmem:[#allocation9 + $0xc8] sm:$0xff]  ;;  %v5917_v35 = vand.u32 4294901760, %v4858_v27  ;;  %v5015_v18 = vsub.f32 %v4818_v9, %v400_v12 }
  0xb7   : > { %6075 = vst [vmem:[#allocation23_spill] sm:$0xff] %v4854_v24  ;;  %3877 = vmatprep.subr.bf16.mxu0 %v4848_v23  ;;  %3591 = vmatpush3.bf16.msra.mxu1 %v4833_v16  ;;  %v4881_v36 = vld [vmem:[#allocation9 + $0x40] sm:$0xff]  ;;  %v4883_v37 = vld [vmem:[#allocation9 + $0x48] sm:$0xff]  ;;  %v4891_v38 = vpack.c.bf16 %v5921_v25, %v403_v20  ;;  %v5909_v39 = vand.u32 4294901760, %v4860_v28  ;;  %v5908_v40 = vand.u32 4294901760, %v4862_v29  ;;  %v5907_v41 = vand.u32 4294901760, %v4872_v32 }
  0xb8   : > { %3879 = vmatpush3.bf16.msra.mxu0 %v4848_v23  ;;  %3593 = vmatprep.subr.bf16.mxu1 %v4854_v24  ;;  %v4896_v42 = vld [vmem:[#allocation9 + $0xd0] sm:$0xff]  ;;  %v4898_v43 = vld [vmem:[#allocation9 + $0xd8] sm:$0xff]  ;;  %v4905_v44 = vpack.c.bf16 %v5910_v31, %v5918_v26  ;;  %v5912_v45 = vand.u32 4294901760, %v4874_v33  ;;  %v5911_v46 = vand.u32 4294901760, %v4876_v34  ;;  %v5914_v47 = vand.u32 4294901760, %v4881_v36  ;;  %v4918_v53 = vld [vmem:[#allocation9 + $0xe0] sm:$0xff] }
  0xb9   : > { %6076 = vst [vmem:[#allocation24_spill] sm:$0xff] %v4891_v38  ;;  %3881 = vmatprep.subr.bf16.mxu0 %v4869_v30  ;;  %v5913_v48 = vand.u32 4294901760, %v4883_v37  ;;  %v4911_v49 = vld [vmem:[#allocation9 + $0x50] sm:$0xff]  ;;  %v4913_v50 = vld [vmem:[#allocation9 + $0x58] sm:$0xff]  ;;  %v5916_v51 = vand.u32 4294901760, %v4896_v42  ;;  %v5915_v52 = vand.u32 4294901760, %v4898_v43  ;;  %v4928_v55 = vpack.c.bf16 %v5909_v39, %v5917_v35 }
  0xba   : > { %6077 = vst [vmem:[#allocation25_spill] sm:$0xff] %v4905_v44  ;;  %v323_v54 = vld [vmem:[%s267_s0] sm:$0xff]  ;;  %v4934_v56 = vpack.c.bf16 %v5907_v41, %v5908_v40  ;;  %v324_v58 = vld [vmem:[%s267_s0 + $0x8] sm:$0xff]  ;;  %v4945_v60 = vpack.c.bf16 %v5911_v46, %v5912_v45  ;;  %v5920_v61 = vand.u32 4294901760, %v4911_v49  ;;  %v5919_v62 = vand.u32 4294901760, %v4913_v50  ;;  %s4429_s14 = scalar_lea.vmem %s5837_s26, 256 }
  0xbb   : > { %3595 = vmatpush3.bf16.msra.mxu1 %v4854_v24  ;;  %6078 = vst [vmem:[#allocation26_spill] sm:$0xff] %v4928_v55  ;;  %v4936_v57 = vld [vmem:[#allocation9 + $0xe8] sm:$0xff]  ;;  %v2624_v59 = vld [vmem:[#allocation6] ss:$0 sm:$0xff]  ;;  %v4949_v63 = vld [vmem:[#allocation9 + $0x60] sm:$0xff]  ;;  %v4955_v40 = vpack.c.bf16 %v5913_v48, %v5914_v47  ;;  %v5927_v39 = vand.u32 4294901760, %v4918_v53  ;;  %v4961_v46 = vsub.f32 %v4805_v1, %v391_v4  ;;  %p4430_p11 = scmp.ne.s32.totalorder %s5837_s26, %s4429_s14 }
  0xbc   : > { %3883 = vmatpush3.bf16.msra.mxu0 %v4869_v30  ;;  %3597 = vmatprep.subr.bf16.mxu1 %v4891_v38  ;;  %6079 = vst [vmem:[#allocation27_spill] sm:$0xff] %v4934_v56  ;;  %6080 = vst [vmem:[#allocation28_spill] sm:$0xff] %v4945_v60  ;;  %v332_v0 = vmul.f32 %v2624_v59, %v323_v54  ;;  %v2625_v41 = vld [vmem:[#allocation8] ss:$0 sm:$0xff]  ;;  %v333_v31 = vmul.f32 %v2624_v59, %v324_v58  ;;  %v5926_v45 = vand.u32 4294901760, %v4936_v57  ;;  %v4971_v48 = vld [vmem:[#allocation9 + $0x68] sm:$0xff] }
  0xbd   : > { %3885 = vmatprep.subr.bf16.mxu0 %v4905_v44  ;;  %6081 = vst [vmem:[#allocation29_spill] sm:$0xff] %v4955_v40  ;;  %v4968_v54 = vpack.c.bf16 %v5915_v52, %v5916_v51  ;;  %v4976_v58 = vsub.f32 %v4807_v2, %v394_v5  ;;  %v5929_v1 = vand.u32 4294901760, %v4949_v63  ;;  %v4981_v4 = vld [vmem:[#allocation9 + $0xf0] sm:$0xff]  ;;  %v5923_v52 = vand.u32 4294901760, %v4961_v46  ;;  %v4996_v5 = vld [vmem:[#allocation9 + $0xf8] sm:$0xff]  ;;  %p6263_p4 = scmp.ne.s32.totalorder %s6060_s10, 0 }
  0xbe   : > { %v341_v47 = vadd.f32 %v2625_v41, %v332_v0  ;;  %v342_v59 = vadd.f32 %v2625_v41, %v333_v31  ;;  %v4987_v0 = vsub.f32 %v4816_v8, %v397_v11  ;;  %v4994_v2 = vpack.c.bf16 %v5919_v62, %v5920_v61  ;;  %v5000_v35 = vld [vmem:[#allocation9 + $0x70] sm:$0xff]  ;;  %v5002_v8 = vld [vmem:[#allocation9 + $0x78] sm:$0xff]  ;;  %s4517_s29 = smov [#allocation12]  }
  0xbf   : > { %3599 = vmatpush3.bf16.msra.mxu1 %v4891_v38  ;;  %6082 = vst [vmem:[#allocation30_spill] sm:$0xff] %v4968_v54  ;;  %v5925_v31 = vand.u32 4294901760, %v4976_v58  ;;  %v5928_v41 = vand.u32 4294901760, %v4971_v48  ;;  %v495_v11 = vsub.f32 %v4961_v46, %v5923_v52  ;;  %v5028_v9 = vpack.c.bf16 %v5926_v45, %v5927_v39  ;;  %p4431_p6 = pnand %p4430_p11, %p6263_p4  ;;  %s4433_s30 = sshll.u32 %s4517_s29, 4  ;;  %s4434_s30 = int_to_ptr.vmem [resolvable:$false] %s4433_s30 }
  0xc0   : > { %3887 = vmatpush3.bf16.msra.mxu0 %v4905_v44  ;;  %3601 = vmatprep.subr.bf16.mxu1 %v4928_v55  ;;  %6083 = vst [vmem:[#allocation31_spill] sm:$0xff] %v4994_v2  ;;  %vm343_vm0 = vcmp.gt.f32.partialorder %v341_v47, 0.0  ;;  %v345_v51 = vmul.f32 0.01, %v341_v47  ;;  %vm344_vm1 = vcmp.gt.f32.partialorder %v342_v59, 0.0  ;;  %v5933_v12 = vand.u32 4294901760, %v5000_v35  ;;  %p4436_p1 = scmp.lt.s32.totalorder %s5837_s26, %s4434_s30 }
  0xc1   : > { %3889 = vmatprep.subr.bf16.mxu0 %v4934_v56  ;;  %v346_v26 = vmul.f32 0.01, %v342_v59  ;;  %v502_v25 = vsub.f32 %v4976_v58, %v5925_v31  ;;  %6084 = vst [vmem:[#allocation32_spill] sm:$0xff] %v5028_v9  ;;  %v5045_v45 = vsub.f32 %v4813_v6, %v1078_v10  ;;  %v6089_v10 = vand.u32 4294901760, %v4823_v13  ;;  %p4432_p3 = pneg %p4431_p6  ;;  %s4435_s21 = scalar_lea.vmem %s4434_s30, 512 }
  0xc2   : > { %v347_v61 = vsel %vm343_vm0, %v341_v47, %v345_v51  ;;  %v5930_v47 = vand.u32 4294901760, %v4987_v0  ;;  %p4437_p9 = scmp.lt.s32.totalorder %s4435_s21, %s4429_s14 }
  0xc3   : > { %3603 = vmatpush3.bf16.msra.mxu1 %v4928_v55  ;;  %350 = vst [vmem:[#allocation2 + $0x1] sm:$0xff] %v347_v61  ;;  %v5020_v17 = vand.u32 4294901760, %v347_v61  ;;  %v348_v62 = vsel %vm344_vm1, %v342_v59, %v346_v26  ;;  %v496_v26 = vand.u32 4294901760, %v495_v11  ;;  %v5040_v59 = vsub.f32 %v4809_v3, %v1075_v7  ;;  %6086 = vst [vmem:[#allocation34_spill] sm:$0xff] %v5045_v45 }
  0xc4   : > { %3891 = vmatpush3.bf16.msra.mxu0 %v4934_v56  ;;  %3605 = vmatprep.subr.bf16.mxu1 %v4945_v60  ;;  %351 = vst [vmem:[#allocation2 + $0x9] sm:$0xff] %v348_v62  ;;  %v5032_v31 = vand.u32 4294901760, %v348_v62  ;;  %v503_v39 = vand.u32 4294901760, %v502_v25  ;;  %v5055_v11 = vsub.f32 %v4827_v15, %v403_v20  ;;  %v5063_v3 = vpack.c.bf16 %v5928_v41, %v5929_v1  ;;  %p4438_p7 = por %p4437_p9, %p4436_p1 }
  0xc5   : > { %3893 = vmatprep.subr.bf16.mxu0 %v4955_v40  ;;  %v5035_v52 = vsub.f32 %v347_v61, %v5020_v17  ;;  %6085 = vst [vmem:[#allocation33_spill] sm:$0xff] %v5040_v59  ;;  %v509_v7 = vsub.f32 %v4987_v0, %v5930_v47  ;;  %v5072_v15 = vsub.f32 %v4823_v13, %v6089_v10  ;;  %v6091_v20 = vand.u32 4294901760, %v4981_v4 }
  0xc6   : > { %v5049_v51 = vsub.f32 %v348_v62, %v5032_v31  ;;  %6088 = vst [vmem:[#allocation36_spill] sm:$0xff] %v5063_v3  ;;  %v6092_v25 = vand.u32 4294901760, %v4996_v5  ;;  %v6093_v41 = vand.u32 4294901760, %v5002_v8  ;;  %v6095_v47 = vand.u32 4294901760, %v4825_v14  ;;  %p4439_p12 = pnand %p4438_p7, %p4432_p3 }
  0xc7   : > { %3607 = vmatpush3.bf16.msra.mxu1 %v4945_v60  ;;  %v5936_v6 = vand.u32 4294901760, %v5035_v52  ;;  %6090 = vst [vmem:[#allocation37_spill] sm:$0xff] %v5072_v15  ;;  %v6097_v13 = vand.u32 4294901760, %v4837_v19 }
  0xc8   : > { %6087 = vst [vmem:[#allocation35_spill] sm:$0xff] %v5049_v51  ;;  %3895 = vmatpush3.bf16.msra.mxu0 %v4955_v40  ;;  %3609 = vmatprep.subr.bf16.mxu1 %v4968_v54  ;;  %v5079_v62 = vpack.c.bf16 %v6092_v25, %v6091_v20  ;;  %v5085_v1 = vpack.c.bf16 %v6093_v41, %v5933_v12  ;;  %v510_v41 = vand.u32 4294901760, %v509_v7 }
  0xc9   : > { %3897 = vmatprep.subr.bf16.mxu0 %v4994_v2  ;;  %v5090_v61 = vsub.f32 %v4825_v14, %v6095_v47  ;;  %v5095_v10 = vsub.f32 %v4837_v19, %v6097_v13  ;;  %v474_v20 = vsub.f32 %v5035_v52, %v5936_v6  ;;  %v3620_v12 = vpack.c.bf16 %v503_v39, %v496_v26 }
  0xca   : > { %6094 = vst [vmem:[#allocation38_spill] sm:$0xff] %v5085_v1  ;;  %v353_v14 = vld [vmem:[#allocation2] sm:$0xff]  ;;  %v6098_v47 = vand.u32 4294901760, %v5015_v18  ;;  %v6101_v19 = vand.u32 4294901760, %v4840_v21  ;;  %v6104_v39 = vand.u32 4294901760, %v5049_v51 }
  0xcb   : > { %6096 = vst [vmem:[#allocation39_spill] sm:$0xff] %v5090_v61  ;;  %3611 = vmatpush3.bf16.msra.mxu1 %v4968_v54  ;;  %v475_v6 = vand.u32 4294901760, %v474_v20  ;;  %v5111_v60 = vand.u32 4294901760, %v353_v14  ;;  %v354_v25 = vld [vmem:[#allocation2 + $0x8] sm:$0xff]  ;;  %v6103_v54 = vand.u32 4294901760, %v4858_v27 }
  0xcc   : > { %v516_v55 = vsub.f32 %v5015_v18, %v6098_v47  ;;  %3899 = vmatpush3.bf16.msra.mxu0 %v4994_v2  ;;  %3613 = vmatprep.subr.bf16.mxu1 %v5028_v9  ;;  %v5115_v26 = vand.u32 4294901760, %v354_v25  ;;  %v5121_v13 = vsub.f32 %v4840_v21, %v6101_v19  ;;  %v484_v38 = vsub.f32 %v5049_v51, %v6104_v39 }
  0xcd   : > { %6099 = vst [vmem:[#allocation40_spill] sm:$0xff] %v5111_v60  ;;  %3901 = vmatprep.subr.bf16.mxu0 %v5063_v3  ;;  %v5126_v20 = vsub.f32 %v4858_v27, %v6103_v54  ;;  %2990 = vmatprep.mubr.f32.mxu1 %v475_v6  ;;  %v5129_v7 = vsub.f32 %v353_v14, %v5111_v60  ;;  %v6105_v47 = vand.u32 4294901760, %v4842_v22  ;;  %v6107_v21 = vand.u32 4294901760, %v4860_v28 }
  0xce   : > { %6100 = vst [vmem:[#allocation41_spill] sm:$0xff] %v5115_v26  ;;  %6102 = vst [vmem:[#allocation42_spill] sm:$0xff] %v5121_v13  ;;  %v5146_v27 = vsub.f32 %v354_v25, %v5115_v26  ;;  %v517_v54 = vand.u32 4294901760, %v516_v55  ;;  %v6109_v6 = vand.u32 4294901760, %v5055_v11  ;;  %v6110_v39 = vand.u32 4294901760, %v5095_v10 }
  0xcf   : > { %v5137_v24 = vsub.f32 %v4842_v22, %v6105_v47  ;;  %v5142_v19 = vsub.f32 %v4860_v28, %v6107_v21  ;;  %3615 = vmatpush3.bf16.msra.mxu1 %v5028_v9  ;;  %v5951_v28 = vand.u32 4294901760, %v5129_v7  ;;  %v6111_v55 = vand.u32 4294901760, %v4874_v33 }
  0xd0   : > { %6108 = vst [vmem:[#allocation44_spill] sm:$0xff] %v5146_v27  ;;  %v523_v14 = vsub.f32 %v5055_v11, %v6109_v6  ;;  %v530_v22 = vsub.f32 %v5095_v10, %v6110_v39  ;;  %3903 = vmatpush3.bf16.msra.mxu0 %v5063_v3  ;;  %3617 = vmatprep.subr.bf16.mxu1 %v5079_v62  ;;  %v6112_v6 = vand.u32 4294901760, %v5040_v59  ;;  %v6113_v39 = vand.u32 4294901760, %v5045_v45 }
  0xd1   : > { %6106 = vst [vmem:[#allocation43_spill] sm:$0xff] %v5137_v24  ;;  %v5162_v21 = vsub.f32 %v4874_v33, %v6111_v55  ;;  %3905 = vmatprep.subr.bf16.mxu0 %v5085_v1  ;;  %3305 = vmatprep.mubr.f32.mxu0 %v5951_v28  ;;  %v485_v47 = vand.u32 4294901760, %v484_v38  ;;  %v6114_v33 = vand.u32 4294901760, %v4876_v34  ;;  %v3624_v16 = vpack.c.bf16 %v517_v54, %v510_v41 }
  0xd2   : > { %v3908_v9 = vpack.c.bf16 %v6113_v39, %v6112_v6  ;;  %v6115_v6 = vand.u32 4294901760, %v5072_v15  ;;  %v6116_v39 = vand.u32 4294901760, %v5090_v61  ;;  %v524_v28 = vand.u32 4294901760, %v523_v14 }
  0xd3   : > { %v5177_v55 = vsub.f32 %v4876_v34, %v6114_v33  ;;  %3619 = vmatpush3.bf16.msra.mxu1 %v5079_v62  ;;  %v531_v38 = vand.u32 4294901760, %v530_v22  ;;  %v6117_v25 = vand.u32 4294901760, %v5126_v20  ;;  %v6118_v33 = vand.u32 4294901760, %v5142_v19 }
  0xd4   : > { %v3912_v51 = vpack.c.bf16 %v6116_v39, %v6115_v6  ;;  %3907 = vmatpush3.bf16.msra.mxu0 %v5085_v1  ;;  %3621 = vmatprep.subr.bf16.mxu1 %v3620_v12  ;;  %v6119_v61 = vand.u32 4294901760, %v4862_v29  ;;  %v6121_v22 = vand.u32 4294901760, %v4872_v32  ;;  %v6123_v54 = vand.u32 4294901760, %v4896_v42 }
  0xd5   : > { %v537_v34 = vsub.f32 %v5126_v20, %v6117_v25  ;;  %v544_v59 = vsub.f32 %v5142_v19, %v6118_v33  ;;  %3909 = vmatprep.subr.bf16.mxu0 %v3908_v9  ;;  %v6124_v6 = vand.u32 4294901760, %v4898_v43  ;;  %v6125_v33 = vand.u32 4294901760, %v5121_v13 }
  0xd6   : > { %v5196_v14 = vsub.f32 %v4862_v29, %v6119_v61  ;;  %v5201_v41 = vsub.f32 %v4872_v32, %v6121_v22  ;;  %v5206_v25 = vsub.f32 %v4896_v42, %v6123_v54  ;;  %2991 = vmatmul.mubr.f32.vlgmr.msra.gmra.mrb[0].mxu1 %v485_v47  ;;  %v6126_v29 = vand.u32 4294901760, %v5137_v24 }
  0xd7   : > { %v5211_v39 = vsub.f32 %v4898_v43, %v6124_v6  ;;  %v6127_v45 = vand.u32 4294901760, %v5162_v21  ;;  %3623 = vmatpush3.bf16.msra.mxu1 %v3620_v12  ;;  %v6128_v22 = vand.u32 4294901760, %v5146_v27  ;;  %v3628_v42 = vpack.c.bf16 %v531_v38, %v524_v28  ;;  %3025 = vmatprep.mubr.f32.mxu1 %v5020_v17 }
  0xd8   : > { %6120 = vst [vmem:[#allocation45_spill] sm:$0xff] %v5196_v14  ;;  %6122 = vst [vmem:[#allocation46_spill] sm:$0xff] %v5201_v41  ;;  %v3916_v61 = vpack.c.bf16 %v6126_v29, %v6125_v33  ;;  %v6129_v54 = vand.u32 4294901760, %v5177_v55  ;;  %v5959_v47 = vand.u32 4294901760, %v5206_v25  ;;  %3625 = vmatprep.subr.bf16.mxu1 %v3624_v16  ;;  %v538_v33 = vand.u32 4294901760, %v537_v34 }
  0xd9   : > { %v551_v32 = vsub.f32 %v5162_v21, %v6127_v45  ;;  %3306 = vmatmul.mubr.f32.vlgmr.msra.gmra.mrb[0].mxu0 %v6128_v22  ;;  %v5958_v6 = vand.u32 4294901760, %v5211_v39  ;;  %v545_v29 = vand.u32 4294901760, %v544_v59  ;;  %v6130_v24 = vand.u32 4294901760, %v4918_v53 }
  0xda   : > { %v558_v43 = vsub.f32 %v5177_v55, %v6129_v54  ;;  %3911 = vmatpush3.bf16.msra.mxu0 %v3908_v9  ;;  %v6131_v12 = vand.u32 4294901760, %v4936_v57  ;;  %v5961_v38 = vand.u32 4294901760, %v5196_v14  ;;  %v5960_v22 = vand.u32 4294901760, %v5201_v41  ;;  %3340 = vmatprep.mubr.f32.mxu0 %v5111_v60 }
  0xdb   : > { %v5230_v45 = vsub.f32 %v4918_v53, %v6130_v24  ;;  %3913 = vmatprep.subr.bf16.mxu0 %v3912_v51  ;;  %v6132_v9 = vand.u32 4294901760, %v4881_v36  ;;  %v6134_v59 = vand.u32 4294901760, %v4883_v37  ;;  %v552_v53 = vand.u32 4294901760, %v551_v32  ;;  %3627 = vmatpush3.bf16.msra.mxu1 %v3624_v16 }
  0xdc   : > { %v5235_v28 = vsub.f32 %v4936_v57, %v6131_v12  ;;  %v6136_v57 = vand.u32 4294901760, %v4911_v49  ;;  %v559_v12 = vand.u32 4294901760, %v558_v43  ;;  %3629 = vmatprep.subr.bf16.mxu1 %v3628_v42  ;;  %v6140_v43 = vand.u32 4294901760, %v4981_v4 }
  0xdd   : > { %v5242_v34 = vsub.f32 %v4881_v36, %v6132_v9  ;;  %v5247_v24 = vsub.f32 %v4883_v37, %v6134_v59  ;;  %v565_v36 = vsub.f32 %v5206_v25, %v5959_v47  ;;  %v572_v37 = vsub.f32 %v5211_v39, %v5958_v6 }
  0xde   : > { %v5253_v54 = vsub.f32 %v4911_v49, %v6136_v57  ;;  %v6138_v9 = vand.u32 4294901760, %v4913_v50  ;;  %3915 = vmatpush3.bf16.msra.mxu0 %v3912_v51  ;;  %v3632_v49 = vpack.c.bf16 %v545_v29, %v538_v33  ;;  %v5962_v59 = vand.u32 4294901760, %v5230_v45 }
  0xdf   : > { %6133 = vst [vmem:[#allocation47_spill] sm:$0xff] %v5242_v34  ;;  %6135 = vst [vmem:[#allocation48_spill] sm:$0xff] %v5247_v24  ;;  %v5272_v57 = vsub.f32 %v4981_v4, %v6140_v43  ;;  %3917 = vmatprep.subr.bf16.mxu0 %v3916_v61  ;;  %v3920_v6 = vpack.c.bf16 %v5960_v22, %v5961_v38  ;;  %v6141_v33 = vand.u32 4294901760, %v4996_v5  ;;  %3631 = vmatpush3.bf16.msra.mxu1 %v3628_v42 }
  0xe0   : > { %6137 = vst [vmem:[#allocation49_spill] sm:$0xff] %v5253_v54  ;;  %v5265_v32 = vsub.f32 %v4913_v50, %v6138_v9  ;;  %v5963_v50 = vand.u32 4294901760, %v5242_v34  ;;  %v5965_v9 = vand.u32 4294901760, %v5253_v54  ;;  %v3636_v4 = vpack.c.bf16 %v559_v12, %v552_v53  ;;  %3633 = vmatprep.subr.bf16.mxu1 %v3632_v49  ;;  %v1774_v54 = vld [vmem:[#allocation9 + $0x168] sm:$0xff] }
  0xe1   : > { %v5283_v29 = vsub.f32 %v4996_v5, %v6141_v33  ;;  %v566_v43 = vand.u32 4294901760, %v565_v36  ;;  %v573_v47 = vand.u32 4294901760, %v572_v37  ;;  %v579_v22 = vsub.f32 %v5230_v45, %v5962_v59 }
  0xe2   : > { %6139 = vst [vmem:[#allocation50_spill] sm:$0xff] %v5265_v32  ;;  %v5964_v16 = vand.u32 4294901760, %v5265_v32  ;;  %3919 = vmatpush3.bf16.msra.mxu0 %v3916_v61  ;;  %v6142_v38 = vand.u32 4294901760, %v5235_v28  ;;  %v5966_v5 = vand.u32 4294901760, %v5272_v57  ;;  %v6143_v42 = vand.u32 4294901760, %v5247_v24 }
  0xe3   : > { %v599_v33 = vand.u32 4294901760, %v5283_v29  ;;  %3921 = vmatprep.subr.bf16.mxu0 %v3920_v6  ;;  %v6144_v61 = vand.u32 4294901760, %v4949_v63  ;;  %v6146_v36 = vand.u32 4294901760, %v4971_v48  ;;  %3635 = vmatpush3.bf16.msra.mxu1 %v3632_v49  ;;  %v6148_v49 = vand.u32 4294901760, %v5000_v35 }
  0xe4   : > { %v586_v51 = vsub.f32 %v5235_v28, %v6142_v38  ;;  %v3924_v53 = vpack.c.bf16 %v6143_v42, %v5963_v50  ;;  %v3640_v38 = vpack.c.bf16 %v573_v47, %v566_v43  ;;  %v3928_v59 = vpack.c.bf16 %v5964_v16, %v5965_v9  ;;  %3637 = vmatprep.subr.bf16.mxu1 %v3636_v4 }
  0xe5   : > { %v5302_v12 = vsub.f32 %v4949_v63, %v6144_v61  ;;  %v5307_v37 = vsub.f32 %v4971_v48, %v6146_v36  ;;  %v580_v42 = vand.u32 4294901760, %v579_v22  ;;  %v593_v63 = vsub.f32 %v5272_v57, %v5966_v5 }
  0xe6   : > { %3923 = vmatpush3.bf16.msra.mxu0 %v3920_v6  ;;  %v587_v50 = vand.u32 4294901760, %v586_v51  ;;  %v600_v61 = vsub.f32 %v5283_v29, %v599_v33  ;;  %v5322_v43 = vsub.f32 %v5000_v35, %v6148_v49  ;;  %v6150_v6 = vand.u32 4294901760, %v5002_v8 }
  0xe7   : > { %6145 = vst [vmem:[#allocation51_spill] sm:$0xff] %v5302_v12  ;;  %6147 = vst [vmem:[#allocation52_spill] sm:$0xff] %v5307_v37  ;;  %3925 = vmatprep.subr.bf16.mxu0 %v3924_v53  ;;  %v5970_v48 = vand.u32 4294901760, %v5302_v12  ;;  %v5967_v47 = vand.u32 4294901760, %v5307_v37  ;;  %3639 = vmatpush3.bf16.msra.mxu1 %v3636_v4  ;;  %v594_v36 = vand.u32 4294901760, %v593_v63  ;;  %v6152_v5 = vand.u32 4294901760, %v4961_v46 }
  0xe8   : > { %6149 = vst [vmem:[#allocation53_spill] sm:$0xff] %v5322_v43  ;;  %v5327_v22 = vsub.f32 %v5002_v8, %v6150_v6  ;;  %3641 = vmatprep.subr.bf16.mxu1 %v3640_v38  ;;  %v3644_v51 = vpack.c.bf16 %v587_v50, %v580_v42  ;;  %v601_v16 = vand.u32 4294901760, %v600_v61  ;;  %v5969_v35 = vand.u32 4294901760, %v5322_v43 }
  0xe9   : > { %v3932_v9 = vpack.c.bf16 %v5967_v47, %v5970_v48  ;;  %v6153_v8 = vand.u32 4294901760, %v4976_v58  ;;  %v6154_v50 = vand.u32 4294901760, %v4987_v0  ;;  %v6156_v61 = vand.u32 4294901760, %v5055_v11 }
  0xea   : > { %6151 = vst [vmem:[#allocation54_spill] sm:$0xff] %v5327_v22  ;;  %3927 = vmatpush3.bf16.msra.mxu0 %v3924_v53  ;;  %v5968_v49 = vand.u32 4294901760, %v5327_v22  ;;  %v6155_v53 = vand.u32 4294901760, %v5015_v18  ;;  %v3648_v63 = vpack.c.bf16 %v601_v16, %v594_v36  ;;  %v6157_v6 = vand.u32 4294901760, %v5095_v10 }
  0xeb   : > { %3929 = vmatprep.subr.bf16.mxu0 %v3928_v59  ;;  %v5339_v4 = vpack.c.bf16 %v6153_v8, %v6152_v5  ;;  %3643 = vmatpush3.bf16.msra.mxu1 %v3640_v38  ;;  %v6158_v16 = vand.u32 4294901760, %v5126_v20  ;;  %v6159_v38 = vand.u32 4294901760, %v5142_v19  ;;  %v6160_v8 = vand.u32 4294901760, %v5162_v21 }
  0xec   : > { %v5345_v42 = vpack.c.bf16 %v6155_v53, %v6154_v50  ;;  %3645 = vmatprep.subr.bf16.mxu1 %v3644_v51  ;;  %v5351_v47 = vpack.c.bf16 %v6157_v6, %v6156_v61  ;;  %v3936_v5 = vpack.c.bf16 %v5968_v49, %v5969_v35  ;;  %v6161_v50 = vand.u32 4294901760, %v5177_v55 }
  0xed   : > { %v5363_v36 = vpack.c.bf16 %v6159_v38, %v6158_v16  ;;  %v6165_v61 = vand.u32 4294901760, %v5235_v28 }
  0xee   : > { %3931 = vmatpush3.bf16.msra.mxu0 %v3928_v59  ;;  %v3652_v59 = vpack.c.bf16 %v4976_v58, %v4961_v46  ;;  %v5369_v53 = vpack.c.bf16 %v6161_v50, %v6160_v8  ;;  %v6162_v46 = vand.u32 4294901760, %v5206_v25  ;;  %v6163_v58 = vand.u32 4294901760, %v5211_v39  ;;  %v1763_v8 = vld [vmem:[#allocation9 + $0x110] sm:$0xff] }
  0xef   : > { %3933 = vmatprep.subr.bf16.mxu0 %v3932_v9  ;;  %3647 = vmatpush3.bf16.msra.mxu1 %v3644_v51 }
  0xf0   : > { %3649 = vmatprep.subr.bf16.mxu1 %v3648_v63  ;;  %v5378_v51 = vpack.c.bf16 %v6163_v58, %v6162_v46  ;;  %v1784_v46 = vand.u32 4294901760, %v1763_v8 }
  0xf2   : > { %3935 = vmatpush3.bf16.msra.mxu0 %v3932_v9  ;;  %v3656_v9 = vpack.c.bf16 %v5015_v18, %v4987_v0  ;;  %v3660_v18 = vpack.c.bf16 %v5095_v10, %v5055_v11  ;;  %v6166_v0 = vand.u32 4294901760, %v5272_v57  ;;  %v3668_v11 = vpack.c.bf16 %v5177_v55, %v5162_v21  ;;  %v1758_v10 = vld [vmem:[#allocation2 + $0x2] sm:$0xff] }
  0xf3   : > { %3937 = vmatprep.subr.bf16.mxu0 %v3936_v5  ;;  %3651 = vmatpush3.bf16.msra.mxu1 %v3648_v63  ;;  %v6164_v63 = vand.u32 4294901760, %v5230_v45  ;;  %v1761_v21 = vld [vmem:[#allocation9 + $0x100] sm:$0xff]  ;;  %v1762_v55 = vld [vmem:[#allocation9 + $0x108] sm:$0xff] }
  0xf4   : > { %3653 = vmatprep.subr.bf16.mxu1 %v3652_v59  ;;  %v1781_v38 = vand.u32 4294901760, %v1762_v55 }
  0xf5   : > { %v5386_v6 = vpack.c.bf16 %v6165_v61, %v6164_v63  ;;  %v1766_v63 = vld [vmem:[#allocation9 + $0x128] sm:$0xff]  ;;  %v5432_v61 = vsub.f32 %v1763_v8, %v1784_v46 }
  0xf6   : > { %3939 = vmatpush3.bf16.msra.mxu0 %v3936_v5  ;;  %3026 = vmatmul.mubr.f32.vlgmr.msra.gmra.mrb[0].mxu1 %v5032_v31  ;;  %v5396_v5 = vpack.c.bf16 %v599_v33, %v6166_v0  ;;  %v3672_v33 = vpack.c.bf16 %v5211_v39, %v5206_v25  ;;  %v3680_v25 = vpack.c.bf16 %v5283_v29, %v5272_v57  ;;  %v1778_v39 = vand.u32 4294901760, %v1761_v21  ;;  %v1765_v29 = vld [vmem:[#allocation9 + $0x120] sm:$0xff]  ;;  %v6169_v8 = vld [vmem:[#allocation35_spill] sm:$0xff] }
  0xf7   : > { %3941 = vmatprep.subr.bf16.mxu0 %v4848_v23  ;;  %3655 = vmatpush3.bf16.msra.mxu1 %v3652_v59  ;;  %v3664_v59 = vpack.c.bf16 %v5142_v19, %v5126_v20  ;;  %v5410_v20 = vand.u32 4294901760, %v1758_v10  ;;  %v3676_v19 = vpack.c.bf16 %v5235_v28, %v5230_v45  ;;  %v1764_v45 = vld [vmem:[#allocation9 + $0x118] sm:$0xff] }
  0xf8   : > { %3657 = vmatprep.subr.bf16.mxu1 %v3656_v9  ;;  %3060 = vmatprep.mubr.f32.mxu1 %v5035_v52  ;;  %v5424_v50 = vsub.f32 %v1761_v21, %v1778_v39  ;;  %v1787_v58 = vand.u32 4294901760, %v1764_v45  ;;  %v5430_v57 = vpack.c.bf16 %v1781_v38, %v1778_v39  ;;  %v1767_v39 = vld [vmem:[#allocation9 + $0x130] sm:$0xff] }
  0xf9   : > { %3341 = vmatmul.mubr.f32.vlgmr.msra.gmra.mrb[0].mxu0 %v5115_v26  ;;  %v5417_v16 = vsub.f32 %v1758_v10, %v5410_v20  ;;  %v6167_v10 = vld [vmem:[#allocation22_spill] sm:$0xff] }
  0xfa   : > { %3943 = vmatpush3.bf16.msra.mxu0 %v4848_v23  ;;  %3375 = vmatprep.mubr.f32.mxu0 %v5111_v60  ;;  %v5973_v0 = vand.u32 4294901760, %v5424_v50 }
  0xfb   : > { %3945 = vmatprep.subr.bf16.mxu0 %v4869_v30  ;;  %3659 = vmatpush3.bf16.msra.mxu1 %v3656_v9  ;;  %v5971_v28 = vand.u32 4294901760, %v5417_v16  ;;  %v5426_v9 = vsub.f32 %v1762_v55, %v1781_v38  ;;  %v5450_v55 = vpack.c.bf16 %v1787_v58, %v1784_v46  ;;  %v1768_v38 = vld [vmem:[#allocation9 + $0x138] sm:$0xff]  ;;  %v6170_v46 = vld [vmem:[#allocation23_spill] sm:$0xff] }
  0xfc   : > { %3661 = vmatprep.subr.bf16.mxu1 %v3660_v18 }
  0xfe   : > { %3947 = vmatpush3.bf16.msra.mxu0 %v4869_v30 }
  0xff   : > { %3949 = vmatprep.subr.bf16.mxu0 %v4905_v44  ;;  %3663 = vmatpush3.bf16.msra.mxu1 %v3660_v18  ;;  %v1861_v18 = vsub.f32 %v5417_v16, %v5971_v28  ;;  %v1799_v28 = vand.u32 4294901760, %v1768_v38 }
 0x100   : > { %3665 = vmatprep.subr.bf16.mxu1 %v3664_v59 }
 0x101   : > { %v5478_v37 = vsub.f32 %v1768_v38, %v1799_v28  ;;  %v1772_v38 = vld [vmem:[#allocation9 + $0x158] sm:$0xff] }
 0x102   : > { %3951 = vmatpush3.bf16.msra.mxu0 %v4905_v44 }
 0x103   : > { %3953 = vmatprep.subr.bf16.mxu0 %v4934_v56  ;;  %3667 = vmatpush3.bf16.msra.mxu1 %v3664_v59  ;;  %v5972_v59 = vand.u32 4294901760, %v5426_v9  ;;  %v6197_v44 = vand.u32 4294901760, %v5478_v37 }
 0x104   : > { %3669 = vmatprep.subr.bf16.mxu1 %v3668_v11 }
 0x105   : > { %v5447_v21 = vpack.c.bf16 %v5972_v59, %v5973_v0  ;;  %v1770_v59 = vld [vmem:[#allocation9 + $0x148] sm:$0xff]  ;;  %v6173_v0 = vand.u32 4294901760, %v5035_v52 }
 0x106   : > { %3955 = vmatpush3.bf16.msra.mxu0 %v4934_v56 }
 0x107   : > { %3957 = vmatprep.subr.bf16.mxu0 %v4955_v40  ;;  %3671 = vmatpush3.bf16.msra.mxu1 %v3668_v11  ;;  %v5439_v11 = vsub.f32 %v1764_v45, %v1787_v58  ;;  %6168 = vst [vmem:[#allocation22_spill] sm:$0xff] %v5447_v21  ;;  %v1862_v45 = vand.u32 4294901760, %v1861_v18  ;;  %v1796_v58 = vand.u32 4294901760, %v1767_v39 }
 0x108   : > { %3673 = vmatprep.subr.bf16.mxu1 %v3672_v33 }
 0x109   : > { %v5981_v49 = vand.u32 4294901760, %v5439_v11  ;;  %v5476_v43 = vsub.f32 %v1767_v39, %v1796_v58  ;;  %v1771_v39 = vld [vmem:[#allocation9 + $0x150] sm:$0xff] }
 0x10a   : > { %3959 = vmatpush3.bf16.msra.mxu0 %v4955_v40 }
 0x10b   : > { %3961 = vmatprep.subr.bf16.mxu0 %v4994_v2  ;;  %3675 = vmatpush3.bf16.msra.mxu1 %v3672_v33  ;;  %v1790_v33 = vand.u32 4294901760, %v1765_v29 }
 0x10c   : > { %3677 = vmatprep.subr.bf16.mxu1 %v3676_v19 }
 0x10d   : > { %v5455_v35 = vsub.f32 %v1765_v29, %v1790_v33 }
 0x10e   : > { %3963 = vmatpush3.bf16.msra.mxu0 %v4994_v2 }
 0x10f   : > { %3965 = vmatprep.subr.bf16.mxu0 %v5063_v3  ;;  %3679 = vmatpush3.bf16.msra.mxu1 %v3676_v19  ;;  %v1793_v19 = vand.u32 4294901760, %v1766_v63 }
 0x110   : > { %3681 = vmatprep.subr.bf16.mxu1 %v3680_v25 }
 0x111   : > { %v5457_v48 = vsub.f32 %v1766_v63, %v1793_v19  ;;  %v5470_v29 = vpack.c.bf16 %v1793_v19, %v1790_v33  ;;  %v1769_v63 = vld [vmem:[#allocation9 + $0x140] sm:$0xff]  ;;  %v6174_v33 = vld [vmem:[#allocation24_spill] sm:$0xff] }
 0x112   : > { %3967 = vmatpush3.bf16.msra.mxu0 %v5063_v3  ;;  %v1802_v19 = vand.u32 4294901760, %v1769_v63 }
 0x113   : > { %3969 = vmatprep.subr.bf16.mxu0 %v5085_v1  ;;  %3683 = vmatpush3.bf16.msra.mxu1 %v3680_v25  ;;  %v5982_v25 = vand.u32 4294901760, %v5432_v61  ;;  %6172 = vst [vmem:[#allocation23_spill] sm:$0xff] %v5470_v29  ;;  %v5987_v22 = vand.u32 4294901760, %v5457_v48 }
 0x114   : > { %3685 = vmatprep.subr.bf16.mxu1 %v6167_v10  ;;  %v5494_v12 = vsub.f32 %v1769_v63, %v1802_v19 }
 0x115   : > { %v5467_v18 = vpack.c.bf16 %v5981_v49, %v5982_v25  ;;  %v1805_v49 = vand.u32 4294901760, %v1770_v59  ;;  %v5999_v25 = vand.u32 4294901760, %v5478_v37 }
 0x116   : > { %3971 = vmatpush3.bf16.msra.mxu0 %v5085_v1  ;;  %3061 = vmatmul.mubr.f32.vlgmr.msra.gmra.mrb[0].mxu1 %v6169_v8  ;;  %v6013_v60 = vand.u32 4294901760, %v5494_v12 }
 0x117   : > { %3973 = vmatprep.subr.bf16.mxu0 %v5430_v57  ;;  %3687 = vmatpush3.bf16.msra.mxu1 %v6167_v10  ;;  %6171 = vst [vmem:[#allocation35_spill] sm:$0xff] %v5467_v18  ;;  %v5496_v32 = vsub.f32 %v1770_v59, %v1805_v49  ;;  %v5508_v63 = vpack.c.bf16 %v1805_v49, %v1802_v19  ;;  %v1773_v59 = vld [vmem:[#allocation9 + $0x160] sm:$0xff]  ;;  %v1817_v19 = vand.u32 4294901760, %v1774_v54 }
 0x118   : > { %3689 = vmatprep.subr.bf16.mxu1 %v6170_v46  ;;  %3095 = vmatprep.mubr.f32.mxu1 %v6173_v0  ;;  %v5490_v0 = vpack.c.bf16 %v1799_v28, %v1796_v58  ;;  %v1759_v28 = vld [vmem:[#allocation2 + $0xa] sm:$0xff]  ;;  %v1814_v49 = vand.u32 4294901760, %v1773_v59 }
 0x119   : > { %3376 = vmatmul.mubr.f32.vlgmr.msra.gmra.mrb[0].mxu0 %v5115_v26  ;;  %v5988_v26 = vand.u32 4294901760, %v5455_v35  ;;  %6179 = vst [vmem:[#allocation56_spill] sm:$0xff] %v5508_v63  ;;  %v6012_v18 = vand.u32 4294901760, %v5496_v32  ;;  %v5517_v21 = vand.u32 4294901760, %v1759_v28  ;;  %v5534_v13 = vsub.f32 %v1774_v54, %v1817_v19 }
 0x11a   : > { %3975 = vmatpush3.bf16.msra.mxu0 %v5430_v57  ;;  %3410 = vmatprep.mubr.f32.mxu0 %v1862_v45  ;;  %6176 = vst [vmem:[#allocation55_spill] sm:$0xff] %v5490_v0  ;;  %v6000_v45 = vand.u32 4294901760, %v5476_v43  ;;  %v5532_v1 = vsub.f32 %v1773_v59, %v1814_v49  ;;  %v5549_v54 = vpack.c.bf16 %v1817_v19, %v1814_v49  ;;  %v6186_v59 = vand.u32 4294901760, %v5424_v50  ;;  %v6188_v19 = vld [vmem:[#allocation32_spill] sm:$0xff] }
 0x11b   : > { %3977 = vmatprep.subr.bf16.mxu0 %v5450_v55  ;;  %3691 = vmatpush3.bf16.msra.mxu1 %v6170_v46  ;;  %v5487_v52 = vpack.c.bf16 %v5987_v22, %v5988_v26  ;;  %v6177_v22 = vld [vmem:[#allocation26_spill] sm:$0xff]  ;;  %v1808_v26 = vand.u32 4294901760, %v1771_v39  ;;  %v5538_v27 = vsub.f32 %v1759_v28, %v5517_v21  ;;  %v6028_v2 = vand.u32 4294901760, %v5534_v13 }
 0x11c   : > { %3693 = vmatprep.subr.bf16.mxu1 %v6174_v33  ;;  %v5505_v58 = vpack.c.bf16 %v5999_v25, %v6000_v45  ;;  %v6180_v25 = vld [vmem:[#allocation28_spill] sm:$0xff]  ;;  %v5525_v45 = vpack.c.bf16 %v6012_v18, %v6013_v60  ;;  %v6183_v18 = vld [vmem:[#allocation30_spill] sm:$0xff]  ;;  %6185 = vst [vmem:[#allocation58_spill] sm:$0xff] %v5549_v54  ;;  %v1882_v28 = vsub.f32 %v5424_v50, %v6186_v59  ;;  %v6029_v3 = vand.u32 4294901760, %v5532_v1 }
 0x11d   : > { %6175 = vst [vmem:[#allocation24_spill] sm:$0xff] %v5487_v52  ;;  %v1811_v52 = vand.u32 4294901760, %v1772_v38  ;;  %v5512_v24 = vsub.f32 %v1771_v39, %v1808_v26 }
 0x11e   : > { %3979 = vmatpush3.bf16.msra.mxu0 %v5450_v55  ;;  %6178 = vst [vmem:[#allocation26_spill] sm:$0xff] %v5505_v58  ;;  %6181 = vst [vmem:[#allocation28_spill] sm:$0xff] %v5525_v45  ;;  %v1776_v58 = vld [vmem:[#allocation9 + $0x178] sm:$0xff]  ;;  %v6187_v45 = vand.u32 4294901760, %v5426_v9 }
 0x11f   : > { %3981 = vmatprep.subr.bf16.mxu0 %v5470_v29  ;;  %3695 = vmatpush3.bf16.msra.mxu1 %v6174_v33  ;;  %v5514_v34 = vsub.f32 %v1772_v38, %v1811_v52  ;;  %v5528_v39 = vpack.c.bf16 %v1811_v52, %v1808_v26  ;;  %v1775_v38 = vld [vmem:[#allocation9 + $0x170] sm:$0xff]  ;;  %v6024_v41 = vand.u32 4294901760, %v5512_v24  ;;  %v1823_v52 = vand.u32 4294901760, %v1776_v58 }
 0x120   : > { %3697 = vmatprep.subr.bf16.mxu1 %v6177_v22  ;;  %v1820_v26 = vand.u32 4294901760, %v1775_v38  ;;  %v1889_v15 = vsub.f32 %v5426_v9, %v6187_v45  ;;  %v5573_v45 = vpack.c.bf16 %v6028_v2, %v6029_v3  ;;  %v6192_v2 = vand.u32 4294901760, %v5538_v27 }
 0x121   : > { %6182 = vst [vmem:[#allocation57_spill] sm:$0xff] %v5528_v39  ;;  %v6023_v14 = vand.u32 4294901760, %v5514_v34 }
 0x122   : > { %3983 = vmatpush3.bf16.msra.mxu0 %v5470_v29  ;;  %v5567_v59 = vpack.c.bf16 %v1823_v52, %v1820_v26  ;;  %6189 = vst [vmem:[#allocation32_spill] sm:$0xff] %v5573_v45  ;;  %v1871_v3 = vsub.f32 %v5538_v27, %v6192_v2 }
 0x123   : > { %3985 = vmatprep.subr.bf16.mxu0 %v5490_v0  ;;  %3699 = vmatpush3.bf16.msra.mxu1 %v6177_v22  ;;  %v5546_v60 = vpack.c.bf16 %v6023_v14, %v6024_v41  ;;  %v5561_v14 = vsub.f32 %v1776_v58, %v1823_v52  ;;  %v1883_v58 = vand.u32 4294901760, %v1882_v28  ;;  %v6190_v41 = vand.u32 4294901760, %v5432_v61 }
 0x124   : > { %3701 = vmatprep.subr.bf16.mxu1 %v6180_v25  ;;  %v1872_v2 = vand.u32 4294901760, %v1871_v3 }
 0x125   : > { %6184 = vst [vmem:[#allocation30_spill] sm:$0xff] %v5546_v60  ;;  %v1896_v49 = vsub.f32 %v5432_v61, %v6190_v41  ;;  %v6191_v60 = vand.u32 4294901760, %v5439_v11  ;;  %v1986_v52 = vand.u32 4294901760, %v5561_v14 }
 0x126   : > { %3987 = vmatpush3.bf16.msra.mxu0 %v5490_v0 }
 0x127   : > { %3989 = vmatprep.subr.bf16.mxu0 %v5508_v63  ;;  %3703 = vmatpush3.bf16.msra.mxu1 %v6180_v25  ;;  %v1897_v0 = vand.u32 4294901760, %v1896_v49  ;;  %v1931_v49 = vsub.f32 %v5478_v37, %v6197_v44 }
 0x128   : > { %3705 = vmatprep.subr.bf16.mxu1 %v6183_v18 }
 0x12a   : > { %3991 = vmatpush3.bf16.msra.mxu0 %v5508_v63  ;;  %v5559_v63 = vsub.f32 %v1775_v38, %v1820_v26  ;;  %v1890_v38 = vand.u32 4294901760, %v1889_v15  ;;  %v6193_v15 = vand.u32 4294901760, %v5455_v35 }
 0x12b   : > { %3993 = vmatprep.subr.bf16.mxu0 %v5528_v39  ;;  %3707 = vmatpush3.bf16.msra.mxu1 %v6183_v18 }
 0x12c   : > { %3709 = vmatprep.subr.bf16.mxu1 %v6188_v19  ;;  %v1979_v26 = vand.u32 4294901760, %v5559_v63  ;;  %v1910_v41 = vsub.f32 %v5455_v35, %v6193_v15  ;;  %v4004_v40 = vpack.c.bf16 %v1890_v38, %v1883_v58  ;;  %v6199_v58 = vand.u32 4294901760, %v5494_v12 }
 0x12e   : > { %3995 = vmatpush3.bf16.msra.mxu0 %v5528_v39  ;;  %v1903_v39 = vsub.f32 %v5439_v11, %v6191_v60  ;;  %v6194_v60 = vand.u32 4294901760, %v5457_v48  ;;  %v5596_v45 = vpack.c.bf16 %v1986_v52, %v1979_v26  ;;  %v1938_v38 = vsub.f32 %v5494_v12, %v6199_v58 }
 0x12f   : > { %3997 = vmatprep.subr.bf16.mxu0 %v5549_v54  ;;  %3711 = vmatpush3.bf16.msra.mxu1 %v6188_v19 }
 0x130   : > { %3713 = vmatprep.subr.bf16.mxu1 %v5079_v62  ;;  %v1917_v28 = vsub.f32 %v5457_v48, %v6194_v60  ;;  %6195 = vst [vmem:[#allocation59_spill] sm:$0xff] %v5596_v45  ;;  %v1904_v56 = vand.u32 4294901760, %v1903_v39  ;;  %v6196_v60 = vand.u32 4294901760, %v5476_v43  ;;  %v6198_v39 = vand.u32 4294901760, %v6169_v8 }
 0x131   : > { %v6202_v8 = vand.u32 4294901760, %v5514_v34 }
 0x132   : > { %3999 = vmatpush3.bf16.msra.mxu0 %v5549_v54  ;;  %v1911_v54 = vand.u32 4294901760, %v1910_v41  ;;  %v1918_v15 = vand.u32 4294901760, %v1917_v28  ;;  %v4008_v29 = vpack.c.bf16 %v1904_v56, %v1897_v0  ;;  %v1924_v45 = vsub.f32 %v5476_v43, %v6196_v60 }
 0x133   : > { %4001 = vmatprep.subr.bf16.mxu0 %v5567_v59  ;;  %3715 = vmatpush3.bf16.msra.mxu1 %v5079_v62  ;;  %v1932_v0 = vand.u32 4294901760, %v1931_v49  ;;  %v6200_v41 = vand.u32 4294901760, %v5496_v32  ;;  %v1939_v28 = vand.u32 4294901760, %v1938_v38  ;;  %v6203_v60 = vand.u32 4294901760, %v5532_v1 }
 0x134   : > { %3717 = vmatprep.subr.bf16.mxu1 %v5339_v4  ;;  %v4012_v3 = vpack.c.bf16 %v1918_v15, %v1911_v54  ;;  %v1925_v56 = vand.u32 4294901760, %v1924_v45  ;;  %v1959_v54 = vsub.f32 %v5514_v34, %v6202_v8  ;;  %v1987_v38 = vsub.f32 %v5561_v14, %v1986_v52  ;;  %v6225_v8 = vld [vmem:[#allocation44_spill] sm:$0xff] }
 0x135   : > { %v1945_v44 = vsub.f32 %v5496_v32, %v6200_v41  ;;  %v1966_v49 = vsub.f32 %v5532_v1, %v6203_v60 }
 0x136   : > { %4003 = vmatpush3.bf16.msra.mxu0 %v5567_v59  ;;  %3096 = vmatmul.mubr.f32.vlgmr.msra.gmra.mrb[0].mxu1 %v6198_v39  ;;  %v4016_v45 = vpack.c.bf16 %v1932_v0, %v1925_v56  ;;  %v6204_v39 = vand.u32 4294901760, %v5534_v13  ;;  %v1980_v0 = vsub.f32 %v5559_v63, %v1979_v26 }
 0x137   : > { %4005 = vmatprep.subr.bf16.mxu0 %v4004_v40  ;;  %3719 = vmatpush3.bf16.msra.mxu1 %v5339_v4 }
 0x138   : > { %3721 = vmatprep.subr.bf16.mxu1 %v5345_v42  ;;  %3130 = vmatprep.mubr.f32.mxu1 %v5020_v17  ;;  %v1973_v58 = vsub.f32 %v5534_v13, %v6204_v39 }
 0x139   : > { %3411 = vmatmul.mubr.f32.vlgmr.msra.gmra.mrb[0].mxu0 %v1872_v2  ;;  %v1946_v2 = vand.u32 4294901760, %v1945_v44  ;;  %v1981_v44 = vand.u32 4294901760, %v1980_v0 }
 0x13a   : > { %4007 = vmatpush3.bf16.msra.mxu0 %v4004_v40  ;;  %3445 = vmatprep.mubr.f32.mxu0 %v5410_v20  ;;  %v6201_v40 = vand.u32 4294901760, %v5512_v24  ;;  %v1974_v56 = vand.u32 4294901760, %v1973_v58 }
 0x13b   : > { %4009 = vmatprep.subr.bf16.mxu0 %v4008_v29  ;;  %3723 = vmatpush3.bf16.msra.mxu1 %v5345_v42  ;;  %v4020_v15 = vpack.c.bf16 %v1946_v2, %v1939_v28  ;;  %v6227_v28 = vld [vmem:[#allocation42_spill] sm:$0xff] }
 0x13c   : > { %3725 = vmatprep.subr.bf16.mxu1 %v5351_v47  ;;  %v1952_v4 = vsub.f32 %v5512_v24, %v6201_v40  ;;  %v6228_v2 = vand.u32 4294901760, %v6227_v28 }
 0x13e   : > { %4011 = vmatpush3.bf16.msra.mxu0 %v4008_v29  ;;  %v1953_v42 = vand.u32 4294901760, %v1952_v4  ;;  %v1960_v29 = vand.u32 4294901760, %v1959_v54  ;;  %v6224_v4 = vld [vmem:[#allocation58_spill] sm:$0xff]  ;;  %v6226_v54 = vand.u32 4294901760, %v6225_v8 }
 0x13f   : > { %4013 = vmatprep.subr.bf16.mxu0 %v4012_v3  ;;  %3727 = vmatpush3.bf16.msra.mxu1 %v5351_v47 }
 0x140   : > { %3729 = vmatprep.subr.bf16.mxu1 %v5363_v36  ;;  %v4024_v47 = vpack.c.bf16 %v1960_v29, %v1953_v42  ;;  %v1207_v42 = vsub.f32 %v6227_v28, %v6228_v2  ;;  %v6229_v29 = vld [vmem:[#allocation43_spill] sm:$0xff] }
 0x142   : > { %4015 = vmatpush3.bf16.msra.mxu0 %v4012_v3  ;;  %v1967_v3 = vand.u32 4294901760, %v1966_v49  ;;  %v6231_v49 = vld [vmem:[#allocation38_spill] sm:$0xff] }
 0x143   : > { %4017 = vmatprep.subr.bf16.mxu0 %v4016_v45  ;;  %3731 = vmatpush3.bf16.msra.mxu1 %v5363_v36  ;;  %v1988_v36 = vand.u32 4294901760, %v1987_v38 }
 0x144   : > { %3733 = vmatprep.subr.bf16.mxu1 %v5369_v53  ;;  %v4028_v41 = vpack.c.bf16 %v1974_v56, %v1967_v3  ;;  %v1208_v56 = vand.u32 4294901760, %v1207_v42  ;;  %v6251_v42 = vld [vmem:[#allocation52_spill] sm:$0xff] }
 0x145   : > { %v4032_v40 = vpack.c.bf16 %v1988_v36, %v1981_v44 }
 0x146   : > { %4019 = vmatpush3.bf16.msra.mxu0 %v4016_v45  ;;  %v1168_v45 = vsub.f32 %v6225_v8, %v6226_v54  ;;  %v6249_v54 = vld [vmem:[#allocation51_spill] sm:$0xff] }
 0x147   : > { %4021 = vmatprep.subr.bf16.mxu0 %v4020_v15  ;;  %3735 = vmatpush3.bf16.msra.mxu1 %v5369_v53  ;;  %v4036_v53 = vpack.c.bf16 %v5426_v9, %v5424_v50  ;;  %v6216_v50 = vld [vmem:[#allocation34_spill] sm:$0xff] }
 0x148   : > { %3737 = vmatprep.subr.bf16.mxu1 %v5378_v51  ;;  %v6217_v9 = vand.u32 4294901760, %v6216_v50  ;;  %v1169_v3 = vand.u32 4294901760, %v1168_v45  ;;  %v6250_v45 = vand.u32 4294901760, %v6249_v54 }
 0x14a   : > { %4023 = vmatpush3.bf16.msra.mxu0 %v4020_v15  ;;  %v6230_v15 = vand.u32 4294901760, %v6229_v29  ;;  %v1263_v2 = vsub.f32 %v6249_v54, %v6250_v45 }
 0x14b   : > { %4025 = vmatprep.subr.bf16.mxu0 %v4024_v47  ;;  %3739 = vmatpush3.bf16.msra.mxu1 %v5378_v51  ;;  %v4040_v51 = vpack.c.bf16 %v5439_v11, %v5432_v61  ;;  %v1186_v61 = vsub.f32 %v6216_v50, %v6217_v9  ;;  %v6218_v11 = vld [vmem:[#allocation57_spill] sm:$0xff] }
 0x14c   : > { %3741 = vmatprep.subr.bf16.mxu1 %v5386_v6  ;;  %v1214_v60 = vsub.f32 %v6229_v29, %v6230_v15  ;;  %v6252_v15 = vand.u32 4294901760, %v6251_v42 }
 0x14e   : > { %4027 = vmatpush3.bf16.msra.mxu0 %v4024_v47  ;;  %v1215_v0 = vand.u32 4294901760, %v1214_v60  ;;  %v1270_v60 = vsub.f32 %v6251_v42, %v6252_v15 }
 0x14f   : > { %4029 = vmatprep.subr.bf16.mxu0 %v4028_v41  ;;  %3743 = vmatpush3.bf16.msra.mxu1 %v5386_v6  ;;  %v4044_v6 = vpack.c.bf16 %v5457_v48, %v5455_v35  ;;  %v4056_v48 = vpack.c.bf16 %v5514_v34, %v5512_v24  ;;  %v6205_v34 = vand.u32 4294901760, %v5129_v7 }
 0x150   : > { %3745 = vmatprep.subr.bf16.mxu1 %v5396_v5 }
 0x151   : > { %v1158_v24 = vsub.f32 %v5129_v7, %v6205_v34 }
 0x152   : > { %4031 = vmatpush3.bf16.msra.mxu0 %v4028_v41  ;;  %v6232_v41 = vld [vmem:[#allocation45_spill] sm:$0xff] }
 0x153   : > { %4033 = vmatprep.subr.bf16.mxu0 %v4032_v40  ;;  %3747 = vmatpush3.bf16.msra.mxu1 %v5396_v5  ;;  %v4048_v5 = vpack.c.bf16 %v5478_v37, %v5476_v43  ;;  %v4060_v37 = vpack.c.bf16 %v5534_v13, %v5532_v1  ;;  %v1159_v1 = vand.u32 4294901760, %v1158_v24  ;;  %v6207_v13 = vld [vmem:[#allocation25_spill] sm:$0xff]  ;;  %v6213_v43 = vld [vmem:[#allocation31_spill] sm:$0xff]  ;;  %v6233_v44 = vand.u32 4294901760, %v6232_v41 }
 0x154   : > { %3749 = vmatprep.subr.bf16.mxu1 %v6167_v10 }
 0x155   : > { %v1221_v36 = vsub.f32 %v6232_v41, %v6233_v44 }
 0x156   : > { %4035 = vmatpush3.bf16.msra.mxu0 %v4032_v40  ;;  %3131 = vmatmul.mubr.f32.vlgmr.msra.gmra.mrb[0].mxu1 %v5032_v31  ;;  %v6234_v40 = vld [vmem:[#allocation46_spill] sm:$0xff] }
 0x157   : > { %4037 = vmatprep.subr.bf16.mxu0 %v4036_v53  ;;  %3751 = vmatpush3.bf16.msra.mxu1 %v6167_v10  ;;  %v6219_v10 = vld [vmem:[#allocation36_spill] sm:$0xff] }
 0x158   : > { %3753 = vmatprep.subr.bf16.mxu1 %v6170_v46  ;;  %3165 = vmatprep.mubr.f32.mxu1 %v5020_v17  ;;  %v4052_v17 = vpack.c.bf16 %v5496_v32, %v5494_v12  ;;  %v4064_v32 = vpack.c.bf16 %v5561_v14, %v5559_v63  ;;  %v6210_v14 = vld [vmem:[#allocation55_spill] sm:$0xff]  ;;  %v6211_v12 = vld [vmem:[#allocation29_spill] sm:$0xff] }
 0x159   : > { %3446 = vmatmul.mubr.f32.vlgmr.msra.gmra.mrb[0].mxu0 %v5517_v21 }
 0x15a   : > { %4039 = vmatpush3.bf16.msra.mxu0 %v4036_v53  ;;  %3480 = vmatprep.mubr.f32.mxu0 %v5417_v16  ;;  %v6235_v53 = vand.u32 4294901760, %v6234_v40 }
 0x15b   : > { %4041 = vmatprep.subr.bf16.mxu0 %v4040_v51  ;;  %3755 = vmatpush3.bf16.msra.mxu1 %v6170_v46  ;;  %v1187_v46 = vand.u32 4294901760, %v1186_v61 }
 0x15c   : > { %3757 = vmatprep.subr.bf16.mxu1 %v6174_v33 }
 0x15e   : > { %4043 = vmatpush3.bf16.msra.mxu0 %v4040_v51  ;;  %v1228_v51 = vsub.f32 %v6234_v40, %v6235_v53  ;;  %v6258_v53 = vld [vmem:[#allocation28_spill] sm:$0xff] }
 0x15f   : > { %4045 = vmatprep.subr.bf16.mxu0 %v4044_v6  ;;  %3759 = vmatpush3.bf16.msra.mxu1 %v6174_v33 }
 0x160   : > { %3761 = vmatprep.subr.bf16.mxu1 %v6177_v22 }
 0x162   : > { %4047 = vmatpush3.bf16.msra.mxu0 %v4044_v6  ;;  %v6236_v6 = vld [vmem:[#allocation22_spill] sm:$0xff] }
 0x163   : > { %4049 = vmatprep.subr.bf16.mxu0 %v4048_v5  ;;  %3763 = vmatpush3.bf16.msra.mxu1 %v6177_v22  ;;  %v6214_v22 = vld [vmem:[#allocation33_spill] sm:$0xff] }
 0x164   : > { %3765 = vmatprep.subr.bf16.mxu1 %v6180_v25  ;;  %v6215_v35 = vand.u32 4294901760, %v6214_v22 }
 0x166   : > { %4051 = vmatpush3.bf16.msra.mxu0 %v4048_v5  ;;  %v6237_v5 = vand.u32 4294901760, %v5538_v27 }
 0x167   : > { %4053 = vmatprep.subr.bf16.mxu0 %v4052_v17  ;;  %3767 = vmatpush3.bf16.msra.mxu1 %v6180_v25 }
 0x168   : > { %3769 = vmatprep.subr.bf16.mxu1 %v6183_v18 }
 0x16a   : > { %4055 = vmatpush3.bf16.msra.mxu0 %v4052_v17  ;;  %v3820_v17 = vpack.c.bf16 %v1215_v0, %v1208_v56 }
 0x16b   : > { %4057 = vmatprep.subr.bf16.mxu0 %v4056_v48  ;;  %3771 = vmatpush3.bf16.msra.mxu1 %v6183_v18  ;;  %v6220_v18 = vld [vmem:[#allocation37_spill] sm:$0xff] }
 0x16c   : > { %3773 = vmatprep.subr.bf16.mxu1 %v6188_v19  ;;  %v6221_v33 = vand.u32 4294901760, %v6220_v18 }
 0x16e   : > { %4059 = vmatpush3.bf16.msra.mxu0 %v4056_v48  ;;  %v1193_v63 = vsub.f32 %v6220_v18, %v6221_v33  ;;  %v1222_v48 = vand.u32 4294901760, %v1221_v36  ;;  %v6248_v33 = vld [vmem:[#allocation24_spill] sm:$0xff] }
 0x16f   : > { %4061 = vmatprep.subr.bf16.mxu0 %v4060_v37  ;;  %3775 = vmatpush3.bf16.msra.mxu1 %v6188_v19  ;;  %v6222_v19 = vld [vmem:[#allocation39_spill] sm:$0xff] }
 0x170   : > { %3777 = vmatprep.subr.bf16.mxu1 %v5079_v62  ;;  %v6223_v26 = vand.u32 4294901760, %v6222_v19  ;;  %v1194_v58 = vand.u32 4294901760, %v1193_v63 }
 0x172   : > { %4063 = vmatpush3.bf16.msra.mxu0 %v4060_v37  ;;  %v1200_v52 = vsub.f32 %v6222_v19, %v6223_v26  ;;  %v1229_v37 = vand.u32 4294901760, %v1228_v51 }
 0x173   : > { %4065 = vmatprep.subr.bf16.mxu0 %v4064_v32  ;;  %3779 = vmatpush3.bf16.msra.mxu1 %v5079_v62  ;;  %v6206_v62 = vand.u32 4294901760, %v5417_v16  ;;  %v1179_v16 = vsub.f32 %v6214_v22, %v6215_v35 }
 0x174   : > { %3781 = vmatprep.subr.bf16.mxu1 %v4848_v23  ;;  %v1201_v47 = vand.u32 4294901760, %v1200_v52 }
 0x175   : > { %v1180_v25 = vand.u32 4294901760, %v1179_v16  ;;  %v6246_v16 = vld [vmem:[#allocation50_spill] sm:$0xff] }
 0x176   : > { %4067 = vmatpush3.bf16.msra.mxu0 %v4064_v32  ;;  %3166 = vmatmul.mubr.f32.vlgmr.msra.gmra.mrb[0].mxu1 %v5032_v31  ;;  %v6208_v31 = vld [vmem:[#allocation23_spill] sm:$0xff]  ;;  %v3816_v38 = vpack.c.bf16 %v1201_v47, %v1194_v58  ;;  %v6247_v9 = vand.u32 4294901760, %v6246_v16  ;;  %v1264_v58 = vand.u32 4294901760, %v1263_v2  ;;  %v1271_v47 = vand.u32 4294901760, %v1270_v60 }
 0x177   : > { %4069 = vmatprep.subr.bf16.mxu0 %v5430_v57  ;;  %3783 = vmatpush3.bf16.msra.mxu1 %v4848_v23  ;;  %v6209_v23 = vld [vmem:[#allocation27_spill] sm:$0xff]  ;;  %v3812_v39 = vpack.c.bf16 %v1187_v46, %v1180_v25 }
 0x178   : > { %3785 = vmatprep.subr.bf16.mxu1 %v4869_v30  ;;  %3200 = vmatprep.mubr.f32.mxu1 %v1159_v1  ;;  %v6238_v32 = vld [vmem:[#allocation47_spill] sm:$0xff]  ;;  %v6240_v1 = vld [vmem:[#allocation48_spill] sm:$0xff]  ;;  %v1256_v61 = vsub.f32 %v6246_v16, %v6247_v9  ;;  %v3836_v51 = vpack.c.bf16 %v1271_v47, %v1264_v58 }
 0x179   : > { %3481 = vmatmul.mubr.f32.vlgmr.msra.gmra.mrb[0].mxu0 %v5538_v27  ;;  %v6239_v34 = vand.u32 4294901760, %v6238_v32  ;;  %v6244_v27 = vld [vmem:[#allocation49_spill] sm:$0xff] }
 0x17a   : > { %4071 = vmatpush3.bf16.msra.mxu0 %v5430_v57  ;;  %3515 = vmatprep.mubr.f32.mxu0 %v6206_v62  ;;  %v6241_v62 = vand.u32 4294901760, %v6240_v1  ;;  %v1257_v26 = vand.u32 4294901760, %v1256_v61 }
 0x17b   : > { %4073 = vmatprep.subr.bf16.mxu0 %v5450_v55  ;;  %3787 = vmatpush3.bf16.msra.mxu1 %v4869_v30  ;;  %v6212_v30 = vld [vmem:[#allocation56_spill] sm:$0xff]  ;;  %v1235_v24 = vsub.f32 %v6238_v32, %v6239_v34  ;;  %v3844_v34 = vpack.c.bf16 %v6216_v50, %v6214_v22  ;;  %v3852_v22 = vpack.c.bf16 %v6229_v29, %v6227_v28 }
 0x17c   : > { %3789 = vmatprep.subr.bf16.mxu1 %v6207_v13  ;;  %v3856_v50 = vpack.c.bf16 %v6234_v40, %v6232_v41 }
 0x17d   : > { %v1236_v25 = vand.u32 4294901760, %v1235_v24  ;;  %v6261_v24 = vld [vmem:[#allocation59_spill] sm:$0xff] }
 0x17e   : > { %4075 = vmatpush3.bf16.msra.mxu0 %v5450_v55 }
 0x17f   : > { %4077 = vmatprep.subr.bf16.mxu0 %v6208_v31  ;;  %3791 = vmatpush3.bf16.msra.mxu1 %v6207_v13  ;;  %v1242_v13 = vsub.f32 %v6240_v1, %v6241_v62  ;;  %v3848_v62 = vpack.c.bf16 %v6222_v19, %v6220_v18 }
 0x180   : > { %3793 = vmatprep.subr.bf16.mxu1 %v6209_v23 }
 0x181   : > { %v1243_v46 = vand.u32 4294901760, %v1242_v13  ;;  %v6262_v13 = vld [vmem:[#allocation41_spill] sm:$0xff] }
 0x182   : > { %4079 = vmatpush3.bf16.msra.mxu0 %v6208_v31 }
 0x183   : > { %4081 = vmatprep.subr.bf16.mxu0 %v6210_v14  ;;  %3795 = vmatpush3.bf16.msra.mxu1 %v6209_v23  ;;  %v6242_v23 = vld [vmem:[#allocation35_spill] sm:$0xff]  ;;  %v3828_v52 = vpack.c.bf16 %v1243_v46, %v1236_v25 }
 0x184   : > { %3797 = vmatprep.subr.bf16.mxu1 %v6211_v12 }
 0x186   : > { %4083 = vmatpush3.bf16.msra.mxu0 %v6210_v14 }
 0x187   : > { %4085 = vmatprep.subr.bf16.mxu0 %v6212_v30  ;;  %3799 = vmatpush3.bf16.msra.mxu1 %v6211_v12  ;;  %v6243_v12 = vld [vmem:[#allocation40_spill] sm:$0xff] }
 0x188   : > { %3801 = vmatprep.subr.bf16.mxu1 %v6213_v43 }
 0x18a   : > { %4087 = vmatpush3.bf16.msra.mxu0 %v6212_v30 }
 0x18b   : > { %4089 = vmatprep.subr.bf16.mxu0 %v6218_v11  ;;  %3803 = vmatpush3.bf16.msra.mxu1 %v6213_v43  ;;  %v6245_v43 = vand.u32 4294901760, %v6244_v27 }
 0x18c   : > { %3805 = vmatprep.subr.bf16.mxu1 %v6219_v10 }
 0x18d   : > { %v1249_v35 = vsub.f32 %v6244_v27, %v6245_v43 }
 0x18e   : > { %4091 = vmatpush3.bf16.msra.mxu0 %v6218_v11 }
 0x18f   : > { %4093 = vmatprep.subr.bf16.mxu0 %v6224_v4  ;;  %3807 = vmatpush3.bf16.msra.mxu1 %v6219_v10  ;;  %v3824_v10 = vpack.c.bf16 %v1229_v37, %v1222_v48  ;;  %v1250_v63 = vand.u32 4294901760, %v1249_v35  ;;  %v6260_v37 = vld [vmem:[#allocation32_spill] sm:$0xff] }
 0x190   : > { %3809 = vmatprep.subr.bf16.mxu1 %v6231_v49 }
 0x192   : > { %4095 = vmatpush3.bf16.msra.mxu0 %v6224_v4 }
 0x193   : > { %4097 = vmatprep.subr.bf16.mxu0 %v5567_v59  ;;  %3811 = vmatpush3.bf16.msra.mxu1 %v6231_v49  ;;  %v6253_v49 = vld [vmem:[#allocation26_spill] sm:$0xff] }
 0x194   : > { %3813 = vmatprep.subr.bf16.mxu1 %v3812_v39 }
 0x196   : > { %4099 = vmatpush3.bf16.msra.mxu0 %v5567_v59  ;;  %3201 = vmatmul.mubr.f32.vlgmr.msra.gmra.mrb[0].mxu1 %v1169_v3  ;;  %v6254_v3 = vld [vmem:[#allocation53_spill] sm:$0xff] }
 0x197   : > { %4101 = vmatprep.subr.bf16.mxu0 %v6236_v6  ;;  %3815 = vmatpush3.bf16.msra.mxu1 %v3812_v39  ;;  %v3832_v39 = vpack.c.bf16 %v1257_v26, %v1250_v63  ;;  %v6255_v56 = vand.u32 4294901760, %v6254_v3 }
 0x198   : > { %3817 = vmatprep.subr.bf16.mxu1 %v3816_v38  ;;  %3235 = vmatprep.mubr.f32.mxu1 %v6243_v12 }
 0x199   : > { %3516 = vmatmul.mubr.f32.vlgmr.msra.gmra.mrb[0].mxu0 %v6237_v5  ;;  %v1277_v0 = vsub.f32 %v6254_v3, %v6255_v56 }
 0x19a   : > { %4103 = vmatpush3.bf16.msra.mxu0 %v6236_v6  ;;  %3550 = vmatprep.mubr.f32.mxu0 %v5410_v20 }
 0x19b   : > { %4105 = vmatprep.subr.bf16.mxu0 %v6242_v23  ;;  %3819 = vmatpush3.bf16.msra.mxu1 %v3816_v38  ;;  %v6256_v38 = vld [vmem:[#allocation54_spill] sm:$0xff]  ;;  %v1278_v6 = vand.u32 4294901760, %v1277_v0 }
 0x19c   : > { %3821 = vmatprep.subr.bf16.mxu1 %v3820_v17  ;;  %v6257_v44 = vand.u32 4294901760, %v6256_v38 }
 0x19e   : > { %4107 = vmatpush3.bf16.msra.mxu0 %v6242_v23  ;;  %v1284_v36 = vsub.f32 %v6256_v38, %v6257_v44 }
 0x19f   : > { %4109 = vmatprep.subr.bf16.mxu0 %v6248_v33  ;;  %3823 = vmatpush3.bf16.msra.mxu1 %v3820_v17  ;;  %v6259_v17 = vld [vmem:[#allocation30_spill] sm:$0xff] }
 0x1a0   : > { %3825 = vmatprep.subr.bf16.mxu1 %v3824_v10  ;;  %v1285_v5 = vand.u32 4294901760, %v1284_v36 }
 0x1a2   : > { %4111 = vmatpush3.bf16.msra.mxu0 %v6248_v33  ;;  %v3840_v48 = vpack.c.bf16 %v1285_v5, %v1278_v6 }
 0x1a3   : > { %4113 = vmatprep.subr.bf16.mxu0 %v6253_v49  ;;  %3827 = vmatpush3.bf16.msra.mxu1 %v3824_v10 }
 0x1a4   : > { %3829 = vmatprep.subr.bf16.mxu1 %v3828_v52 }
 0x1a6   : > { %4115 = vmatpush3.bf16.msra.mxu0 %v6253_v49 }
 0x1a7   : > { %4117 = vmatprep.subr.bf16.mxu0 %v6258_v53  ;;  %3831 = vmatpush3.bf16.msra.mxu1 %v3828_v52 }
 0x1a8   : > { %3833 = vmatprep.subr.bf16.mxu1 %v3832_v39 }
 0x1aa   : > { %4119 = vmatpush3.bf16.msra.mxu0 %v6258_v53 }
 0x1ab   : > { %4121 = vmatprep.subr.bf16.mxu0 %v6259_v17  ;;  %3835 = vmatpush3.bf16.msra.mxu1 %v3832_v39 }
 0x1ac   : > { %3837 = vmatprep.subr.bf16.mxu1 %v3836_v51 }
 0x1ae   : > { %4123 = vmatpush3.bf16.msra.mxu0 %v6259_v17 }
 0x1af   : > { %4125 = vmatprep.subr.bf16.mxu0 %v6260_v37  ;;  %3839 = vmatpush3.bf16.msra.mxu1 %v3836_v51 }
 0x1b0   : > { %3841 = vmatprep.subr.bf16.mxu1 %v3840_v48 }
 0x1b2   : > { %4127 = vmatpush3.bf16.msra.mxu0 %v6260_v37 }
 0x1b3   : > { %4129 = vmatprep.subr.bf16.mxu0 %v6261_v24  ;;  %3843 = vmatpush3.bf16.msra.mxu1 %v3840_v48 }
 0x1b4   : > { %3845 = vmatprep.subr.bf16.mxu1 %v3844_v34 }
 0x1b6   : > { %4131 = vmatpush3.bf16.msra.mxu0 %v6261_v24  ;;  %3236 = vmatmul.mubr.f32.vlgmr.msra.gmra.mrb[0].mxu1 %v6262_v13 }
 0x1b7   : > { %4133 = vmatprep.subr.bf16.mxu0 %v5430_v57  ;;  %3847 = vmatpush3.bf16.msra.mxu1 %v3844_v34 }
 0x1b8   : > { %3849 = vmatprep.subr.bf16.mxu1 %v3848_v62  ;;  %3270 = vmatprep.mubr.f32.mxu1 %v5129_v7  ;;  %v3864_v7 = vpack.c.bf16 %v6246_v16, %v6244_v27 }
 0x1b9   : > { %3551 = vmatmul.mubr.f32.vlgmr.msra.gmra.mrb[0].mxu0 %v5517_v21 }
 0x1ba   : > { %4135 = vmatpush3.bf16.msra.mxu0 %v5430_v57  ;;  %3585 = vmatprep.mubr.f32.mxu0 %v5410_v20  ;;  %v3860_v57 = vpack.c.bf16 %v6240_v1, %v6238_v32  ;;  %v3868_v20 = vpack.c.bf16 %v6251_v42, %v6249_v54 }
 0x1bb   : > { %4137 = vmatprep.subr.bf16.mxu0 %v5450_v55  ;;  %3851 = vmatpush3.bf16.msra.mxu1 %v3848_v62 }
 0x1bc   : > { %3853 = vmatprep.subr.bf16.mxu1 %v3852_v22 }
 0x1be   : > { %4139 = vmatpush3.bf16.msra.mxu0 %v5450_v55  ;;  %v3872_v55 = vpack.c.bf16 %v6256_v38, %v6254_v3 }
 0x1bf   : > { %4141 = vmatprep.subr.bf16.mxu0 %v6208_v31  ;;  %3855 = vmatpush3.bf16.msra.mxu1 %v3852_v22 }
 0x1c0   : > { %3857 = vmatprep.subr.bf16.mxu1 %v3856_v50 }
 0x1c2   : > { %4143 = vmatpush3.bf16.msra.mxu0 %v6208_v31 }
 0x1c3   : > { %4145 = vmatprep.subr.bf16.mxu0 %v6210_v14  ;;  %3859 = vmatpush3.bf16.msra.mxu1 %v3856_v50 }
 0x1c4   : > { %3861 = vmatprep.subr.bf16.mxu1 %v3860_v57 }
 0x1c6   : > { %4147 = vmatpush3.bf16.msra.mxu0 %v6210_v14 }
 0x1c7   : > { %4149 = vmatprep.subr.bf16.mxu0 %v6212_v30  ;;  %3863 = vmatpush3.bf16.msra.mxu1 %v3860_v57 }
 0x1c8   : > { %3865 = vmatprep.subr.bf16.mxu1 %v3864_v7 }
 0x1ca   : > { %4151 = vmatpush3.bf16.msra.mxu0 %v6212_v30  ;;  %v2464_v30 = vld [vmem:[%s288_s1 + $0x8] sm:$0xff] }
 0x1cb   : > { %4153 = vmatprep.subr.bf16.mxu0 %v6218_v11  ;;  %3867 = vmatpush3.bf16.msra.mxu1 %v3864_v7 }
 0x1cc   : > { %3869 = vmatprep.subr.bf16.mxu1 %v3868_v20 }
 0x1ce   : > { %4155 = vmatpush3.bf16.msra.mxu0 %v6218_v11 }
 0x1cf   : > { %4157 = vmatprep.subr.bf16.mxu0 %v6224_v4  ;;  %3871 = vmatpush3.bf16.msra.mxu1 %v3868_v20 }
 0x1d0   : > { %3873 = vmatprep.subr.bf16.mxu1 %v3872_v55 }
 0x1d2   : > { %4159 = vmatpush3.bf16.msra.mxu0 %v6224_v4  ;;  %v2463_v4 = vld [vmem:[%s288_s1] sm:$0xff] }
 0x1d3   : > { %4161 = vmatprep.subr.bf16.mxu0 %v5567_v59  ;;  %3875 = vmatpush3.bf16.msra.mxu1 %v3872_v55 }
 0x1d6   : > { %4163 = vmatpush3.bf16.msra.mxu0 %v5567_v59  ;;  %3271 = vmatmul.mubr.f32.vlgmr.msra.gmra.mrb[0].mxu1 %v6225_v8 }
 0x1d9   : > { %3586 = vmatmul.mubr.f32.vlgmr.msra.gmra.mrb[0].mxu0 %v5517_v21 }
 0x2a9   : > { %v3272_v31 = vpop.f32.mrb[0].mxu1 }
 0x2aa   : > { %v1432_v11 = vpop.f32.mrb[1].mxu1 }
 0x2ac   : > { %v3587_v14 = vpop.f32.mrb[0].mxu0 }
 0x2ad   : > { %v4164_v18 = vadd.f32 %v3587_v14, %v3272_v31  ;;  %v2451_v19 = vpop.f32.mrb[1].mxu0 }
 0x2ae   : > { %v4165_v21 = vadd.f32 %v2451_v19, %v1432_v11 }
 0x2af   : > { %v2466_v59 = vadd.f32 %v4164_v18, %v2464_v30 }
 0x2b0   : > { %v2465_v8 = vadd.f32 %v4165_v21, %v2463_v4 }
 0x2b1   : > { %2468 = vst [vmem:[%s319_s24 + $0x8] sm:$0xff] %v2466_v59 }
 0x2b2   : > { %2467 = vst [vmem:[%s319_s24] sm:$0xff] %v2465_v8 }
 0x2b3   : > { %4442 = shalt.err (!%p4439_p12)
}
 0x2b4   : > { %s4443_s15 = scalar_lea.hbm %s5842_s7, 256  ;;  %s4447_s9 = scalar_lea.hbm %s5893_s5, 512 }
 0x2b5   : > { %p4444_p0 = scmp.ne.s32.totalorder %s5842_s7, %s4443_s15  ;;  %p4448_p5 = scmp.lt.u32.totalorder %s5842_s7, %s5893_s5 }
 0x2b6   : > { %p4449_p10 = scmp.lt.u32.totalorder %s4447_s9, %s4443_s15  ;;  %p4451_p11 = scmp.lt.u32.totalorder %s4443_s15, %s5842_s7 }
 0x2b7   : > { %p4445_p13 = pnand %p4444_p0, %p6263_p4 }
 0x2b8   : > { %p4450_p2 = por %p4449_p10, %p4448_p5 }
 0x2b9   : > { %p4446_p8 = pneg %p4445_p13 }
 0x2ba   : > { %p4452_p6 = por %p4451_p11, %p4450_p2 }
 0x2bc   : > { %p4453_p3 = pnand %p4452_p6, %p4446_p8 }
 0x2be   : > { %4456 = shalt.err (!%p4453_p3)
}
 0x2bf   : > { %s4518_s8 = smov 128   ;;  %s4519_s27 = smov 8  }
 0x2c0   : > { %4214 = dma.vmem_to_hbm [thread:$0]  (%p6263_p4), %s5837_s26, 256, %s5842_s7, %s5846_s22, %s4518_s8, %s4518_s8, %s4519_s27  }
 0x2c1 PF: > { %s6264_s6 = sld [smem:[#allocation19_spill]]  ;;  %s2498_s23 = sand.u32 1, %s4495_s18  }
 0x2c2   : > { %p6265_p1 = scmp.ne.s32.totalorder %s6049_s25, 0  ;;  %s2499_s0 = scalar_lea.sflag [#allocation5], %s2498_s23 }
 0x2c7   : > { %p6266_p9 = scmp.ge.s32.totalorder %s6264_s6, 2 }
 0x2c9   : > { %p4234_p7 = pnand %p6266_p9, %p6265_p1 }
 0x2cb   : > { %4490 = dma.done.wait (!%p4234_p7), %s2499_s0, 256  }
 0x2cc   : > { %4492 = vsyncadd (!%p4234_p7), %s2499_s0, 4294967040  ;;  %s6267_s21 = sld [smem:[#allocation20_spill]]  ;;  %s6268_s1 = sld [smem:[#allocation18_spill]] }
 0x2cd   : > { %s6269_s20 = sld [smem:[#allocation21_spill]]  ;;  %s6270_s18 = smov %s4499_s19 }
 0x2d2   : > { %p20_p12 = scmp.ge.s32.totalorder %s6267_s21, 4   ;;  %s6271_s19 = smov %s6268_s1 }
 0x2d4   :  { %22 = sbr.rel (!%p20_p12) target bundleno = 10 (0xa), region = 110 }
 0x2db   :  { %2504 = vsyncpa [#allocation4], 1 }
 0x2dc   :  { %2506 = vsyncpa [#allocation4 + $0x1], 1 }
 0x2dd   :  { %2507 = vsyncpa [#allocation7], 1 }
 0x2de   :  { %2508 = vsyncpa [#allocation10], 1 }
 0x2df   :  { %2509 = vsyncpa [#allocation5], 1 }
 0x2e0   :  { %2511 = vsyncpa [#allocation5 + $0x1], 1 }

</bundles_post_ra>
